<compile_context>
chip_gen: v7x
topology: tpu7x:2x2x1
jax: 0.10.0
libtpu: 0.0.40
codegen_flags: <defaults>
</compile_context>

<pallas_src>
import functools

import jax
import jax.numpy as jnp
import numpy as np
from jax import lax
from jax.experimental import pallas as pl
from jax.experimental.pallas import tpu as pltpu


# (kernel, stride, padding, output_padding, relu) for the 5 ConvTranspose2d.
LAYER_CONFIGS = [
    (5, 2, 2, 1, True),
    (5, 2, 2, 1, True),
    (5, 2, 2, 1, True),
    (5, 1, 2, 0, True),
    (3, 1, 1, 0, False),
]


def _round_up(a, b):
    return (a + b - 1) // b * b


# ----------------------------- Pallas kernel -------------------------------

def _matmul_bias_act_kernel(w_ref, x_ref, b_ref, o_ref, *, relu):
    # w_ref: (Cout_pad, K) weights, x_ref: (K, tm) patch columns,
    # b_ref: (Cout_pad, 1) f32 bias.  Lane axis = M (large) -> dense stores.
    acc = jnp.dot(w_ref[...], x_ref[...], preferred_element_type=jnp.float32)
    acc = acc + b_ref[...]
    if relu:
        acc = jnp.maximum(acc, 0.0)
    o_ref[...] = acc.astype(o_ref.dtype)


def _matmul_bias_act(w, x, bias, *, relu, n_out, tm=512):
    """act(w @ x + bias)[:n_out, :M] with M (columns of x) on the lanes."""
    n, K = w.shape
    K2, M = x.shape
    assert K == K2
    M_pad = _round_up(M, 128)
    if M_pad > tm:
        M_pad = _round_up(M_pad, tm)
    else:
        tm = M_pad
    if M_pad != M:
        x = jnp.pad(x, ((0, 0), (0, M_pad - M)))

    itemsize = jnp.dtype(x.dtype).itemsize
    cost = pl.CostEstimate(
        flops=2 * n * K * M_pad,
        transcendentals=0,
        bytes_accessed=(K * M_pad + n * K + n * M_pad) * itemsize + 4 * n)

    out = pl.pallas_call(
        functools.partial(_matmul_bias_act_kernel, relu=relu),
        out_shape=jax.ShapeDtypeStruct((n, M_pad), x.dtype),
        grid_spec=pltpu.PrefetchScalarGridSpec(
            num_scalar_prefetch=0,
            grid=(M_pad // tm,),
            in_specs=[
                pl.BlockSpec((n, K), lambda i: (0, 0)),    # weights (resident)
                pl.BlockSpec((K, tm), lambda i: (0, i)),   # patch columns
                pl.BlockSpec((n, 1), lambda i: (0, 0)),    # bias
            ],
            out_specs=pl.BlockSpec((n, tm), lambda i: (0, i)),
        ),
        compiler_params=pltpu.CompilerParams(
            dimension_semantics=("parallel",),
            vmem_limit_bytes=32 * 1024 * 1024),
        cost_estimate=cost,
    )(w, x, bias)
    return out[:n_out, :M]


# ------------------- ConvTranspose2d via phase decomposition ----------------

def _phase_geometry(k, stride, padding):
    """Static sub-pixel decomposition for one spatial dim.

    Phase r (output index y = stride*u + r) uses kernel taps
      A_r = {a : (a + r - pad_lo) % stride == 0},  pad_lo = k - 1 - padding,
    reading input rows u + (a + r - pad_lo)//stride.  Returns a common
    (before, after) zero-padding and, per phase, the window start offsets
    into the padded input.
    """
    pad_lo = k - 1 - padding
    raw = []
    for r in range(stride):
        taps = [a for a in range(k) if (a + r - pad_lo) % stride == 0]
        offs = [(a + r - pad_lo) // stride for a in taps]
        raw.append((taps, offs))
    before = max(max(0, -min(o)) for _, o in raw)
    after = max(max(0, max(o)) for _, o in raw)
    phases = [dict(taps=t, starts=[d + before for d in o]) for t, o in raw]
    return before, after, phases


def pack_decoder_params(params, compute_dtype):
    """One-time packing: flip + per-phase tap selection + (C_out_pad, K) layout."""
    weights, meta = [], []
    for (wT, b), (k, s, p, op, relu) in zip(params, LAYER_CONFIGS):
        # The phase decomposition below assumes H_out == stride * H,
        # which holds for all layers of this module.
        assert k - 2 * p + op == s, "unsupported ConvTranspose2d geometry"
        before, after, phases = _phase_geometry(k, s, p)
        c_in, c_out = wT.shape[0], wT.shape[1]
        n_pad = _round_up(c_out, 8)
        wflip = jnp.flip(wT.astype(jnp.float32), axis=(2, 3))  # (Cin,Cout,k,k)
        w_phases = []
        for gy in phases:
            row = []
            for gx in phases:
                wsel = wflip[:, :, gy['taps'], :][:, :, :, gx['taps']]
                # (Cin, Cout, Ta, Tb) -> (Cout, Ta, Tb, Cin) -> (Cout, K)
                wmat = wsel.transpose(1, 2, 3, 0).reshape(c_out, -1)
                wmat = jnp.pad(wmat, ((0, n_pad - c_out), (0, 0)))
                row.append(wmat.astype(compute_dtype))
            w_phases.append(row)
        bias = jnp.pad(b.astype(jnp.float32).reshape(c_out, 1),
                       ((0, n_pad - c_out), (0, 0)))
        weights.append((w_phases, bias))
        meta.append(dict(stride=s, relu=relu, pad=(before, after),
                         phases=phases, c_out=c_out))
    return weights, meta


def _conv_transpose_layer(h, w_phases, bias, meta):
    """One ConvTranspose2d(+ReLU) layer.  h is (C_in, B, H, W)."""
    _, B, H, W = h.shape
    s = meta['stride']
    pb, pa = meta['pad']
    phases = meta['phases']
    c_out = meta['c_out']
    hp = jnp.pad(h, ((0, 0), (0, 0), (pb, pa), (pb, pa)))
    M = B * H * W
    rows = []
    for ry in range(s):
        gy = phases[ry]
        cols = []
        for rx in range(s):
            gx = phases[rx]
            # TODO(synk): fuse this tap gather into the kernel (grid axis over
            # taps with element-offset windows) so the (T*C_in, M) patch matrix
            # is never materialized in HBM at all.
            wins = [hp[:, :, dy:dy + H, dx:dx + W]
                    for dy in gy['starts'] for dx in gx['starts']]
            patches = jnp.stack(wins, axis=0).reshape(-1, M)
            out = _matmul_bias_act(w_phases[ry][rx], patches, bias,
                                   relu=meta['relu'], n_out=c_out)
            cols.append(out.reshape(c_out, B, H, W))
        rows.append(jnp.stack(cols, axis=-1))          # (c_out, B, H, W, s)
    y = jnp.stack(rows, axis=3)                        # (c_out, B, H, s, W, s)
    return y.reshape(c_out, B, s * H, s * W)


def make_decoder(params, compute_dtype=jnp.bfloat16):
    """Returns a jitted forward(x: NCHW f32) -> NCHW f32."""
    weights, meta = pack_decoder_params(params, compute_dtype)

    def fwd(weights, x):
        h = jnp.transpose(x, (1, 0, 2, 3)).astype(compute_dtype)   # (C,B,H,W)
        for (w_phases, bias), m in zip(weights, meta):
            h = _conv_transpose_layer(h, w_phases, bias, m)
        return jnp.transpose(h, (1, 0, 2, 3)).astype(jnp.float32)  # NCHW

    jitted = jax.jit(fwd)
    return lambda x: jitted(weights, x)


# --------------------------------- params ------------------------------------

def init_params(key, in_channels, hidden_channels, out_channels):
    chans = [in_channels] + [hidden_channels] * 4 + [out_channels]
    params = []
    for i, (k, s, p, op, relu) in enumerate(LAYER_CONFIGS):
        ci, co = chans[i], chans[i + 1]
        kw, kb = jax.random.split(jax.random.fold_in(key, i))
        bound = 1.0 / np.sqrt(ci * k * k)
        w = jax.random.uniform(kw, (ci, co, k, k), jnp.float32, -bound, bound)
        b = jax.random.uniform(kb, (co,), jnp.float32, -bound, bound)
        params.append((w, b))
    return params


# ------------------------------ Pure-JAX reference ---------------------------

def _conv_transpose2d_ref(x, wT, bias, k, stride, padding, output_padding, relu):
    conv_w = jnp.flip(wT, axis=(2, 3)).transpose(1, 0, 2, 3)  # (C_out,C_in,k,k)
    pad_lo = k - 1 - padding
    pad_hi = k - 1 - padding + output_padding
    y = lax.conv_general_dilated(
        x, conv_w, window_strides=(1, 1),
        padding=((pad_lo, pad_hi), (pad_lo, pad_hi)),
        lhs_dilation=(stride, stride),
        dimension_numbers=('NCHW', 'OIHW', 'NCHW'))
    y = y + bias.reshape(1, -1, 1, 1)
    if relu:
        y = jnp.maximum(y, 0.0)
    return y


def _decoder_ref(params, x):
    h = x
    for (w, b), (k, s, p, op, relu) in zip(params, LAYER_CONFIGS):
        h = _conv_transpose2d_ref(h, w, b, k, s, p, op, relu)
    return h


# ----------------------------------- main ------------------------------------

if __name__ == "__main__":
    key = jax.random.PRNGKey(0)
    B, C_in, H, W = 2, 8, 4, 4
    hidden, C_out = 16, 4

    x = jax.random.normal(jax.random.fold_in(key, 100), (B, C_in, H, W),
                          jnp.float32)
    params = init_params(key, C_in, hidden, C_out)

    y_ref = jax.block_until_ready(_decoder_ref(params, x))
    assert y_ref.shape == (B, C_out, 32, 32), y_ref.shape   # 4->8->16->32->32->32

    # Exact-semantics check: f32 operands, tight tolerance.
    y_f32 = jax.block_until_ready(make_decoder(params, jnp.float32)(x))
    assert y_f32.shape == (B, C_out, 32, 32), y_f32.shape
    np.testing.assert_allclose(np.asarray(y_f32), np.asarray(y_ref),
                               rtol=1e-4, atol=1e-4)

    # Performance default: bf16 operands, f32 MXU accumulation (looser tol).
    y_bf16 = jax.block_until_ready(make_decoder(params, jnp.bfloat16)(x))
    np.testing.assert_allclose(np.asarray(y_bf16), np.asarray(y_ref),
                               rtol=2e-2, atol=2e-2)

    print("KERNEL_OK")
</pallas_src>

<mosaic_0001>
module attributes {stable_mosaic.version = 11 : i64} {
  func.func @_matmul_bias_act_kernel(%arg0: i32, %arg1: memref<16x72xf32, #tpu.memory_space<vmem>>, %arg2: memref<72x128xf32, #tpu.memory_space<vmem>>, %arg3: memref<16x1xf32, #tpu.memory_space<vmem>>, %arg4: memref<16x128xf32, #tpu.memory_space<vmem>>) attributes {dimension_semantics = [#tpu.dimension_semantics<parallel>], iteration_bounds = array<i64: 1>, scalar_prefetch = 0 : i64, scratch_operands = 0 : i64, tpu.core_type = #tpu.core_type<tc>, window_params = [{pipeline_mode = #tpu.pipeline_mode<synchronous>, transform_indices = @transform_0, window_bounds = array<i64: 16, 72>}, {transform_indices = @transform_1, window_bounds = array<i64: 72, 128>}, {pipeline_mode = #tpu.pipeline_mode<synchronous>, transform_indices = @transform_2, window_bounds = array<i64: 16, 1>}, {transform_indices = @transform_3, window_bounds = array<i64: 16, 128>}]} {
    %c0 = arith.constant 0 : index
    %c0_0 = arith.constant 0 : index
    %0 = vector.load %arg1[%c0, %c0_0] : memref<16x72xf32, #tpu.memory_space<vmem>>, vector<16x72xf32>
    %c0_1 = arith.constant 0 : index
    %c0_2 = arith.constant 0 : index
    %1 = vector.load %arg2[%c0_1, %c0_2] : memref<72x128xf32, #tpu.memory_space<vmem>>, vector<72x128xf32>
    %cst = arith.constant dense<0.000000e+00> : vector<16x128xf32>
    %2 = tpu.matmul %0, %1, %cst {dimension_numbers = #tpu.dot_dimension_numbers<[1], [0], [0], [1], [0, 0, 1, 1], [], []>} : vector<16x72xf32>, vector<72x128xf32>, vector<16x128xf32> -> vector<16x128xf32>
    %c0_3 = arith.constant 0 : index
    %c0_4 = arith.constant 0 : index
    %3 = vector.load %arg3[%c0_3, %c0_4] : memref<16x1xf32, #tpu.memory_space<vmem>>, vector<16x1xf32>
    %4 = vector.broadcast %3 : vector<16x1xf32> to vector<16x128xf32>
    %5 = arith.addf %2, %4 : vector<16x128xf32>
    %cst_5 = arith.constant 0.000000e+00 : f32
    %6 = vector.broadcast %cst_5 : f32 to vector<16x128xf32>
    %7 = arith.maximumf %5, %6 : vector<16x128xf32>
    %c0_6 = arith.constant 0 : index
    %c0_7 = arith.constant 0 : index
    %8 = vector.load %arg4[%c0_6, %c0_7] : memref<16x128xf32, #tpu.memory_space<vmem>>, vector<16x128xf32>
    tpu.vector_store %arg4[%c0_6, %c0_7], %7 {strides = array<i32>} : memref<16x128xf32, #tpu.memory_space<vmem>>, vector<16x128xf32>,
    return
  }
  func.func @transform_0(%arg0: i32) -> (i32, i32) {
    %c0_i32 = arith.constant 0 : i32
    %c0_i32_0 = arith.constant 0 : i32
    %c0_i32_1 = arith.constant 0 : i32
    return %c0_i32, %c0_i32_0 : i32, i32
  }
  func.func @transform_1(%arg0: i32) -> (i32, i32) {
    %c0_i32 = arith.constant 0 : i32
    %c0_i32_0 = arith.constant 0 : i32
    return %c0_i32, %arg0 : i32, i32
  }
  func.func @transform_2(%arg0: i32) -> (i32, i32) {
    %c0_i32 = arith.constant 0 : i32
    %c0_i32_0 = arith.constant 0 : i32
    %c0_i32_1 = arith.constant 0 : i32
    return %c0_i32, %c0_i32_0 : i32, i32
  }
  func.func @transform_3(%arg0: i32) -> (i32, i32) {
    %c0_i32 = arith.constant 0 : i32
    %c0_i32_0 = arith.constant 0 : i32
    return %c0_i32, %arg0 : i32, i32
  }
}

module attributes {stable_mosaic.version = 11 : i64} {
  func.func @_matmul_bias_act_kernel(%arg0: i32, %arg1: memref<16x48xf32, #tpu.memory_space<vmem>>, %arg2: memref<48x128xf32, #tpu.memory_space<vmem>>, %arg3: memref<16x1xf32, #tpu.memory_space<vmem>>, %arg4: memref<16x128xf32, #tpu.memory_space<vmem>>) attributes {dimension_semantics = [#tpu.dimension_semantics<parallel>], iteration_bounds = array<i64: 1>, scalar_prefetch = 0 : i64, scratch_operands = 0 : i64, tpu.core_type = #tpu.core_type<tc>, window_params = [{pipeline_mode = #tpu.pipeline_mode<synchronous>, transform_indices = @transform_0, window_bounds = array<i64: 16, 48>}, {transform_indices = @transform_1, window_bounds = array<i64: 48, 128>}, {pipeline_mode = #tpu.pipeline_mode<synchronous>, transform_indices = @transform_2, window_bounds = array<i64: 16, 1>}, {transform_indices = @transform_3, window_bounds = array<i64: 16, 128>}]} {
    %c0 = arith.constant 0 : index
    %c0_0 = arith.constant 0 : index
    %0 = vector.load %arg1[%c0, %c0_0] : memref<16x48xf32, #tpu.memory_space<vmem>>, vector<16x48xf32>
    %c0_1 = arith.constant 0 : index
    %c0_2 = arith.constant 0 : index
    %1 = vector.load %arg2[%c0_1, %c0_2] : memref<48x128xf32, #tpu.memory_space<vmem>>, vector<48x128xf32>
    %cst = arith.constant dense<0.000000e+00> : vector<16x128xf32>
    %2 = tpu.matmul %0, %1, %cst {dimension_numbers = #tpu.dot_dimension_numbers<[1], [0], [0], [1], [0, 0, 1, 1], [], []>} : vector<16x48xf32>, vector<48x128xf32>, vector<16x128xf32> -> vector<16x128xf32>
    %c0_3 = arith.constant 0 : index
    %c0_4 = arith.constant 0 : index
    %3 = vector.load %arg3[%c0_3, %c0_4] : memref<16x1xf32, #tpu.memory_space<vmem>>, vector<16x1xf32>
    %4 = vector.broadcast %3 : vector<16x1xf32> to vector<16x128xf32>
    %5 = arith.addf %2, %4 : vector<16x128xf32>
    %cst_5 = arith.constant 0.000000e+00 : f32
    %6 = vector.broadcast %cst_5 : f32 to vector<16x128xf32>
    %7 = arith.maximumf %5, %6 : vector<16x128xf32>
    %c0_6 = arith.constant 0 : index
    %c0_7 = arith.constant 0 : index
    %8 = vector.load %arg4[%c0_6, %c0_7] : memref<16x128xf32, #tpu.memory_space<vmem>>, vector<16x128xf32>
    tpu.vector_store %arg4[%c0_6, %c0_7], %7 {strides = array<i32>} : memref<16x128xf32, #tpu.memory_space<vmem>>, vector<16x128xf32>,
    return
  }
  func.func @transform_0(%arg0: i32) -> (i32, i32) {
    %c0_i32 = arith.constant 0 : i32
    %c0_i32_0 = arith.constant 0 : i32
    %c0_i32_1 = arith.constant 0 : i32
    return %c0_i32, %c0_i32_0 : i32, i32
  }
  func.func @transform_1(%arg0: i32) -> (i32, i32) {
    %c0_i32 = arith.constant 0 : i32
    %c0_i32_0 = arith.constant 0 : i32
    return %c0_i32, %arg0 : i32, i32
  }
  func.func @transform_2(%arg0: i32) -> (i32, i32) {
    %c0_i32 = arith.constant 0 : i32
    %c0_i32_0 = arith.constant 0 : i32
    %c0_i32_1 = arith.constant 0 : i32
    return %c0_i32, %c0_i32_0 : i32, i32
  }
  func.func @transform_3(%arg0: i32) -> (i32, i32) {
    %c0_i32 = arith.constant 0 : i32
    %c0_i32_0 = arith.constant 0 : i32
    return %c0_i32, %arg0 : i32, i32
  }
}

module attributes {stable_mosaic.version = 11 : i64} {
  func.func @_matmul_bias_act_kernel(%arg0: i32, %arg1: memref<16x32xf32, #tpu.memory_space<vmem>>, %arg2: memref<32x128xf32, #tpu.memory_space<vmem>>, %arg3: memref<16x1xf32, #tpu.memory_space<vmem>>, %arg4: memref<16x128xf32, #tpu.memory_space<vmem>>) attributes {dimension_semantics = [#tpu.dimension_semantics<parallel>], iteration_bounds = array<i64: 1>, scalar_prefetch = 0 : i64, scratch_operands = 0 : i64, tpu.core_type = #tpu.core_type<tc>, window_params = [{pipeline_mode = #tpu.pipeline_mode<synchronous>, transform_indices = @transform_0, window_bounds = array<i64: 16, 32>}, {transform_indices = @transform_1, window_bounds = array<i64: 32, 128>}, {pipeline_mode = #tpu.pipeline_mode<synchronous>, transform_indices = @transform_2, window_bounds = array<i64: 16, 1>}, {transform_indices = @transform_3, window_bounds = array<i64: 16, 128>}]} {
    %c0 = arith.constant 0 : index
    %c0_0 = arith.constant 0 : index
    %0 = vector.load %arg1[%c0, %c0_0] : memref<16x32xf32, #tpu.memory_space<vmem>>, vector<16x32xf32>
    %c0_1 = arith.constant 0 : index
    %c0_2 = arith.constant 0 : index
    %1 = vector.load %arg2[%c0_1, %c0_2] : memref<32x128xf32, #tpu.memory_space<vmem>>, vector<32x128xf32>
    %cst = arith.constant dense<0.000000e+00> : vector<16x128xf32>
    %2 = tpu.matmul %0, %1, %cst {dimension_numbers = #tpu.dot_dimension_numbers<[1], [0], [0], [1], [0, 0, 1, 1], [], []>} : vector<16x32xf32>, vector<32x128xf32>, vector<16x128xf32> -> vector<16x128xf32>
    %c0_3 = arith.constant 0 : index
    %c0_4 = arith.constant 0 : index
    %3 = vector.load %arg3[%c0_3, %c0_4] : memref<16x1xf32, #tpu.memory_space<vmem>>, vector<16x1xf32>
    %4 = vector.broadcast %3 : vector<16x1xf32> to vector<16x128xf32>
    %5 = arith.addf %2, %4 : vector<16x128xf32>
    %cst_5 = arith.constant 0.000000e+00 : f32
    %6 = vector.broadcast %cst_5 : f32 to vector<16x128xf32>
    %7 = arith.maximumf %5, %6 : vector<16x128xf32>
    %c0_6 = arith.constant 0 : index
    %c0_7 = arith.constant 0 : index
    %8 = vector.load %arg4[%c0_6, %c0_7] : memref<16x128xf32, #tpu.memory_space<vmem>>, vector<16x128xf32>
    tpu.vector_store %arg4[%c0_6, %c0_7], %7 {strides = array<i32>} : memref<16x128xf32, #tpu.memory_space<vmem>>, vector<16x128xf32>,
    return
  }
  func.func @transform_0(%arg0: i32) -> (i32, i32) {
    %c0_i32 = arith.constant 0 : i32
    %c0_i32_0 = arith.constant 0 : i32
    %c0_i32_1 = arith.constant 0 : i32
    return %c0_i32, %c0_i32_0 : i32, i32
  }
  func.func @transform_1(%arg0: i32) -> (i32, i32) {
    %c0_i32 = arith.constant 0 : i32
    %c0_i32_0 = arith.constant 0 : i32
    return %c0_i32, %arg0 : i32, i32
  }
  func.func @transform_2(%arg0: i32) -> (i32, i32) {
    %c0_i32 = arith.constant 0 : i32
    %c0_i32_0 = arith.constant 0 : i32
    %c0_i32_1 = arith.constant 0 : i32
    return %c0_i32, %c0_i32_0 : i32, i32
  }
  func.func @transform_3(%arg0: i32) -> (i32, i32) {
    %c0_i32 = arith.constant 0 : i32
    %c0_i32_0 = arith.constant 0 : i32
    return %c0_i32, %arg0 : i32, i32
  }
}

module attributes {stable_mosaic.version = 11 : i64} {
  func.func @_matmul_bias_act_kernel(%arg0: i32, %arg1: memref<16x144xf32, #tpu.memory_space<vmem>>, %arg2: memref<144x128xf32, #tpu.memory_space<vmem>>, %arg3: memref<16x1xf32, #tpu.memory_space<vmem>>, %arg4: memref<16x128xf32, #tpu.memory_space<vmem>>) attributes {dimension_semantics = [#tpu.dimension_semantics<parallel>], iteration_bounds = array<i64: 1>, scalar_prefetch = 0 : i64, scratch_operands = 0 : i64, tpu.core_type = #tpu.core_type<tc>, window_params = [{pipeline_mode = #tpu.pipeline_mode<synchronous>, transform_indices = @transform_0, window_bounds = array<i64: 16, 144>}, {transform_indices = @transform_1, window_bounds = array<i64: 144, 128>}, {pipeline_mode = #tpu.pipeline_mode<synchronous>, transform_indices = @transform_2, window_bounds = array<i64: 16, 1>}, {transform_indices = @transform_3, window_bounds = array<i64: 16, 128>}]} {
    %c0 = arith.constant 0 : index
    %c0_0 = arith.constant 0 : index
    %0 = vector.load %arg1[%c0, %c0_0] : memref<16x144xf32, #tpu.memory_space<vmem>>, vector<16x144xf32>
    %c0_1 = arith.constant 0 : index
    %c0_2 = arith.constant 0 : index
    %1 = vector.load %arg2[%c0_1, %c0_2] : memref<144x128xf32, #tpu.memory_space<vmem>>, vector<144x128xf32>
    %cst = arith.constant dense<0.000000e+00> : vector<16x128xf32>
    %2 = tpu.matmul %0, %1, %cst {dimension_numbers = #tpu.dot_dimension_numbers<[1], [0], [0], [1], [0, 0, 1, 1], [], []>} : vector<16x144xf32>, vector<144x128xf32>, vector<16x128xf32> -> vector<16x128xf32>
    %c0_3 = arith.constant 0 : index
    %c0_4 = arith.constant 0 : index
    %3 = vector.load %arg3[%c0_3, %c0_4] : memref<16x1xf32, #tpu.memory_space<vmem>>, vector<16x1xf32>
    %4 = vector.broadcast %3 : vector<16x1xf32> to vector<16x128xf32>
    %5 = arith.addf %2, %4 : vector<16x128xf32>
    %cst_5 = arith.constant 0.000000e+00 : f32
    %6 = vector.broadcast %cst_5 : f32 to vector<16x128xf32>
    %7 = arith.maximumf %5, %6 : vector<16x128xf32>
    %c0_6 = arith.constant 0 : index
    %c0_7 = arith.constant 0 : index
    %8 = vector.load %arg4[%c0_6, %c0_7] : memref<16x128xf32, #tpu.memory_space<vmem>>, vector<16x128xf32>
    tpu.vector_store %arg4[%c0_6, %c0_7], %7 {strides = array<i32>} : memref<16x128xf32, #tpu.memory_space<vmem>>, vector<16x128xf32>,
    return
  }
  func.func @transform_0(%arg0: i32) -> (i32, i32) {
    %c0_i32 = arith.constant 0 : i32
    %c0_i32_0 = arith.constant 0 : i32
    %c0_i32_1 = arith.constant 0 : i32
    return %c0_i32, %c0_i32_0 : i32, i32
  }
  func.func @transform_1(%arg0: i32) -> (i32, i32) {
    %c0_i32 = arith.constant 0 : i32
    %c0_i32_0 = arith.constant 0 : i32
    return %c0_i32, %arg0 : i32, i32
  }
  func.func @transform_2(%arg0: i32) -> (i32, i32) {
    %c0_i32 = arith.constant 0 : i32
    %c0_i32_0 = arith.constant 0 : i32
    %c0_i32_1 = arith.constant 0 : i32
    return %c0_i32, %c0_i32_0 : i32, i32
  }
  func.func @transform_3(%arg0: i32) -> (i32, i32) {
    %c0_i32 = arith.constant 0 : i32
    %c0_i32_0 = arith.constant 0 : i32
    return %c0_i32, %arg0 : i32, i32
  }
}

module attributes {stable_mosaic.version = 11 : i64} {
  func.func @_matmul_bias_act_kernel(%arg0: i32, %arg1: memref<16x96xf32, #tpu.memory_space<vmem>>, %arg2: memref<96x128xf32, #tpu.memory_space<vmem>>, %arg3: memref<16x1xf32, #tpu.memory_space<vmem>>, %arg4: memref<16x128xf32, #tpu.memory_space<vmem>>) attributes {dimension_semantics = [#tpu.dimension_semantics<parallel>], iteration_bounds = array<i64: 1>, scalar_prefetch = 0 : i64, scratch_operands = 0 : i64, tpu.core_type = #tpu.core_type<tc>, window_params = [{pipeline_mode = #tpu.pipeline_mode<synchronous>, transform_indices = @transform_0, window_bounds = array<i64: 16, 96>}, {transform_indices = @transform_1, window_bounds = array<i64: 96, 128>}, {pipeline_mode = #tpu.pipeline_mode<synchronous>, transform_indices = @transform_2, window_bounds = array<i64: 16, 1>}, {transform_indices = @transform_3, window_bounds = array<i64: 16, 128>}]} {
    %c0 = arith.constant 0 : index
    %c0_0 = arith.constant 0 : index
    %0 = vector.load %arg1[%c0, %c0_0] : memref<16x96xf32, #tpu.memory_space<vmem>>, vector<16x96xf32>
    %c0_1 = arith.constant 0 : index
    %c0_2 = arith.constant 0 : index
    %1 = vector.load %arg2[%c0_1, %c0_2] : memref<96x128xf32, #tpu.memory_space<vmem>>, vector<96x128xf32>
    %cst = arith.constant dense<0.000000e+00> : vector<16x128xf32>
    %2 = tpu.matmul %0, %1, %cst {dimension_numbers = #tpu.dot_dimension_numbers<[1], [0], [0], [1], [0, 0, 1, 1], [], []>} : vector<16x96xf32>, vector<96x128xf32>, vector<16x128xf32> -> vector<16x128xf32>
    %c0_3 = arith.constant 0 : index
    %c0_4 = arith.constant 0 : index
    %3 = vector.load %arg3[%c0_3, %c0_4] : memref<16x1xf32, #tpu.memory_space<vmem>>, vector<16x1xf32>
    %4 = vector.broadcast %3 : vector<16x1xf32> to vector<16x128xf32>
    %5 = arith.addf %2, %4 : vector<16x128xf32>
    %cst_5 = arith.constant 0.000000e+00 : f32
    %6 = vector.broadcast %cst_5 : f32 to vector<16x128xf32>
    %7 = arith.maximumf %5, %6 : vector<16x128xf32>
    %c0_6 = arith.constant 0 : index
    %c0_7 = arith.constant 0 : index
    %8 = vector.load %arg4[%c0_6, %c0_7] : memref<16x128xf32, #tpu.memory_space<vmem>>, vector<16x128xf32>
    tpu.vector_store %arg4[%c0_6, %c0_7], %7 {strides = array<i32>} : memref<16x128xf32, #tpu.memory_space<vmem>>, vector<16x128xf32>,
    return
  }
  func.func @transform_0(%arg0: i32) -> (i32, i32) {
    %c0_i32 = arith.constant 0 : i32
    %c0_i32_0 = arith.constant 0 : i32
    %c0_i32_1 = arith.constant 0 : i32
    return %c0_i32, %c0_i32_0 : i32, i32
  }
  func.func @transform_1(%arg0: i32) -> (i32, i32) {
    %c0_i32 = arith.constant 0 : i32
    %c0_i32_0 = arith.constant 0 : i32
    return %c0_i32, %arg0 : i32, i32
  }
  func.func @transform_2(%arg0: i32) -> (i32, i32) {
    %c0_i32 = arith.constant 0 : i32
    %c0_i32_0 = arith.constant 0 : i32
    %c0_i32_1 = arith.constant 0 : i32
    return %c0_i32, %c0_i32_0 : i32, i32
  }
  func.func @transform_3(%arg0: i32) -> (i32, i32) {
    %c0_i32 = arith.constant 0 : i32
    %c0_i32_0 = arith.constant 0 : i32
    return %c0_i32, %arg0 : i32, i32
  }
}

module attributes {stable_mosaic.version = 11 : i64} {
  func.func @_matmul_bias_act_kernel(%arg0: i32, %arg1: memref<16x64xf32, #tpu.memory_space<vmem>>, %arg2: memref<64x128xf32, #tpu.memory_space<vmem>>, %arg3: memref<16x1xf32, #tpu.memory_space<vmem>>, %arg4: memref<16x128xf32, #tpu.memory_space<vmem>>) attributes {dimension_semantics = [#tpu.dimension_semantics<parallel>], iteration_bounds = array<i64: 1>, scalar_prefetch = 0 : i64, scratch_operands = 0 : i64, tpu.core_type = #tpu.core_type<tc>, window_params = [{pipeline_mode = #tpu.pipeline_mode<synchronous>, transform_indices = @transform_0, window_bounds = array<i64: 16, 64>}, {transform_indices = @transform_1, window_bounds = array<i64: 64, 128>}, {pipeline_mode = #tpu.pipeline_mode<synchronous>, transform_indices = @transform_2, window_bounds = array<i64: 16, 1>}, {transform_indices = @transform_3, window_bounds = array<i64: 16, 128>}]} {
    %c0 = arith.constant 0 : index
    %c0_0 = arith.constant 0 : index
    %0 = vector.load %arg1[%c0, %c0_0] : memref<16x64xf32, #tpu.memory_space<vmem>>, vector<16x64xf32>
    %c0_1 = arith.constant 0 : index
    %c0_2 = arith.constant 0 : index
    %1 = vector.load %arg2[%c0_1, %c0_2] : memref<64x128xf32, #tpu.memory_space<vmem>>, vector<64x128xf32>
    %cst = arith.constant dense<0.000000e+00> : vector<16x128xf32>
    %2 = tpu.matmul %0, %1, %cst {dimension_numbers = #tpu.dot_dimension_numbers<[1], [0], [0], [1], [0, 0, 1, 1], [], []>} : vector<16x64xf32>, vector<64x128xf32>, vector<16x128xf32> -> vector<16x128xf32>
    %c0_3 = arith.constant 0 : index
    %c0_4 = arith.constant 0 : index
    %3 = vector.load %arg3[%c0_3, %c0_4] : memref<16x1xf32, #tpu.memory_space<vmem>>, vector<16x1xf32>
    %4 = vector.broadcast %3 : vector<16x1xf32> to vector<16x128xf32>
    %5 = arith.addf %2, %4 : vector<16x128xf32>
    %cst_5 = arith.constant 0.000000e+00 : f32
    %6 = vector.broadcast %cst_5 : f32 to vector<16x128xf32>
    %7 = arith.maximumf %5, %6 : vector<16x128xf32>
    %c0_6 = arith.constant 0 : index
    %c0_7 = arith.constant 0 : index
    %8 = vector.load %arg4[%c0_6, %c0_7] : memref<16x128xf32, #tpu.memory_space<vmem>>, vector<16x128xf32>
    tpu.vector_store %arg4[%c0_6, %c0_7], %7 {strides = array<i32>} : memref<16x128xf32, #tpu.memory_space<vmem>>, vector<16x128xf32>,
    return
  }
  func.func @transform_0(%arg0: i32) -> (i32, i32) {
    %c0_i32 = arith.constant 0 : i32
    %c0_i32_0 = arith.constant 0 : i32
    %c0_i32_1 = arith.constant 0 : i32
    return %c0_i32, %c0_i32_0 : i32, i32
  }
  func.func @transform_1(%arg0: i32) -> (i32, i32) {
    %c0_i32 = arith.constant 0 : i32
    %c0_i32_0 = arith.constant 0 : i32
    return %c0_i32, %arg0 : i32, i32
  }
  func.func @transform_2(%arg0: i32) -> (i32, i32) {
    %c0_i32 = arith.constant 0 : i32
    %c0_i32_0 = arith.constant 0 : i32
    %c0_i32_1 = arith.constant 0 : i32
    return %c0_i32, %c0_i32_0 : i32, i32
  }
  func.func @transform_3(%arg0: i32) -> (i32, i32) {
    %c0_i32 = arith.constant 0 : i32
    %c0_i32_0 = arith.constant 0 : i32
    return %c0_i32, %arg0 : i32, i32
  }
}

module attributes {stable_mosaic.version = 11 : i64} {
  func.func @_matmul_bias_act_kernel(%arg0: i32, %arg1: memref<16x144xf32, #tpu.memory_space<vmem>>, %arg2: memref<144x512xf32, #tpu.memory_space<vmem>>, %arg3: memref<16x1xf32, #tpu.memory_space<vmem>>, %arg4: memref<16x512xf32, #tpu.memory_space<vmem>>) attributes {dimension_semantics = [#tpu.dimension_semantics<parallel>], iteration_bounds = array<i64: 1>, scalar_prefetch = 0 : i64, scratch_operands = 0 : i64, tpu.core_type = #tpu.core_type<tc>, window_params = [{pipeline_mode = #tpu.pipeline_mode<synchronous>, transform_indices = @transform_0, window_bounds = array<i64: 16, 144>}, {transform_indices = @transform_1, window_bounds = array<i64: 144, 512>}, {pipeline_mode = #tpu.pipeline_mode<synchronous>, transform_indices = @transform_2, window_bounds = array<i64: 16, 1>}, {transform_indices = @transform_3, window_bounds = array<i64: 16, 512>}]} {
    %c0 = arith.constant 0 : index
    %c0_0 = arith.constant 0 : index
    %0 = vector.load %arg1[%c0, %c0_0] : memref<16x144xf32, #tpu.memory_space<vmem>>, vector<16x144xf32>
    %c0_1 = arith.constant 0 : index
    %c0_2 = arith.constant 0 : index
    %1 = vector.load %arg2[%c0_1, %c0_2] : memref<144x512xf32, #tpu.memory_space<vmem>>, vector<144x512xf32>
    %cst = arith.constant dense<0.000000e+00> : vector<16x512xf32>
    %2 = tpu.matmul %0, %1, %cst {dimension_numbers = #tpu.dot_dimension_numbers<[1], [0], [0], [1], [0, 0, 1, 1], [], []>} : vector<16x144xf32>, vector<144x512xf32>, vector<16x512xf32> -> vector<16x512xf32>
    %c0_3 = arith.constant 0 : index
    %c0_4 = arith.constant 0 : index
    %3 = vector.load %arg3[%c0_3, %c0_4] : memref<16x1xf32, #tpu.memory_space<vmem>>, vector<16x1xf32>
    %4 = vector.broadcast %3 : vector<16x1xf32> to vector<16x512xf32>
    %5 = arith.addf %2, %4 : vector<16x512xf32>
    %cst_5 = arith.constant 0.000000e+00 : f32
    %6 = vector.broadcast %cst_5 : f32 to vector<16x512xf32>
    %7 = arith.maximumf %5, %6 : vector<16x512xf32>
    %c0_6 = arith.constant 0 : index
    %c0_7 = arith.constant 0 : index
    %8 = vector.load %arg4[%c0_6, %c0_7] : memref<16x512xf32, #tpu.memory_space<vmem>>, vector<16x512xf32>
    tpu.vector_store %arg4[%c0_6, %c0_7], %7 {strides = array<i32>} : memref<16x512xf32, #tpu.memory_space<vmem>>, vector<16x512xf32>,
    return
  }
  func.func @transform_0(%arg0: i32) -> (i32, i32) {
    %c0_i32 = arith.constant 0 : i32
    %c0_i32_0 = arith.constant 0 : i32
    %c0_i32_1 = arith.constant 0 : i32
    return %c0_i32, %c0_i32_0 : i32, i32
  }
  func.func @transform_1(%arg0: i32) -> (i32, i32) {
    %c0_i32 = arith.constant 0 : i32
    %c0_i32_0 = arith.constant 0 : i32
    return %c0_i32, %arg0 : i32, i32
  }
  func.func @transform_2(%arg0: i32) -> (i32, i32) {
    %c0_i32 = arith.constant 0 : i32
    %c0_i32_0 = arith.constant 0 : i32
    %c0_i32_1 = arith.constant 0 : i32
    return %c0_i32, %c0_i32_0 : i32, i32
  }
  func.func @transform_3(%arg0: i32) -> (i32, i32) {
    %c0_i32 = arith.constant 0 : i32
    %c0_i32_0 = arith.constant 0 : i32
    return %c0_i32, %arg0 : i32, i32
  }
}

module attributes {stable_mosaic.version = 11 : i64} {
  func.func @_matmul_bias_act_kernel(%arg0: i32, %arg1: memref<16x96xf32, #tpu.memory_space<vmem>>, %arg2: memref<96x512xf32, #tpu.memory_space<vmem>>, %arg3: memref<16x1xf32, #tpu.memory_space<vmem>>, %arg4: memref<16x512xf32, #tpu.memory_space<vmem>>) attributes {dimension_semantics = [#tpu.dimension_semantics<parallel>], iteration_bounds = array<i64: 1>, scalar_prefetch = 0 : i64, scratch_operands = 0 : i64, tpu.core_type = #tpu.core_type<tc>, window_params = [{pipeline_mode = #tpu.pipeline_mode<synchronous>, transform_indices = @transform_0, window_bounds = array<i64: 16, 96>}, {transform_indices = @transform_1, window_bounds = array<i64: 96, 512>}, {pipeline_mode = #tpu.pipeline_mode<synchronous>, transform_indices = @transform_2, window_bounds = array<i64: 16, 1>}, {transform_indices = @transform_3, window_bounds = array<i64: 16, 512>}]} {
    %c0 = arith.constant 0 : index
    %c0_0 = arith.constant 0 : index
    %0 = vector.load %arg1[%c0, %c0_0] : memref<16x96xf32, #tpu.memory_space<vmem>>, vector<16x96xf32>
    %c0_1 = arith.constant 0 : index
    %c0_2 = arith.constant 0 : index
    %1 = vector.load %arg2[%c0_1, %c0_2] : memref<96x512xf32, #tpu.memory_space<vmem>>, vector<96x512xf32>
    %cst = arith.constant dense<0.000000e+00> : vector<16x512xf32>
    %2 = tpu.matmul %0, %1, %cst {dimension_numbers = #tpu.dot_dimension_numbers<[1], [0], [0], [1], [0, 0, 1, 1], [], []>} : vector<16x96xf32>, vector<96x512xf32>, vector<16x512xf32> -> vector<16x512xf32>
    %c0_3 = arith.constant 0 : index
    %c0_4 = arith.constant 0 : index
    %3 = vector.load %arg3[%c0_3, %c0_4] : memref<16x1xf32, #tpu.memory_space<vmem>>, vector<16x1xf32>
    %4 = vector.broadcast %3 : vector<16x1xf32> to vector<16x512xf32>
    %5 = arith.addf %2, %4 : vector<16x512xf32>
    %cst_5 = arith.constant 0.000000e+00 : f32
    %6 = vector.broadcast %cst_5 : f32 to vector<16x512xf32>
    %7 = arith.maximumf %5, %6 : vector<16x512xf32>
    %c0_6 = arith.constant 0 : index
    %c0_7 = arith.constant 0 : index
    %8 = vector.load %arg4[%c0_6, %c0_7] : memref<16x512xf32, #tpu.memory_space<vmem>>, vector<16x512xf32>
    tpu.vector_store %arg4[%c0_6, %c0_7], %7 {strides = array<i32>} : memref<16x512xf32, #tpu.memory_space<vmem>>, vector<16x512xf32>,
    return
  }
  func.func @transform_0(%arg0: i32) -> (i32, i32) {
    %c0_i32 = arith.constant 0 : i32
    %c0_i32_0 = arith.constant 0 : i32
    %c0_i32_1 = arith.constant 0 : i32
    return %c0_i32, %c0_i32_0 : i32, i32
  }
  func.func @transform_1(%arg0: i32) -> (i32, i32) {
    %c0_i32 = arith.constant 0 : i32
    %c0_i32_0 = arith.constant 0 : i32
    return %c0_i32, %arg0 : i32, i32
  }
  func.func @transform_2(%arg0: i32) -> (i32, i32) {
    %c0_i32 = arith.constant 0 : i32
    %c0_i32_0 = arith.constant 0 : i32
    %c0_i32_1 = arith.constant 0 : i32
    return %c0_i32, %c0_i32_0 : i32, i32
  }
  func.func @transform_3(%arg0: i32) -> (i32, i32) {
    %c0_i32 = arith.constant 0 : i32
    %c0_i32_0 = arith.constant 0 : i32
    return %c0_i32, %arg0 : i32, i32
  }
}

module attributes {stable_mosaic.version = 11 : i64} {
  func.func @_matmul_bias_act_kernel(%arg0: i32, %arg1: memref<16x64xf32, #tpu.memory_space<vmem>>, %arg2: memref<64x512xf32, #tpu.memory_space<vmem>>, %arg3: memref<16x1xf32, #tpu.memory_space<vmem>>, %arg4: memref<16x512xf32, #tpu.memory_space<vmem>>) attributes {dimension_semantics = [#tpu.dimension_semantics<parallel>], iteration_bounds = array<i64: 1>, scalar_prefetch = 0 : i64, scratch_operands = 0 : i64, tpu.core_type = #tpu.core_type<tc>, window_params = [{pipeline_mode = #tpu.pipeline_mode<synchronous>, transform_indices = @transform_0, window_bounds = array<i64: 16, 64>}, {transform_indices = @transform_1, window_bounds = array<i64: 64, 512>}, {pipeline_mode = #tpu.pipeline_mode<synchronous>, transform_indices = @transform_2, window_bounds = array<i64: 16, 1>}, {transform_indices = @transform_3, window_bounds = array<i64: 16, 512>}]} {
    %c0 = arith.constant 0 : index
    %c0_0 = arith.constant 0 : index
    %0 = vector.load %arg1[%c0, %c0_0] : memref<16x64xf32, #tpu.memory_space<vmem>>, vector<16x64xf32>
    %c0_1 = arith.constant 0 : index
    %c0_2 = arith.constant 0 : index
    %1 = vector.load %arg2[%c0_1, %c0_2] : memref<64x512xf32, #tpu.memory_space<vmem>>, vector<64x512xf32>
    %cst = arith.constant dense<0.000000e+00> : vector<16x512xf32>
    %2 = tpu.matmul %0, %1, %cst {dimension_numbers = #tpu.dot_dimension_numbers<[1], [0], [0], [1], [0, 0, 1, 1], [], []>} : vector<16x64xf32>, vector<64x512xf32>, vector<16x512xf32> -> vector<16x512xf32>
    %c0_3 = arith.constant 0 : index
    %c0_4 = arith.constant 0 : index
    %3 = vector.load %arg3[%c0_3, %c0_4] : memref<16x1xf32, #tpu.memory_space<vmem>>, vector<16x1xf32>
    %4 = vector.broadcast %3 : vector<16x1xf32> to vector<16x512xf32>
    %5 = arith.addf %2, %4 : vector<16x512xf32>
    %cst_5 = arith.constant 0.000000e+00 : f32
    %6 = vector.broadcast %cst_5 : f32 to vector<16x512xf32>
    %7 = arith.maximumf %5, %6 : vector<16x512xf32>
    %c0_6 = arith.constant 0 : index
    %c0_7 = arith.constant 0 : index
    %8 = vector.load %arg4[%c0_6, %c0_7] : memref<16x512xf32, #tpu.memory_space<vmem>>, vector<16x512xf32>
    tpu.vector_store %arg4[%c0_6, %c0_7], %7 {strides = array<i32>} : memref<16x512xf32, #tpu.memory_space<vmem>>, vector<16x512xf32>,
    return
  }
  func.func @transform_0(%arg0: i32) -> (i32, i32) {
    %c0_i32 = arith.constant 0 : i32
    %c0_i32_0 = arith.constant 0 : i32
    %c0_i32_1 = arith.constant 0 : i32
    return %c0_i32, %c0_i32_0 : i32, i32
  }
  func.func @transform_1(%arg0: i32) -> (i32, i32) {
    %c0_i32 = arith.constant 0 : i32
    %c0_i32_0 = arith.constant 0 : i32
    return %c0_i32, %arg0 : i32, i32
  }
  func.func @transform_2(%arg0: i32) -> (i32, i32) {
    %c0_i32 = arith.constant 0 : i32
    %c0_i32_0 = arith.constant 0 : i32
    %c0_i32_1 = arith.constant 0 : i32
    return %c0_i32, %c0_i32_0 : i32, i32
  }
  func.func @transform_3(%arg0: i32) -> (i32, i32) {
    %c0_i32 = arith.constant 0 : i32
    %c0_i32_0 = arith.constant 0 : i32
    return %c0_i32, %arg0 : i32, i32
  }
}

module attributes {stable_mosaic.version = 11 : i64} {
  func.func @_matmul_bias_act_kernel(%arg0: i32, %arg1: memref<16x400xf32, #tpu.memory_space<vmem>>, %arg2: memref<400x512xf32, #tpu.memory_space<vmem>>, %arg3: memref<16x1xf32, #tpu.memory_space<vmem>>, %arg4: memref<16x512xf32, #tpu.memory_space<vmem>>) attributes {dimension_semantics = [#tpu.dimension_semantics<parallel>], iteration_bounds = array<i64: 4>, scalar_prefetch = 0 : i64, scratch_operands = 0 : i64, tpu.core_type = #tpu.core_type<tc>, window_params = [{pipeline_mode = #tpu.pipeline_mode<synchronous>, transform_indices = @transform_0, window_bounds = array<i64: 16, 400>}, {transform_indices = @transform_1, window_bounds = array<i64: 400, 512>}, {pipeline_mode = #tpu.pipeline_mode<synchronous>, transform_indices = @transform_2, window_bounds = array<i64: 16, 1>}, {transform_indices = @transform_3, window_bounds = array<i64: 16, 512>}]} {
    %c0 = arith.constant 0 : index
    %c0_0 = arith.constant 0 : index
    %0 = vector.load %arg1[%c0, %c0_0] : memref<16x400xf32, #tpu.memory_space<vmem>>, vector<16x400xf32>
    %c0_1 = arith.constant 0 : index
    %c0_2 = arith.constant 0 : index
    %1 = vector.load %arg2[%c0_1, %c0_2] : memref<400x512xf32, #tpu.memory_space<vmem>>, vector<400x512xf32>
    %cst = arith.constant dense<0.000000e+00> : vector<16x512xf32>
    %2 = tpu.matmul %0, %1, %cst {dimension_numbers = #tpu.dot_dimension_numbers<[1], [0], [0], [1], [0, 0, 1, 1], [], []>} : vector<16x400xf32>, vector<400x512xf32>, vector<16x512xf32> -> vector<16x512xf32>
    %c0_3 = arith.constant 0 : index
    %c0_4 = arith.constant 0 : index
    %3 = vector.load %arg3[%c0_3, %c0_4] : memref<16x1xf32, #tpu.memory_space<vmem>>, vector<16x1xf32>
    %4 = vector.broadcast %3 : vector<16x1xf32> to vector<16x512xf32>
    %5 = arith.addf %2, %4 : vector<16x512xf32>
    %cst_5 = arith.constant 0.000000e+00 : f32
    %6 = vector.broadcast %cst_5 : f32 to vector<16x512xf32>
    %7 = arith.maximumf %5, %6 : vector<16x512xf32>
    %c0_6 = arith.constant 0 : index
    %c0_7 = arith.constant 0 : index
    %8 = vector.load %arg4[%c0_6, %c0_7] : memref<16x512xf32, #tpu.memory_space<vmem>>, vector<16x512xf32>
    tpu.vector_store %arg4[%c0_6, %c0_7], %7 {strides = array<i32>} : memref<16x512xf32, #tpu.memory_space<vmem>>, vector<16x512xf32>,
    return
  }
  func.func @transform_0(%arg0: i32) -> (i32, i32) {
    %c0_i32 = arith.constant 0 : i32
    %c0_i32_0 = arith.constant 0 : i32
    %c0_i32_1 = arith.constant 0 : i32
    return %c0_i32, %c0_i32_0 : i32, i32
  }
  func.func @transform_1(%arg0: i32) -> (i32, i32) {
    %c0_i32 = arith.constant 0 : i32
    %c0_i32_0 = arith.constant 0 : i32
    return %c0_i32, %arg0 : i32, i32
  }
  func.func @transform_2(%arg0: i32) -> (i32, i32) {
    %c0_i32 = arith.constant 0 : i32
    %c0_i32_0 = arith.constant 0 : i32
    %c0_i32_1 = arith.constant 0 : i32
    return %c0_i32, %c0_i32_0 : i32, i32
  }
  func.func @transform_3(%arg0: i32) -> (i32, i32) {
    %c0_i32 = arith.constant 0 : i32
    %c0_i32_0 = arith.constant 0 : i32
    return %c0_i32, %arg0 : i32, i32
  }
}

module attributes {stable_mosaic.version = 11 : i64} {
  func.func @_matmul_bias_act_kernel(%arg0: i32, %arg1: memref<8x144xf32, #tpu.memory_space<vmem>>, %arg2: memref<144x512xf32, #tpu.memory_space<vmem>>, %arg3: memref<8x1xf32, #tpu.memory_space<vmem>>, %arg4: memref<8x512xf32, #tpu.memory_space<vmem>>) attributes {dimension_semantics = [#tpu.dimension_semantics<parallel>], iteration_bounds = array<i64: 4>, scalar_prefetch = 0 : i64, scratch_operands = 0 : i64, tpu.core_type = #tpu.core_type<tc>, window_params = [{pipeline_mode = #tpu.pipeline_mode<synchronous>, transform_indices = @transform_0, window_bounds = array<i64: 8, 144>}, {transform_indices = @transform_1, window_bounds = array<i64: 144, 512>}, {pipeline_mode = #tpu.pipeline_mode<synchronous>, transform_indices = @transform_2, window_bounds = array<i64: 8, 1>}, {transform_indices = @transform_3, window_bounds = array<i64: 8, 512>}]} {
    %c0 = arith.constant 0 : index
    %c0_0 = arith.constant 0 : index
    %0 = vector.load %arg1[%c0, %c0_0] : memref<8x144xf32, #tpu.memory_space<vmem>>, vector<8x144xf32>
    %c0_1 = arith.constant 0 : index
    %c0_2 = arith.constant 0 : index
    %1 = vector.load %arg2[%c0_1, %c0_2] : memref<144x512xf32, #tpu.memory_space<vmem>>, vector<144x512xf32>
    %cst = arith.constant dense<0.000000e+00> : vector<8x512xf32>
    %2 = tpu.matmul %0, %1, %cst {dimension_numbers = #tpu.dot_dimension_numbers<[1], [0], [0], [1], [0, 0, 1, 1], [], []>} : vector<8x144xf32>, vector<144x512xf32>, vector<8x512xf32> -> vector<8x512xf32>
    %c0_3 = arith.constant 0 : index
    %c0_4 = arith.constant 0 : index
    %3 = vector.load %arg3[%c0_3, %c0_4] : memref<8x1xf32, #tpu.memory_space<vmem>>, vector<8x1xf32>
    %4 = vector.broadcast %3 : vector<8x1xf32> to vector<8x512xf32>
    %5 = arith.addf %2, %4 : vector<8x512xf32>
    %c0_5 = arith.constant 0 : index
    %c0_6 = arith.constant 0 : index
    %6 = vector.load %arg4[%c0_5, %c0_6] : memref<8x512xf32, #tpu.memory_space<vmem>>, vector<8x512xf32>
    tpu.vector_store %arg4[%c0_5, %c0_6], %5 {strides = array<i32>} : memref<8x512xf32, #tpu.memory_space<vmem>>, vector<8x512xf32>,
    return
  }
  func.func @transform_0(%arg0: i32) -> (i32, i32) {
    %c0_i32 = arith.constant 0 : i32
    %c0_i32_0 = arith.constant 0 : i32
    %c0_i32_1 = arith.constant 0 : i32
    return %c0_i32, %c0_i32_0 : i32, i32
  }
  func.func @transform_1(%arg0: i32) -> (i32, i32) {
    %c0_i32 = arith.constant 0 : i32
    %c0_i32_0 = arith.constant 0 : i32
    return %c0_i32, %arg0 : i32, i32
  }
  func.func @transform_2(%arg0: i32) -> (i32, i32) {
    %c0_i32 = arith.constant 0 : i32
    %c0_i32_0 = arith.constant 0 : i32
    %c0_i32_1 = arith.constant 0 : i32
    return %c0_i32, %c0_i32_0 : i32, i32
  }
  func.func @transform_3(%arg0: i32) -> (i32, i32) {
    %c0_i32 = arith.constant 0 : i32
    %c0_i32_0 = arith.constant 0 : i32
    return %c0_i32, %arg0 : i32, i32
  }
}

</mosaic_0001>

<bundles_post_ra>
// kernel: fwd.15
= control target key start
LH: loop header
LB: loop body
LE: loop exit
PB: predicated region body
PF: predicated region fallthrough
CT: control target
= control target key end

     0   :  { %8 = vsyncpa [#allocation3], 0  ;;  %s205_s12 = smov [#allocation2]   ;;  %s273_s0 = inlined_call_operand.hbm [shape: f32[16,48], index: 0, kind: input, shape index: {}]   ;;  %s274_s1 = inlined_call_operand.vmem [shape: f32[48,128], index: 1, kind: input, shape index: {}]   ;;  %s275_s2 = inlined_call_operand.vmem [shape: f32[16,1], index: 2, kind: input, shape index: {}]   ;;  %s276_s3 = inlined_call_operand.vmem [shape: f32[16,128], index: 3, kind: output, shape index: {}]  }
   0x1   :  { %s14_s13 = sshll.u32 %s205_s12, 4  ;;  %s181_s16 = scalar_lea.hbm %s273_s0, 256  ;;  %s15_s13 = int_to_ptr.vmem [resolvable:$true] %s14_s13 }
   0x2   :  { %p182_p0 = scmp.ne.s32.totalorder %s273_s0, %s181_s16  ;;  %p185_p1 = scmp.lt.u32.totalorder %s181_s16, %s273_s0 }
   0x4   :  { %p187_p2 = pnand %p185_p1, %p182_p0 }
   0x6   :  { %190 = shalt.err (!%p187_p2)
}
   0x7   :  { %s191_s21 = scalar_lea.vmem %s15_s13, 256  ;;  %p196_p4 = scmp.lt.s32.totalorder %s15_s13, %s15_s13 }
   0x8   :  { %p192_p3 = scmp.ne.s32.totalorder %s15_s13, %s191_s21  ;;  %p197_p5 = scmp.lt.s32.totalorder %s191_s21, %s191_s21 }
   0xa   :  { %p198_p6 = por %p197_p5, %p196_p4 }
   0xc   :  { %p199_p7 = pnand %p198_p6, %p192_p3 }
   0xe   :  { %202 = shalt.err (!%p199_p7)
}
   0xf   :  { %s206_s22 = smov 128   ;;  %s207_s23 = smov 8  }
  0x10   :  { %20 = dma.hbm_to_vmem [thread:$0]  %s273_s0, 256, %s15_s13, [#allocation3], %s206_s22, %s206_s22, %s207_s23  }
  0x11   :  { %203 = dma.done.wait [#allocation3], 256  }
  0x12   :  { %204 = vsyncadd [#allocation3], 4294967040  ;;  %v208_v0 = vmov 0   ;;  %v30_v1 = vld [vmem:[%s274_s1] sm:$0xff]  ;;  %v31_v2 = vld [vmem:[%s274_s1 + $0x8] sm:$0xff]  ;;  %vm48_vm0 = vcmask 392192  }
  0x13   :  { %180 = vset.pattern.permute.xlu0 %v208_v0  ;;  %v32_v3 = vld [vmem:[%s274_s1 + $0x10] sm:$0xff]  ;;  %v164_v4 = vpack.c.bf16 %v31_v2, %v30_v1  ;;  %v33_v5 = vld [vmem:[%s274_s1 + $0x18] sm:$0xff]  ;;  %v34_v6 = vld [vmem:[%s274_s1 + $0x20] sm:$0xff] }
  0x14   :  { %v168_v7 = vpack.c.bf16 %v33_v5, %v32_v3  ;;  %v35_v8 = vld [vmem:[%s274_s1 + $0x28] sm:$0xff]  ;;  %v28_v9 = vld [vmem:[#allocation2] sm:$0xff] }
  0x15   :  { %v36_v10 = vld [vmem:[%s275_s2] sm:$0xff]  ;;  %165 = vmatprep.subr.bf16.mxu0 %v164_v4  ;;  %161 = vmatprep.mubr.msk.f32.mxu0 %vm48_vm0, %v28_v9  ;;  %v172_v11 = vpack.c.bf16 %v35_v8, %v34_v6  ;;  %v37_v12 = vld [vmem:[%s275_s2 + $0x8] sm:$0xff] }
  0x16   :  { %167 = vmatpush3.bf16.msra.mxu0 %v164_v4  ;;  %40 = vperm.xlu0 %180, %v36_v10   ;;  %v29_v13 = vld [vmem:[#allocation2 + $0x8] sm:$0xff] }
  0x17   :  { %169 = vmatprep.subr.bf16.mxu0 %v168_v7 }
  0x1a   :  { %171 = vmatpush3.bf16.msra.mxu0 %v168_v7  ;;  %45 = vperm.xlu0 %180, %v37_v12  }
  0x1b   :  { %173 = vmatprep.subr.bf16.mxu0 %v172_v11 }
  0x1e   :  { %175 = vmatpush3.bf16.msra.mxu0 %v172_v11 }
  0x21   :  { %162 = vmatmul.mubr.msk.f32.vlgmr.msra.gmra.mrb[0].mxu0 %vm48_vm0, %v29_v13 }
  0x95   :  { %v41_v14 = vpop.permute.xlu0 %40 }
  0x99   :  { %v46_v15 = vpop.permute.xlu0 %45 }
  0xf4   :  { %v163_v16 = vpop.f32.mrb[0].mxu0 }
  0xf5   :  { %v127_v17 = vadd.f32 %v163_v16, %v46_v15  ;;  %v121_v18 = vpop.f32.mrb[1].mxu0 }
  0xf6   :  { %v122_v19 = vadd.f32 %v121_v18, %v41_v14 }
  0xf7   :  { %v131_v20 = vmax.f32 %v127_v17, 0.0 }
  0xf8   :  { %v130_v21 = vmax.f32 %v122_v19, 0.0 }
  0xf9   :  { %133 = vst [vmem:[%s276_s3 + $0x8] sm:$0xff] %v131_v20 }
  0xfa   :  { %132 = vst [vmem:[%s276_s3] sm:$0xff] %v130_v21 }
  0xfb   :  { %138 = vsyncpa [#allocation3], 1 }

// kernel: fwd.14
= control target key start
LH: loop header
LB: loop body
LE: loop exit
PB: predicated region body
PF: predicated region fallthrough
CT: control target
= control target key end

     0   :  { %8 = vsyncpa [#allocation3], 0  ;;  %s221_s12 = smov [#allocation2]   ;;  %s298_s0 = inlined_call_operand.hbm [shape: f32[16,72], index: 0, kind: input, shape index: {}]   ;;  %s299_s1 = inlined_call_operand.vmem [shape: f32[72,128], index: 1, kind: input, shape index: {}]   ;;  %s300_s2 = inlined_call_operand.vmem [shape: f32[16,1], index: 2, kind: input, shape index: {}]   ;;  %s301_s3 = inlined_call_operand.vmem [shape: f32[16,128], index: 3, kind: output, shape index: {}]  }
   0x1   :  { %s14_s13 = sshll.u32 %s221_s12, 4  ;;  %s197_s16 = scalar_lea.hbm %s298_s0, 256  ;;  %s15_s13 = int_to_ptr.vmem [resolvable:$true] %s14_s13 }
   0x2   :  { %p198_p0 = scmp.ne.s32.totalorder %s298_s0, %s197_s16  ;;  %p201_p1 = scmp.lt.u32.totalorder %s197_s16, %s298_s0 }
   0x4   :  { %p203_p2 = pnand %p201_p1, %p198_p0 }
   0x6   :  { %206 = shalt.err (!%p203_p2)
}
   0x7   :  { %s207_s21 = scalar_lea.vmem %s15_s13, 256  ;;  %p212_p4 = scmp.lt.s32.totalorder %s15_s13, %s15_s13 }
   0x8   :  { %p208_p3 = scmp.ne.s32.totalorder %s15_s13, %s207_s21  ;;  %p213_p5 = scmp.lt.s32.totalorder %s207_s21, %s207_s21 }
   0xa   :  { %p214_p6 = por %p213_p5, %p212_p4 }
   0xc   :  { %p215_p7 = pnand %p214_p6, %p208_p3 }
   0xe   :  { %218 = shalt.err (!%p215_p7)
}
   0xf   :  { %s222_s22 = smov 128   ;;  %s223_s23 = smov 8  }
  0x10   :  { %20 = dma.hbm_to_vmem [thread:$0]  %s298_s0, 256, %s15_s13, [#allocation3], %s222_s22, %s222_s22, %s223_s23  }
  0x11   :  { %219 = dma.done.wait [#allocation3], 256  }
  0x12   :  { %220 = vsyncadd [#allocation3], 4294967040  ;;  %v224_v0 = vmov 0   ;;  %v30_v1 = vld [vmem:[%s299_s1] sm:$0xff]  ;;  %v31_v2 = vld [vmem:[%s299_s1 + $0x8] sm:$0xff]  ;;  %vm51_vm0 = vcmask 588800  }
  0x13   :  { %196 = vset.pattern.permute.xlu0 %v224_v0  ;;  %v32_v3 = vld [vmem:[%s299_s1 + $0x10] sm:$0xff]  ;;  %v176_v4 = vpack.c.bf16 %v31_v2, %v30_v1  ;;  %v33_v5 = vld [vmem:[%s299_s1 + $0x18] sm:$0xff]  ;;  %v34_v7 = vld [vmem:[%s299_s1 + $0x20] sm:$0xff] }
  0x14   :  { %v180_v6 = vpack.c.bf16 %v33_v5, %v32_v3  ;;  %v35_v8 = vld [vmem:[%s299_s1 + $0x28] sm:$0xff]  ;;  %v28_v9 = vld [vmem:[#allocation2] sm:$0xff]  ;;  %v36_v12 = vld [vmem:[%s299_s1 + $0x30] sm:$0xff] }
  0x15   :  { %177 = vmatprep.subr.bf16.mxu0 %v176_v4  ;;  %v39_v10 = vld [vmem:[%s300_s2] sm:$0xff]  ;;  %173 = vmatprep.mubr.msk.f32.mxu0 %vm51_vm0, %v28_v9  ;;  %v184_v11 = vpack.c.bf16 %v35_v8, %v34_v7  ;;  %v37_v13 = vld [vmem:[%s299_s1 + $0x38] sm:$0xff]  ;;  %v40_v14 = vld [vmem:[%s300_s2 + $0x8] sm:$0xff] }
  0x16   :  { %179 = vmatpush3.bf16.msra.mxu0 %v176_v4  ;;  %43 = vperm.xlu0 %196, %v39_v10   ;;  %v188_v15 = vpack.c.bf16 %v37_v13, %v36_v12  ;;  %v38_v16 = vld [vmem:[%s299_s1 + $0x40] sm:$0xff]  ;;  %v29_v17 = vld [vmem:[#allocation2 + $0x8] sm:$0xff] }
  0x17   :  { %181 = vmatprep.subr.bf16.mxu0 %v180_v6 }
  0x1a   :  { %183 = vmatpush3.bf16.msra.mxu0 %v180_v6  ;;  %48 = vperm.xlu0 %196, %v40_v14  }
  0x1b   :  { %185 = vmatprep.subr.bf16.mxu0 %v184_v11 }
  0x1e   :  { %187 = vmatpush3.bf16.msra.mxu0 %v184_v11 }
  0x1f   :  { %189 = vmatprep.subr.bf16.mxu0 %v188_v15 }
  0x22   :  { %191 = vmatpush3.bf16.msra.mxu0 %v188_v15 }
  0x23   :  { %171 = vmatprep.subr.mxu0 %v38_v16 }
  0x26   :  { %172 = vmatpush3.msra.mxu0 %v38_v16 }
  0x27   :  { %174 = vmatmul.mubr.msk.f32.vlgmr.msra.gmra.mrb[0].mxu0 %vm51_vm0, %v29_v17 }
  0x95   :  { %v44_v18 = vpop.permute.xlu0 %43 }
  0x99   :  { %v49_v19 = vpop.permute.xlu0 %48 }
  0xfa   :  { %v175_v20 = vpop.f32.mrb[0].mxu0 }
  0xfb   :  { %v130_v21 = vadd.f32 %v175_v20, %v49_v19  ;;  %v124_v22 = vpop.f32.mrb[1].mxu0 }
  0xfc   :  { %v125_v23 = vadd.f32 %v124_v22, %v44_v18 }
  0xfd   :  { %v134_v24 = vmax.f32 %v130_v21, 0.0 }
  0xfe   :  { %v133_v25 = vmax.f32 %v125_v23, 0.0 }
  0xff   :  { %136 = vst [vmem:[%s301_s3 + $0x8] sm:$0xff] %v134_v24 }
 0x100   :  { %135 = vst [vmem:[%s301_s3] sm:$0xff] %v133_v25 }
 0x101   :  { %141 = vsyncpa [#allocation3], 1 }

// kernel: fwd.17
= control target key start
LH: loop header
LB: loop body
LE: loop exit
PB: predicated region body
PF: predicated region fallthrough
CT: control target
= control target key end

     0   :  { %8 = vsyncpa [#allocation3], 0  ;;  %s193_s12 = smov [#allocation2]   ;;  %s255_s0 = inlined_call_operand.hbm [shape: f32[16,32], index: 0, kind: input, shape index: {}]   ;;  %s256_s1 = inlined_call_operand.vmem [shape: f32[32,128], index: 1, kind: input, shape index: {}]   ;;  %s257_s2 = inlined_call_operand.vmem [shape: f32[16,1], index: 2, kind: input, shape index: {}]   ;;  %s258_s3 = inlined_call_operand.vmem [shape: f32[16,128], index: 3, kind: output, shape index: {}]  }
   0x1   :  { %s14_s13 = sshll.u32 %s193_s12, 4  ;;  %s169_s16 = scalar_lea.hbm %s255_s0, 256  ;;  %s15_s13 = int_to_ptr.vmem [resolvable:$true] %s14_s13 }
   0x2   :  { %p170_p0 = scmp.ne.s32.totalorder %s255_s0, %s169_s16  ;;  %p173_p1 = scmp.lt.u32.totalorder %s169_s16, %s255_s0 }
   0x4   :  { %p175_p2 = pnand %p173_p1, %p170_p0 }
   0x6   :  { %178 = shalt.err (!%p175_p2)
}
   0x7   :  { %s179_s21 = scalar_lea.vmem %s15_s13, 256  ;;  %p184_p4 = scmp.lt.s32.totalorder %s15_s13, %s15_s13 }
   0x8   :  { %p180_p3 = scmp.ne.s32.totalorder %s15_s13, %s179_s21  ;;  %p185_p5 = scmp.lt.s32.totalorder %s179_s21, %s179_s21 }
   0xa   :  { %p186_p6 = por %p185_p5, %p184_p4 }
   0xc   :  { %p187_p7 = pnand %p186_p6, %p180_p3 }
   0xe   :  { %190 = shalt.err (!%p187_p7)
}
   0xf   :  { %s194_s22 = smov 128   ;;  %s195_s23 = smov 8  }
  0x10   :  { %20 = dma.hbm_to_vmem [thread:$0]  %s255_s0, 256, %s15_s13, [#allocation3], %s194_s22, %s194_s22, %s195_s23  }
  0x11   :  { %191 = dma.done.wait [#allocation3], 256  }
  0x12   :  { %192 = vsyncadd [#allocation3], 4294967040  ;;  %v196_v0 = vmov 0   ;;  %vm46_vm0 = vcmask 261120   ;;  %v30_v1 = vld [vmem:[%s256_s1] sm:$0xff]  ;;  %v31_v2 = vld [vmem:[%s256_s1 + $0x8] sm:$0xff] }
  0x13   :  { %168 = vset.pattern.permute.xlu0 %v196_v0  ;;  %v32_v3 = vld [vmem:[%s256_s1 + $0x10] sm:$0xff]  ;;  %v156_v4 = vpack.c.bf16 %v31_v2, %v30_v1  ;;  %v33_v5 = vld [vmem:[%s256_s1 + $0x18] sm:$0xff]  ;;  %v28_v6 = vld [vmem:[#allocation2] sm:$0xff] }
  0x14   :  { %v160_v7 = vpack.c.bf16 %v33_v5, %v32_v3  ;;  %153 = vmatprep.mubr.msk.f32.mxu0 %vm46_vm0, %v28_v6  ;;  %v34_v8 = vld [vmem:[%s257_s2] sm:$0xff]  ;;  %v35_v9 = vld [vmem:[%s257_s2 + $0x8] sm:$0xff] }
  0x15   :  { %157 = vmatprep.subr.bf16.mxu0 %v156_v4  ;;  %38 = vperm.xlu0 %168, %v34_v8   ;;  %v29_v10 = vld [vmem:[#allocation2 + $0x8] sm:$0xff] }
  0x16   :  { %159 = vmatpush3.bf16.msra.mxu0 %v156_v4 }
  0x17   :  { %161 = vmatprep.subr.bf16.mxu0 %v160_v7 }
  0x19   :  { %43 = vperm.xlu0 %168, %v35_v9  }
  0x1a   :  { %163 = vmatpush3.bf16.msra.mxu0 %v160_v7 }
  0x1d   :  { %154 = vmatmul.mubr.msk.f32.vlgmr.msra.gmra.mrb[0].mxu0 %vm46_vm0, %v29_v10 }
  0x94   :  { %v39_v11 = vpop.permute.xlu0 %38 }
  0x98   :  { %v44_v12 = vpop.permute.xlu0 %43 }
  0xf0   :  { %v155_v13 = vpop.f32.mrb[0].mxu0 }
  0xf1   :  { %v125_v14 = vadd.f32 %v155_v13, %v44_v12  ;;  %v119_v15 = vpop.f32.mrb[1].mxu0 }
  0xf2   :  { %v120_v16 = vadd.f32 %v119_v15, %v39_v11 }
  0xf3   :  { %v129_v17 = vmax.f32 %v125_v14, 0.0 }
  0xf4   :  { %v128_v18 = vmax.f32 %v120_v16, 0.0 }
  0xf5   :  { %131 = vst [vmem:[%s258_s3 + $0x8] sm:$0xff] %v129_v17 }
  0xf6   :  { %130 = vst [vmem:[%s258_s3] sm:$0xff] %v128_v18 }
  0xf7   :  { %136 = vsyncpa [#allocation3], 1 }

// kernel: fwd.18
= control target key start
LH: loop header
LB: loop body
LE: loop exit
PB: predicated region body
PF: predicated region fallthrough
CT: control target
= control target key end

     0   :  { %v188_v0 = vmov 0.0|0.0   ;;  %v189_v6 = vmov 0   ;;  %vm48_vm0 = vcmask 130048   ;;  %s306_s1 = inlined_call_operand.vmem [shape: f32[144,128], index: 1, kind: input, shape index: {}]   ;;  %s307_s0 = inlined_call_operand.vmem [shape: f32[16,144], index: 0, kind: input, shape index: {}]   ;;  %s308_s2 = inlined_call_operand.vmem [shape: f32[16,1], index: 2, kind: input, shape index: {}]   ;;  %s309_s3 = inlined_call_operand.vmem [shape: f32[16,128], index: 3, kind: output, shape index: {}]  }
   0x1   :  { %140 = vmatprep.subr.bf16.mxu0 %v188_v0  ;;  %167 = vmatprep.subr.bf16.mxu1 %v188_v0  ;;  %v18_v1 = vld [vmem:[%s306_s1] sm:$0xff]  ;;  %v19_v2 = vld [vmem:[%s306_s1 + $0x8] sm:$0xff]  ;;  %v20_v3 = vld [vmem:[%s306_s1 + $0x10] sm:$0xff] }
   0x2   :  { %v141_v4 = vpack.c.bf16 %v19_v2, %v18_v1  ;;  %v21_v5 = vld [vmem:[%s306_s1 + $0x18] sm:$0xff]  ;;  %187 = vset.pattern.permute.xlu0 %v189_v6  ;;  %v22_v8 = vld [vmem:[%s306_s1 + $0x20] sm:$0xff]  ;;  %v23_v9 = vld [vmem:[%s306_s1 + $0x28] sm:$0xff] }
   0x3   :  { %v144_v7 = vpack.c.bf16 %v21_v5, %v20_v3  ;;  %v15_v10 = vld [vmem:[%s307_s0 + $0x8] sm:$0xff]  ;;  %v17_v11 = vld [vmem:[%s307_s0 + $0x18] sm:$0xff]  ;;  %v147_v12 = vpack.c.bf16 %v23_v9, %v22_v8  ;;  %v36_v13 = vld [vmem:[%s308_s2] sm:$0xff] }
   0x4   :  { %142 = vmatpush1.bf16.msra.mxu0 %v141_v4  ;;  %176 = vmatpush1.bf16.msra.mxu1 %v141_v4  ;;  %v24_v14 = vld [vmem:[%s306_s1 + $0x30] sm:$0xff]  ;;  %v25_v15 = vld [vmem:[%s306_s1 + $0x38] sm:$0xff]  ;;  %v37_v17 = vld [vmem:[%s308_s2 + $0x8] sm:$0xff] }
   0x5   :  { %143 = vmatprep.subr.bf16.mxu0 %v188_v0  ;;  %168 = vmatprep.subr.bf16.mxu1 %v188_v0  ;;  %v150_v16 = vpack.c.bf16 %v25_v15, %v24_v14  ;;  %v26_v18 = vld [vmem:[%s306_s1 + $0x40] sm:$0xff]  ;;  %v27_v19 = vld [vmem:[%s306_s1 + $0x48] sm:$0xff]  ;;  %v28_v21 = vld [vmem:[%s306_s1 + $0x50] sm:$0xff] }
   0x6   :  { %138 = vmatprep.mubr.msk.f32.mxu0 %vm48_vm0, %v15_v10  ;;  %139 = vmatprep.mubr.msk.f32.mxu1 %vm48_vm0, %v17_v11  ;;  %v153_v20 = vpack.c.bf16 %v27_v19, %v26_v18  ;;  %v29_v22 = vld [vmem:[%s306_s1 + $0x58] sm:$0xff]  ;;  %v30_v24 = vld [vmem:[%s306_s1 + $0x60] sm:$0xff]  ;;  %v31_v25 = vld [vmem:[%s306_s1 + $0x68] sm:$0xff] }
   0x7   :  { %40 = vperm.xlu0 %187, %v36_v13   ;;  %v156_v23 = vpack.c.bf16 %v29_v22, %v28_v21  ;;  %v159_v26 = vpack.c.bf16 %v31_v25, %v30_v24  ;;  %v32_v27 = vld [vmem:[%s306_s1 + $0x70] sm:$0xff]  ;;  %v33_v28 = vld [vmem:[%s306_s1 + $0x78] sm:$0xff]  ;;  %v34_v30 = vld [vmem:[%s306_s1 + $0x80] sm:$0xff] }
   0x8   :  { %145 = vmatpush1.bf16.msra.mxu0 %v144_v7  ;;  %177 = vmatpush1.bf16.msra.mxu1 %v144_v7  ;;  %v162_v29 = vpack.c.bf16 %v33_v28, %v32_v27  ;;  %v35_v31 = vld [vmem:[%s306_s1 + $0x88] sm:$0xff]  ;;  %v14_v33 = vld [vmem:[%s307_s0] sm:$0xff]  ;;  %v16_v34 = vld [vmem:[%s307_s0 + $0x10] sm:$0xff] }
   0x9   :  { %146 = vmatprep.subr.bf16.mxu0 %v188_v0  ;;  %169 = vmatprep.subr.bf16.mxu1 %v188_v0  ;;  %v165_v32 = vpack.c.bf16 %v35_v31, %v34_v30 }
   0xb   :  { %45 = vperm.xlu0 %187, %v37_v17  }
   0xc   :  { %148 = vmatpush1.bf16.msra.mxu0 %v147_v12  ;;  %178 = vmatpush1.bf16.msra.mxu1 %v147_v12 }
   0xd   :  { %149 = vmatprep.subr.bf16.mxu0 %v188_v0  ;;  %170 = vmatprep.subr.bf16.mxu1 %v188_v0 }
  0x10   :  { %151 = vmatpush1.bf16.msra.mxu0 %v150_v16  ;;  %179 = vmatpush1.bf16.msra.mxu1 %v150_v16 }
  0x11   :  { %152 = vmatprep.subr.bf16.mxu0 %v188_v0  ;;  %171 = vmatprep.subr.bf16.mxu1 %v188_v0 }
  0x14   :  { %154 = vmatpush1.bf16.msra.mxu0 %v153_v20  ;;  %180 = vmatpush1.bf16.msra.mxu1 %v153_v20 }
  0x15   :  { %155 = vmatprep.subr.bf16.mxu0 %v188_v0  ;;  %172 = vmatprep.subr.bf16.mxu1 %v188_v0 }
  0x18   :  { %157 = vmatpush1.bf16.msra.mxu0 %v156_v23  ;;  %181 = vmatpush1.bf16.msra.mxu1 %v156_v23 }
  0x19   :  { %158 = vmatprep.subr.bf16.mxu0 %v188_v0  ;;  %173 = vmatprep.subr.bf16.mxu1 %v188_v0 }
  0x1c   :  { %160 = vmatpush1.bf16.msra.mxu0 %v159_v26  ;;  %182 = vmatpush1.bf16.msra.mxu1 %v159_v26 }
  0x1d   :  { %161 = vmatprep.subr.bf16.mxu0 %v188_v0  ;;  %174 = vmatprep.subr.bf16.mxu1 %v188_v0 }
  0x20   :  { %163 = vmatpush1.bf16.msra.mxu0 %v162_v29  ;;  %183 = vmatpush1.bf16.msra.mxu1 %v162_v29 }
  0x21   :  { %164 = vmatprep.subr.bf16.mxu0 %v188_v0  ;;  %175 = vmatprep.subr.bf16.mxu1 %v188_v0 }
  0x24   :  { %166 = vmatpush1.bf16.msra.mxu0 %v165_v32  ;;  %184 = vmatpush1.bf16.msra.mxu1 %v165_v32 }
  0x27   :  { %120 = vmatmul.mubr.f32.vlgmr.msra.gmra.mrb[0].mxu0 %v14_v33  ;;  %125 = vmatmul.mubr.f32.vlgmr.msra.gmra.mrb[0].mxu1 %v16_v34 }
  0x86   :  { %v41_v35 = vpop.permute.xlu0 %40 }
  0x8a   :  { %v46_v36 = vpop.permute.xlu0 %45 }
  0xfa   :  { %v121_v37 = vpop.f32.mrb[0].mxu0  ;;  %v126_v38 = vpop.f32.mrb[0].mxu1 }
  0xfb   :  { %v122_v39 = vadd.f32 %v121_v37, %v41_v35  ;;  %v127_v40 = vadd.f32 %v126_v38, %v46_v36  ;;  %v123_v41 = vpop.f32.mrb[1].mxu0  ;;  %v128_v42 = vpop.f32.mrb[1].mxu1 }
  0xfd   :  { %v130_v43 = vmax.f32 %v122_v39, 0.0  ;;  %v131_v44 = vmax.f32 %v127_v40, 0.0 }
  0xff   :  { %132 = vst [vmem:[%s309_s3] sm:$0xff] %v130_v43  ;;  %133 = vst [vmem:[%s309_s3 + $0x8] sm:$0xff] %v131_v44 }

// kernel: fwd.19
= control target key start
LH: loop header
LB: loop body
LE: loop exit
PB: predicated region body
PF: predicated region fallthrough
CT: control target
= control target key end

     0   :  { %v199_v3 = vmov 0   ;;  %vm40_vm0 = vcmask 785408   ;;  %s276_s1 = inlined_call_operand.vmem [shape: f32[96,128], index: 1, kind: input, shape index: {}]   ;;  %s277_s0 = inlined_call_operand.vmem [shape: f32[16,96], index: 0, kind: input, shape index: {}]   ;;  %s278_s2 = inlined_call_operand.vmem [shape: f32[16,1], index: 2, kind: input, shape index: {}]   ;;  %s279_s3 = inlined_call_operand.vmem [shape: f32[16,128], index: 3, kind: output, shape index: {}]  }
   0x1   :  { %v16_v0 = vld [vmem:[%s276_s1] sm:$0xff]  ;;  %v17_v1 = vld [vmem:[%s276_s1 + $0x8] sm:$0xff]  ;;  %v18_v2 = vld [vmem:[%s276_s1 + $0x10] sm:$0xff]  ;;  %198 = vset.pattern.permute.xlu0 %v199_v3 }
   0x2   :  { %v173_v4 = vpack.c.bf16 %v17_v1, %v16_v0  ;;  %v19_v5 = vld [vmem:[%s276_s1 + $0x18] sm:$0xff]  ;;  %v20_v7 = vld [vmem:[%s276_s1 + $0x20] sm:$0xff]  ;;  %v21_v8 = vld [vmem:[%s276_s1 + $0x28] sm:$0xff] }
   0x3   :  { %v177_v6 = vpack.c.bf16 %v19_v5, %v18_v2  ;;  %v14_v9 = vld [vmem:[%s277_s0] sm:$0xff]  ;;  %v181_v11 = vpack.c.bf16 %v21_v8, %v20_v7  ;;  %v22_v12 = vld [vmem:[%s276_s1 + $0x30] sm:$0xff]  ;;  %v23_v13 = vld [vmem:[%s276_s1 + $0x38] sm:$0xff] }
   0x4   :  { %174 = vmatprep.subr.bf16.mxu0 %v173_v4  ;;  %v28_v10 = vld [vmem:[%s278_s2] sm:$0xff]  ;;  %170 = vmatprep.mubr.msk.f32.mxu0 %vm40_vm0, %v14_v9  ;;  %v29_v14 = vld [vmem:[%s278_s2 + $0x8] sm:$0xff]  ;;  %v185_v15 = vpack.c.bf16 %v23_v13, %v22_v12  ;;  %v26_v19 = vld [vmem:[%s276_s1 + $0x50] sm:$0xff] }
   0x5   :  { %176 = vmatpush3.bf16.msra.mxu0 %v173_v4  ;;  %32 = vperm.xlu0 %198, %v28_v10   ;;  %v24_v16 = vld [vmem:[%s276_s1 + $0x40] sm:$0xff]  ;;  %v25_v17 = vld [vmem:[%s276_s1 + $0x48] sm:$0xff]  ;;  %v27_v20 = vld [vmem:[%s276_s1 + $0x58] sm:$0xff] }
   0x6   :  { %178 = vmatprep.subr.bf16.mxu0 %v177_v6  ;;  %v189_v18 = vpack.c.bf16 %v25_v17, %v24_v16  ;;  %v193_v21 = vpack.c.bf16 %v27_v20, %v26_v19  ;;  %v15_v22 = vld [vmem:[%s277_s0 + $0x8] sm:$0xff] }
   0x9   :  { %180 = vmatpush3.bf16.msra.mxu0 %v177_v6  ;;  %37 = vperm.xlu0 %198, %v29_v14  }
   0xa   :  { %182 = vmatprep.subr.bf16.mxu0 %v181_v11 }
   0xd   :  { %184 = vmatpush3.bf16.msra.mxu0 %v181_v11 }
   0xe   :  { %186 = vmatprep.subr.bf16.mxu0 %v185_v15 }
  0x11   :  { %188 = vmatpush3.bf16.msra.mxu0 %v185_v15 }
  0x12   :  { %190 = vmatprep.subr.bf16.mxu0 %v189_v18 }
  0x15   :  { %192 = vmatpush3.bf16.msra.mxu0 %v189_v18 }
  0x16   :  { %194 = vmatprep.subr.bf16.mxu0 %v193_v21 }
  0x19   :  { %196 = vmatpush3.bf16.msra.mxu0 %v193_v21 }
  0x1c   :  { %171 = vmatmul.mubr.msk.f32.vlgmr.msra.gmra.mrb[0].mxu0 %vm40_vm0, %v15_v22 }
  0x84   :  { %v33_v23 = vpop.permute.xlu0 %32 }
  0x88   :  { %v38_v24 = vpop.permute.xlu0 %37 }
  0xef   :  { %v172_v25 = vpop.f32.mrb[0].mxu0 }
  0xf0   :  { %v119_v26 = vadd.f32 %v172_v25, %v38_v24  ;;  %v113_v27 = vpop.f32.mrb[1].mxu0 }
  0xf1   :  { %v114_v28 = vadd.f32 %v113_v27, %v33_v23 }
  0xf2   :  { %v123_v29 = vmax.f32 %v119_v26, 0.0 }
  0xf3   :  { %v122_v30 = vmax.f32 %v114_v28, 0.0 }
  0xf4   :  { %125 = vst [vmem:[%s279_s3 + $0x8] sm:$0xff] %v123_v29 }
  0xf5   :  { %124 = vst [vmem:[%s279_s3] sm:$0xff] %v122_v30 }

// kernel: fwd.21
= control target key start
LH: loop header
LB: loop body
LE: loop exit
PB: predicated region body
PF: predicated region fallthrough
CT: control target
= control target key end

     0   :  { %vm36_vm0 = vcmask 523264   ;;  %v175_v3 = vmov 0   ;;  %s240_s1 = inlined_call_operand.vmem [shape: f32[64,128], index: 1, kind: input, shape index: {}]   ;;  %s241_s0 = inlined_call_operand.vmem [shape: f32[16,64], index: 0, kind: input, shape index: {}]   ;;  %s242_s2 = inlined_call_operand.vmem [shape: f32[16,1], index: 2, kind: input, shape index: {}]   ;;  %s243_s3 = inlined_call_operand.vmem [shape: f32[16,128], index: 3, kind: output, shape index: {}]  }
   0x1   :  { %v16_v0 = vld [vmem:[%s240_s1] sm:$0xff]  ;;  %v17_v1 = vld [vmem:[%s240_s1 + $0x8] sm:$0xff]  ;;  %v18_v2 = vld [vmem:[%s240_s1 + $0x10] sm:$0xff]  ;;  %174 = vset.pattern.permute.xlu0 %v175_v3 }
   0x2   :  { %v157_v4 = vpack.c.bf16 %v17_v1, %v16_v0  ;;  %v19_v5 = vld [vmem:[%s240_s1 + $0x18] sm:$0xff]  ;;  %v20_v7 = vld [vmem:[%s240_s1 + $0x20] sm:$0xff]  ;;  %v21_v8 = vld [vmem:[%s240_s1 + $0x28] sm:$0xff] }
   0x3   :  { %v161_v6 = vpack.c.bf16 %v19_v5, %v18_v2  ;;  %v14_v9 = vld [vmem:[%s241_s0] sm:$0xff]  ;;  %v165_v11 = vpack.c.bf16 %v21_v8, %v20_v7  ;;  %v25_v12 = vld [vmem:[%s242_s2 + $0x8] sm:$0xff]  ;;  %v22_v13 = vld [vmem:[%s240_s1 + $0x30] sm:$0xff] }
   0x4   :  { %158 = vmatprep.subr.bf16.mxu0 %v157_v4  ;;  %154 = vmatprep.mubr.msk.f32.mxu0 %vm36_vm0, %v14_v9  ;;  %v24_v10 = vld [vmem:[%s242_s2] sm:$0xff]  ;;  %v23_v14 = vld [vmem:[%s240_s1 + $0x38] sm:$0xff]  ;;  %v15_v16 = vld [vmem:[%s241_s0 + $0x8] sm:$0xff] }
   0x5   :  { %160 = vmatpush3.bf16.msra.mxu0 %v157_v4  ;;  %28 = vperm.xlu0 %174, %v24_v10   ;;  %v169_v15 = vpack.c.bf16 %v23_v14, %v22_v13 }
   0x6   :  { %162 = vmatprep.subr.bf16.mxu0 %v161_v6 }
   0x9   :  { %164 = vmatpush3.bf16.msra.mxu0 %v161_v6  ;;  %33 = vperm.xlu0 %174, %v25_v12  }
   0xa   :  { %166 = vmatprep.subr.bf16.mxu0 %v165_v11 }
   0xd   :  { %168 = vmatpush3.bf16.msra.mxu0 %v165_v11 }
   0xe   :  { %170 = vmatprep.subr.bf16.mxu0 %v169_v15 }
  0x11   :  { %172 = vmatpush3.bf16.msra.mxu0 %v169_v15 }
  0x14   :  { %155 = vmatmul.mubr.msk.f32.vlgmr.msra.gmra.mrb[0].mxu0 %vm36_vm0, %v15_v16 }
  0x84   :  { %v29_v17 = vpop.permute.xlu0 %28 }
  0x88   :  { %v34_v18 = vpop.permute.xlu0 %33 }
  0xe7   :  { %v156_v19 = vpop.f32.mrb[0].mxu0 }
  0xe8   :  { %v115_v20 = vadd.f32 %v156_v19, %v34_v18  ;;  %v109_v21 = vpop.f32.mrb[1].mxu0 }
  0xe9   :  { %v110_v22 = vadd.f32 %v109_v21, %v29_v17 }
  0xea   :  { %v119_v23 = vmax.f32 %v115_v20, 0.0 }
  0xeb   :  { %v118_v24 = vmax.f32 %v110_v22, 0.0 }
  0xec   :  { %121 = vst [vmem:[%s243_s3 + $0x8] sm:$0xff] %v119_v23 }
  0xed   :  { %120 = vst [vmem:[%s243_s3] sm:$0xff] %v118_v24 }

// kernel: fwd.22
= control target key start
LH: loop header
LB: loop body
LE: loop exit
PB: predicated region body
PF: predicated region fallthrough
CT: control target
= control target key end

     0   :  { %v361_v3 = vmov 0   ;;  %vm102_vm0 = vcmask 130048   ;;  %s644_s1 = inlined_call_operand.vmem [shape: f32[144,512], index: 1, kind: input, shape index: {}]   ;;  %s645_s0 = inlined_call_operand.vmem [shape: f32[16,144], index: 0, kind: input, shape index: {}]   ;;  %s646_s2 = inlined_call_operand.vmem [shape: f32[16,1], index: 2, kind: input, shape index: {}]   ;;  %s647_s3 = inlined_call_operand.vmem [shape: f32[16,512], index: 3, kind: output, shape index: {}]  }
   0x1   :  { %v19_v0 = vld [vmem:[%s644_s1 + $0x8] sm:$0xff]  ;;  %v21_v2 = vld [vmem:[%s644_s1 + $0x18] sm:$0xff]  ;;  %360 = vset.pattern.permute.xlu0 %v361_v3  ;;  %v18_v6 = vld [vmem:[%s644_s1] sm:$0xff] }
   0x2   :  { %v23_v1 = vld [vmem:[%s644_s1 + $0x28] sm:$0xff]  ;;  %v25_v5 = vld [vmem:[%s644_s1 + $0x38] sm:$0xff]  ;;  %v22_v7 = vld [vmem:[%s644_s1 + $0x20] sm:$0xff] }
   0x3   :  { %v287_v4 = vpack.c.bf16 %v23_v1, %v19_v0  ;;  %v323_v8 = vpack.c.bf16 %v25_v5, %v21_v2  ;;  %v289_v9 = vpack.c.bf16 %v22_v7, %v18_v6  ;;  %v20_v10 = vld [vmem:[%s644_s1 + $0x10] sm:$0xff]  ;;  %v27_v12 = vld [vmem:[%s644_s1 + $0x48] sm:$0xff]  ;;  %v29_v15 = vld [vmem:[%s644_s1 + $0x58] sm:$0xff] }
   0x4   :  { %v24_v11 = vld [vmem:[%s644_s1 + $0x30] sm:$0xff]  ;;  %v31_v14 = vld [vmem:[%s644_s1 + $0x68] sm:$0xff]  ;;  %v33_v16 = vld [vmem:[%s644_s1 + $0x78] sm:$0xff] }
   0x5   :  { %288 = vmatprep.subr.bf16.mxu0 %v287_v4  ;;  %v325_v13 = vpack.c.bf16 %v24_v11, %v20_v10  ;;  %324 = vmatprep.subr.bf16.mxu1 %v323_v8  ;;  %v291_v17 = vpack.c.bf16 %v31_v14, %v27_v12  ;;  %v327_v18 = vpack.c.bf16 %v33_v16, %v29_v15  ;;  %v26_v19 = vld [vmem:[%s644_s1 + $0x40] sm:$0xff]  ;;  %v28_v21 = vld [vmem:[%s644_s1 + $0x50] sm:$0xff]  ;;  %v35_v24 = vld [vmem:[%s644_s1 + $0x88] sm:$0xff] }
   0x6   :  { %290 = vmatpush1.bf16.msra.mxu0 %v289_v9  ;;  %v30_v20 = vld [vmem:[%s644_s1 + $0x60] sm:$0xff]  ;;  %v32_v23 = vld [vmem:[%s644_s1 + $0x70] sm:$0xff]  ;;  %v39_v25 = vld [vmem:[%s644_s1 + $0xa8] sm:$0xff] }
   0x7   :  { %326 = vmatpush1.bf16.msra.mxu1 %v325_v13  ;;  %v293_v22 = vpack.c.bf16 %v30_v20, %v26_v19  ;;  %292 = vmatprep.subr.bf16.mxu0 %v291_v17  ;;  %v329_v26 = vpack.c.bf16 %v32_v23, %v28_v21  ;;  %v295_v27 = vpack.c.bf16 %v39_v25, %v35_v24  ;;  %v37_v28 = vld [vmem:[%s644_s1 + $0x98] sm:$0xff]  ;;  %v34_v30 = vld [vmem:[%s644_s1 + $0x80] sm:$0xff]  ;;  %v36_v33 = vld [vmem:[%s644_s1 + $0x90] sm:$0xff] }
   0x8   :  { %328 = vmatprep.subr.bf16.mxu1 %v327_v18  ;;  %v41_v29 = vld [vmem:[%s644_s1 + $0xb8] sm:$0xff]  ;;  %v38_v32 = vld [vmem:[%s644_s1 + $0xa0] sm:$0xff]  ;;  %v40_v34 = vld [vmem:[%s644_s1 + $0xb0] sm:$0xff] }
   0x9   :  { %v331_v31 = vpack.c.bf16 %v41_v29, %v37_v28  ;;  %v297_v35 = vpack.c.bf16 %v38_v32, %v34_v30  ;;  %v43_v36 = vld [vmem:[%s644_s1 + $0xc8] sm:$0xff]  ;;  %v45_v38 = vld [vmem:[%s644_s1 + $0xd8] sm:$0xff]  ;;  %v333_v39 = vpack.c.bf16 %v40_v34, %v36_v33  ;;  %v42_v42 = vld [vmem:[%s644_s1 + $0xc0] sm:$0xff] }
   0xa   :  { %294 = vmatpush1.bf16.msra.mxu0 %v293_v22  ;;  %v47_v37 = vld [vmem:[%s644_s1 + $0xe8] sm:$0xff]  ;;  %v49_v41 = vld [vmem:[%s644_s1 + $0xf8] sm:$0xff]  ;;  %v46_v43 = vld [vmem:[%s644_s1 + $0xe0] sm:$0xff] }
   0xb   :  { %330 = vmatpush1.bf16.msra.mxu1 %v329_v26  ;;  %296 = vmatprep.subr.bf16.mxu0 %v295_v27  ;;  %v299_v40 = vpack.c.bf16 %v47_v37, %v43_v36  ;;  %v335_v44 = vpack.c.bf16 %v49_v41, %v45_v38  ;;  %v44_v45 = vld [vmem:[%s644_s1 + $0xd0] sm:$0xff]  ;;  %v51_v47 = vld [vmem:[%s644_s1 + $0x108] sm:$0xff]  ;;  %v53_v49 = vld [vmem:[%s644_s1 + $0x118] sm:$0xff]  ;;  %v301_v51 = vpack.c.bf16 %v46_v43, %v42_v42 }
   0xc   :  { %332 = vmatprep.subr.bf16.mxu1 %v331_v31  ;;  %v48_v46 = vld [vmem:[%s644_s1 + $0xf0] sm:$0xff]  ;;  %v55_v48 = vld [vmem:[%s644_s1 + $0x128] sm:$0xff]  ;;  %v57_v50 = vld [vmem:[%s644_s1 + $0x138] sm:$0xff] }
   0xd   :  { %v337_v52 = vpack.c.bf16 %v48_v46, %v44_v45  ;;  %v303_v53 = vpack.c.bf16 %v55_v48, %v51_v47  ;;  %v50_v54 = vld [vmem:[%s644_s1 + $0x100] sm:$0xff]  ;;  %v52_v56 = vld [vmem:[%s644_s1 + $0x110] sm:$0xff]  ;;  %v339_v57 = vpack.c.bf16 %v57_v50, %v53_v49  ;;  %v59_v59 = vld [vmem:[%s644_s1 + $0x148] sm:$0xff] }
   0xe   :  { %298 = vmatpush1.bf16.msra.mxu0 %v297_v35  ;;  %v54_v55 = vld [vmem:[%s644_s1 + $0x120] sm:$0xff]  ;;  %v56_v58 = vld [vmem:[%s644_s1 + $0x130] sm:$0xff]  ;;  %v63_v60 = vld [vmem:[%s644_s1 + $0x168] sm:$0xff] }
   0xf   :  { %334 = vmatpush1.bf16.msra.mxu1 %v333_v39  ;;  %300 = vmatprep.subr.bf16.mxu0 %v299_v40  ;;  %v61_v61 = vld [vmem:[%s644_s1 + $0x158] sm:$0xff]  ;;  %v305_v63 = vpack.c.bf16 %v54_v55, %v50_v54  ;;  %v341_v0 = vpack.c.bf16 %v56_v58, %v52_v56  ;;  %v307_v1 = vpack.c.bf16 %v63_v60, %v59_v59  ;;  %v58_v2 = vld [vmem:[%s644_s1 + $0x140] sm:$0xff]  ;;  %v60_v4 = vld [vmem:[%s644_s1 + $0x150] sm:$0xff] }
  0x10   :  { %336 = vmatprep.subr.bf16.mxu1 %v335_v44  ;;  %v65_v62 = vld [vmem:[%s644_s1 + $0x178] sm:$0xff]  ;;  %v62_v3 = vld [vmem:[%s644_s1 + $0x160] sm:$0xff]  ;;  %v64_v6 = vld [vmem:[%s644_s1 + $0x170] sm:$0xff] }
  0x11   :  { %v343_v5 = vpack.c.bf16 %v65_v62, %v61_v61  ;;  %v67_v7 = vld [vmem:[%s644_s1 + $0x188] sm:$0xff]  ;;  %v69_v9 = vld [vmem:[%s644_s1 + $0x198] sm:$0xff]  ;;  %v309_v11 = vpack.c.bf16 %v62_v3, %v58_v2  ;;  %v345_v12 = vpack.c.bf16 %v64_v6, %v60_v4  ;;  %v66_v14 = vld [vmem:[%s644_s1 + $0x180] sm:$0xff] }
  0x12   :  { %302 = vmatpush1.bf16.msra.mxu0 %v301_v51  ;;  %v71_v8 = vld [vmem:[%s644_s1 + $0x1a8] sm:$0xff]  ;;  %v73_v10 = vld [vmem:[%s644_s1 + $0x1b8] sm:$0xff]  ;;  %v70_v15 = vld [vmem:[%s644_s1 + $0x1a0] sm:$0xff] }
  0x13   :  { %338 = vmatpush1.bf16.msra.mxu1 %v337_v52  ;;  %304 = vmatprep.subr.bf16.mxu0 %v303_v53  ;;  %v311_v13 = vpack.c.bf16 %v71_v8, %v67_v7  ;;  %v68_v16 = vld [vmem:[%s644_s1 + $0x190] sm:$0xff]  ;;  %v347_v17 = vpack.c.bf16 %v73_v10, %v69_v9  ;;  %v75_v19 = vld [vmem:[%s644_s1 + $0x1c8] sm:$0xff]  ;;  %v77_v21 = vld [vmem:[%s644_s1 + $0x1d8] sm:$0xff]  ;;  %v313_v23 = vpack.c.bf16 %v70_v15, %v66_v14 }
  0x14   :  { %340 = vmatprep.subr.bf16.mxu1 %v339_v57  ;;  %v72_v18 = vld [vmem:[%s644_s1 + $0x1b0] sm:$0xff]  ;;  %v79_v20 = vld [vmem:[%s644_s1 + $0x1e8] sm:$0xff]  ;;  %v81_v22 = vld [vmem:[%s644_s1 + $0x1f8] sm:$0xff] }
  0x15   :  { %v74_v24 = vld [vmem:[%s644_s1 + $0x1c0] sm:$0xff]  ;;  %v15_v25 = vld [vmem:[%s645_s0 + $0x8] sm:$0xff]  ;;  %v349_v26 = vpack.c.bf16 %v72_v18, %v68_v16  ;;  %v315_v27 = vpack.c.bf16 %v79_v20, %v75_v19  ;;  %v76_v29 = vld [vmem:[%s644_s1 + $0x1d0] sm:$0xff]  ;;  %v351_v31 = vpack.c.bf16 %v81_v22, %v77_v21 }
  0x16   :  { %306 = vmatpush1.bf16.msra.mxu0 %v305_v63  ;;  %v78_v28 = vld [vmem:[%s644_s1 + $0x1e0] sm:$0xff]  ;;  %v80_v32 = vld [vmem:[%s644_s1 + $0x1f0] sm:$0xff]  ;;  %v83_v33 = vld [vmem:[%s644_s1 + $0x208] sm:$0xff]  ;;  %283 = vmatprep.mubr.msk.f32.mxu0 %vm102_vm0, %v15_v25 }
  0x17   :  { %342 = vmatpush1.bf16.msra.mxu1 %v341_v0  ;;  %308 = vmatprep.subr.bf16.mxu0 %v307_v1  ;;  %v90_v30 = vld [vmem:[%s646_s2] sm:$0xff]  ;;  %v87_v34 = vld [vmem:[%s644_s1 + $0x228] sm:$0xff]  ;;  %v85_v35 = vld [vmem:[%s644_s1 + $0x218] sm:$0xff]  ;;  %v317_v37 = vpack.c.bf16 %v78_v28, %v74_v24  ;;  %v353_v39 = vpack.c.bf16 %v80_v32, %v76_v29 }
  0x18   :  { %344 = vmatprep.subr.bf16.mxu1 %v343_v5  ;;  %v89_v36 = vld [vmem:[%s644_s1 + $0x238] sm:$0xff]  ;;  %285 = vmatprep.mubr.msk.f32.mxu1 %vm102_vm0, %v15_v25  ;;  %v91_v38 = vld [vmem:[%s646_s2 + $0x8] sm:$0xff]  ;;  %v319_v40 = vpack.c.bf16 %v87_v34, %v83_v33  ;;  %v82_v41 = vld [vmem:[%s644_s1 + $0x200] sm:$0xff] }
  0x19   :  { %94 = vperm.xlu0 %360, %v90_v30   ;;  %v86_v42 = vld [vmem:[%s644_s1 + $0x220] sm:$0xff]  ;;  %v355_v43 = vpack.c.bf16 %v89_v36, %v85_v35  ;;  %v84_v44 = vld [vmem:[%s644_s1 + $0x210] sm:$0xff]  ;;  %v17_v49 = vld [vmem:[%s645_s0 + $0x18] sm:$0xff] }
  0x1a   :  { %310 = vmatpush1.bf16.msra.mxu0 %v309_v11  ;;  %v88_v45 = vld [vmem:[%s644_s1 + $0x230] sm:$0xff]  ;;  %v321_v46 = vpack.c.bf16 %v86_v42, %v82_v41  ;;  %v14_v48 = vld [vmem:[%s645_s0] sm:$0xff] }
  0x1b   :  { %346 = vmatpush1.bf16.msra.mxu1 %v345_v12  ;;  %312 = vmatprep.subr.bf16.mxu0 %v311_v13  ;;  %v357_v47 = vpack.c.bf16 %v88_v45, %v84_v44  ;;  %v16_v50 = vld [vmem:[%s645_s0 + $0x10] sm:$0xff] }
  0x1c   :  { %348 = vmatprep.subr.bf16.mxu1 %v347_v17 }
  0x1d   :  { %99 = vperm.xlu0 %360, %v91_v38  }
  0x1e   :  { %314 = vmatpush1.bf16.msra.mxu0 %v313_v23 }
  0x1f   :  { %350 = vmatpush1.bf16.msra.mxu1 %v349_v26  ;;  %316 = vmatprep.subr.bf16.mxu0 %v315_v27 }
  0x20   :  { %352 = vmatprep.subr.bf16.mxu1 %v351_v31 }
  0x22   :  { %318 = vmatpush1.bf16.msra.mxu0 %v317_v37 }
  0x23   :  { %354 = vmatpush1.bf16.msra.mxu1 %v353_v39  ;;  %320 = vmatprep.subr.bf16.mxu0 %v319_v40 }
  0x24   :  { %356 = vmatprep.subr.bf16.mxu1 %v355_v43 }
  0x26   :  { %322 = vmatpush1.bf16.msra.mxu0 %v321_v46 }
  0x27   :  { %358 = vmatpush1.bf16.msra.mxu1 %v357_v47 }
  0x29   :  { %174 = vmatmul.mubr.f32.vlgmr.msra.gmra.mrb[0].mxu0 %v14_v48 }
  0x2a   :  { %251 = vmatmul.mubr.f32.vlgmr.msra.gmra.mrb[0].mxu1 %v14_v48  ;;  %284 = vmatprep.mubr.msk.f32.mxu0 %vm102_vm0, %v17_v49 }
  0x2b   :  { %286 = vmatprep.mubr.msk.f32.mxu1 %vm102_vm0, %v17_v49 }
  0x2d   :  { %180 = vmatmul.mubr.f32.gmra.mrb[2].mxu0 %v16_v50 }
  0x2e   :  { %257 = vmatmul.mubr.f32.gmra.mrb[2].mxu1 %v16_v50 }
  0x98   :  { %v95_v51 = vpop.permute.xlu0 %94 }
  0x9c   :  { %v100_v62 = vpop.permute.xlu0 %99 }
  0xfc   :  { %v175_v52 = vpop.f32.mrb[0].mxu0 }
  0xfd   :  { %v176_v53 = vadd.f32 %v175_v52, %v95_v51  ;;  %v252_v54 = vpop.f32.mrb[0].mxu1  ;;  %v177_v55 = vpop.f32.mrb[1].mxu0 }
  0xfe   :  { %v253_v56 = vadd.f32 %v252_v54, %v95_v51  ;;  %v178_v57 = vadd.f32 %v177_v55, %v95_v51  ;;  %v254_v58 = vpop.f32.mrb[1].mxu1 }
  0xff   :  { %v263_v59 = vmax.f32 %v176_v53, 0.0  ;;  %v255_v60 = vadd.f32 %v254_v58, %v95_v51 }
 0x100   :  { %v265_v61 = vmax.f32 %v253_v56, 0.0  ;;  %v264_v63 = vmax.f32 %v178_v57, 0.0  ;;  %v181_v0 = vpop.f32.mrb[2].mxu0 }
 0x101   :  { %271 = vst [vmem:[%s647_s3] sm:$0xff] %v263_v59  ;;  %v266_v1 = vmax.f32 %v255_v60, 0.0  ;;  %v182_v2 = vadd.f32 %v181_v0, %v100_v62  ;;  %v258_v3 = vpop.f32.mrb[2].mxu1  ;;  %v183_v4 = vpop.f32.mrb[3].mxu0 }
 0x102   :  { %273 = vst [vmem:[%s647_s3 + $0x10] sm:$0xff] %v265_v61  ;;  %272 = vst [vmem:[%s647_s3 + $0x8] sm:$0xff] %v264_v63  ;;  %v259_v5 = vadd.f32 %v258_v3, %v100_v62  ;;  %v184_v6 = vadd.f32 %v183_v4, %v100_v62  ;;  %v260_v7 = vpop.f32.mrb[3].mxu1 }
 0x103   :  { %274 = vst [vmem:[%s647_s3 + $0x18] sm:$0xff] %v266_v1  ;;  %v267_v8 = vmax.f32 %v182_v2, 0.0  ;;  %v261_v9 = vadd.f32 %v260_v7, %v100_v62 }
 0x104   :  { %v269_v10 = vmax.f32 %v259_v5, 0.0  ;;  %v268_v11 = vmax.f32 %v184_v6, 0.0 }
 0x105   :  { %275 = vst [vmem:[%s647_s3 + $0x20] sm:$0xff] %v267_v8  ;;  %v270_v12 = vmax.f32 %v261_v9, 0.0 }
 0x106   :  { %277 = vst [vmem:[%s647_s3 + $0x30] sm:$0xff] %v269_v10  ;;  %276 = vst [vmem:[%s647_s3 + $0x28] sm:$0xff] %v268_v11 }
 0x107   :  { %278 = vst [vmem:[%s647_s3 + $0x38] sm:$0xff] %v270_v12 }

// kernel: fwd.23
= control target key start
LH: loop header
LB: loop body
LE: loop exit
PB: predicated region body
PF: predicated region fallthrough
CT: control target
= control target key end

     0   :  { %v312_v3 = vmov 0.0   ;;  %v313_v8 = vmov 0   ;;  %vm76_vm0 = vcmask 785408   ;;  %s518_s1 = inlined_call_operand.vmem [shape: f32[96,512], index: 1, kind: input, shape index: {}]   ;;  %s519_s2 = inlined_call_operand.vmem [shape: f32[16,1], index: 2, kind: input, shape index: {}]   ;;  %s520_s0 = inlined_call_operand.vmem [shape: f32[16,96], index: 0, kind: input, shape index: {}]   ;;  %s521_s3 = inlined_call_operand.vmem [shape: f32[16,512], index: 3, kind: output, shape index: {}]  }
   0x1   :  { %v17_v0 = vld [vmem:[%s518_s1 + $0x8] sm:$0xff]  ;;  %v19_v2 = vld [vmem:[%s518_s1 + $0x18] sm:$0xff]  ;;  %147 = vmatprep.mubr.f32.mxu0 %v312_v3  ;;  %224 = vmatprep.mubr.f32.mxu1 %v312_v3  ;;  %v16_v6 = vld [vmem:[%s518_s1] sm:$0xff] }
   0x2   :  { %v21_v1 = vld [vmem:[%s518_s1 + $0x28] sm:$0xff]  ;;  %v23_v5 = vld [vmem:[%s518_s1 + $0x38] sm:$0xff]  ;;  %v20_v7 = vld [vmem:[%s518_s1 + $0x20] sm:$0xff]  ;;  %311 = vset.pattern.permute.xlu0 %v313_v8 }
   0x3   :  { %v261_v4 = vpack.c.bf16 %v21_v1, %v17_v0  ;;  %v285_v9 = vpack.c.bf16 %v23_v5, %v19_v2  ;;  %v263_v10 = vpack.c.bf16 %v20_v7, %v16_v6  ;;  %v18_v11 = vld [vmem:[%s518_s1 + $0x10] sm:$0xff]  ;;  %v25_v13 = vld [vmem:[%s518_s1 + $0x48] sm:$0xff]  ;;  %v27_v16 = vld [vmem:[%s518_s1 + $0x58] sm:$0xff] }
   0x4   :  { %v22_v12 = vld [vmem:[%s518_s1 + $0x30] sm:$0xff]  ;;  %v29_v15 = vld [vmem:[%s518_s1 + $0x68] sm:$0xff]  ;;  %v31_v17 = vld [vmem:[%s518_s1 + $0x78] sm:$0xff] }
   0x5   :  { %262 = vmatprep.subr.bf16.mxu0 %v261_v4  ;;  %v287_v14 = vpack.c.bf16 %v22_v12, %v18_v11  ;;  %286 = vmatprep.subr.bf16.mxu1 %v285_v9  ;;  %v265_v18 = vpack.c.bf16 %v29_v15, %v25_v13  ;;  %v289_v19 = vpack.c.bf16 %v31_v17, %v27_v16  ;;  %v24_v20 = vld [vmem:[%s518_s1 + $0x40] sm:$0xff]  ;;  %v26_v22 = vld [vmem:[%s518_s1 + $0x50] sm:$0xff]  ;;  %v33_v25 = vld [vmem:[%s518_s1 + $0x88] sm:$0xff] }
   0x6   :  { %264 = vmatpush1.bf16.msra.mxu0 %v263_v10  ;;  %v28_v21 = vld [vmem:[%s518_s1 + $0x60] sm:$0xff]  ;;  %v30_v24 = vld [vmem:[%s518_s1 + $0x70] sm:$0xff]  ;;  %v37_v26 = vld [vmem:[%s518_s1 + $0xa8] sm:$0xff] }
   0x7   :  { %288 = vmatpush1.bf16.msra.mxu1 %v287_v14  ;;  %v267_v23 = vpack.c.bf16 %v28_v21, %v24_v20  ;;  %266 = vmatprep.subr.bf16.mxu0 %v265_v18  ;;  %v291_v27 = vpack.c.bf16 %v30_v24, %v26_v22  ;;  %v269_v28 = vpack.c.bf16 %v37_v26, %v33_v25  ;;  %v35_v29 = vld [vmem:[%s518_s1 + $0x98] sm:$0xff]  ;;  %v32_v31 = vld [vmem:[%s518_s1 + $0x80] sm:$0xff]  ;;  %v34_v34 = vld [vmem:[%s518_s1 + $0x90] sm:$0xff] }
   0x8   :  { %290 = vmatprep.subr.bf16.mxu1 %v289_v19  ;;  %v39_v30 = vld [vmem:[%s518_s1 + $0xb8] sm:$0xff]  ;;  %v36_v33 = vld [vmem:[%s518_s1 + $0xa0] sm:$0xff]  ;;  %v38_v35 = vld [vmem:[%s518_s1 + $0xb0] sm:$0xff] }
   0x9   :  { %v293_v32 = vpack.c.bf16 %v39_v30, %v35_v29  ;;  %v271_v36 = vpack.c.bf16 %v36_v33, %v32_v31  ;;  %v41_v37 = vld [vmem:[%s518_s1 + $0xc8] sm:$0xff]  ;;  %v43_v39 = vld [vmem:[%s518_s1 + $0xd8] sm:$0xff]  ;;  %v295_v40 = vpack.c.bf16 %v38_v35, %v34_v34  ;;  %v40_v43 = vld [vmem:[%s518_s1 + $0xc0] sm:$0xff] }
   0xa   :  { %268 = vmatpush1.bf16.msra.mxu0 %v267_v23  ;;  %v45_v38 = vld [vmem:[%s518_s1 + $0xe8] sm:$0xff]  ;;  %v47_v42 = vld [vmem:[%s518_s1 + $0xf8] sm:$0xff]  ;;  %v44_v44 = vld [vmem:[%s518_s1 + $0xe0] sm:$0xff] }
   0xb   :  { %292 = vmatpush1.bf16.msra.mxu1 %v291_v27  ;;  %270 = vmatprep.subr.bf16.mxu0 %v269_v28  ;;  %v273_v41 = vpack.c.bf16 %v45_v38, %v41_v37  ;;  %v297_v45 = vpack.c.bf16 %v47_v42, %v43_v39  ;;  %v42_v46 = vld [vmem:[%s518_s1 + $0xd0] sm:$0xff]  ;;  %v49_v48 = vld [vmem:[%s518_s1 + $0x108] sm:$0xff]  ;;  %v51_v50 = vld [vmem:[%s518_s1 + $0x118] sm:$0xff]  ;;  %v275_v52 = vpack.c.bf16 %v44_v44, %v40_v43 }
   0xc   :  { %294 = vmatprep.subr.bf16.mxu1 %v293_v32  ;;  %v46_v47 = vld [vmem:[%s518_s1 + $0xf0] sm:$0xff]  ;;  %v53_v49 = vld [vmem:[%s518_s1 + $0x128] sm:$0xff]  ;;  %v55_v51 = vld [vmem:[%s518_s1 + $0x138] sm:$0xff] }
   0xd   :  { %v299_v53 = vpack.c.bf16 %v46_v47, %v42_v46  ;;  %v277_v54 = vpack.c.bf16 %v53_v49, %v49_v48  ;;  %v48_v55 = vld [vmem:[%s518_s1 + $0x100] sm:$0xff]  ;;  %v50_v57 = vld [vmem:[%s518_s1 + $0x110] sm:$0xff]  ;;  %v301_v58 = vpack.c.bf16 %v55_v51, %v51_v50  ;;  %v57_v60 = vld [vmem:[%s518_s1 + $0x148] sm:$0xff] }
   0xe   :  { %272 = vmatpush1.bf16.msra.mxu0 %v271_v36  ;;  %v52_v56 = vld [vmem:[%s518_s1 + $0x120] sm:$0xff]  ;;  %v54_v59 = vld [vmem:[%s518_s1 + $0x130] sm:$0xff]  ;;  %v61_v61 = vld [vmem:[%s518_s1 + $0x168] sm:$0xff] }
   0xf   :  { %296 = vmatpush1.bf16.msra.mxu1 %v295_v40  ;;  %274 = vmatprep.subr.bf16.mxu0 %v273_v41  ;;  %v59_v62 = vld [vmem:[%s518_s1 + $0x158] sm:$0xff]  ;;  %v279_v0 = vpack.c.bf16 %v52_v56, %v48_v55  ;;  %v64_v1 = vld [vmem:[%s519_s2] sm:$0xff]  ;;  %v303_v2 = vpack.c.bf16 %v54_v59, %v50_v57  ;;  %v281_v4 = vpack.c.bf16 %v61_v61, %v57_v60  ;;  %v58_v8 = vld [vmem:[%s518_s1 + $0x150] sm:$0xff] }
  0x10   :  { %298 = vmatprep.subr.bf16.mxu1 %v297_v45  ;;  %v63_v63 = vld [vmem:[%s518_s1 + $0x178] sm:$0xff]  ;;  %v56_v5 = vld [vmem:[%s518_s1 + $0x140] sm:$0xff]  ;;  %v62_v9 = vld [vmem:[%s518_s1 + $0x170] sm:$0xff]  ;;  %68 = vperm.xlu0 %311, %v64_v1  }
  0x11   :  { %v60_v6 = vld [vmem:[%s518_s1 + $0x160] sm:$0xff]  ;;  %v305_v7 = vpack.c.bf16 %v63_v63, %v59_v62  ;;  %v65_v10 = vld [vmem:[%s519_s2 + $0x8] sm:$0xff]  ;;  %v307_v12 = vpack.c.bf16 %v62_v9, %v58_v8 }
  0x12   :  { %276 = vmatpush1.bf16.msra.mxu0 %v275_v52  ;;  %v283_v11 = vpack.c.bf16 %v60_v6, %v56_v5  ;;  %v14_v13 = vld [vmem:[%s520_s0] sm:$0xff]  ;;  %v15_v14 = vld [vmem:[%s520_s0 + $0x8] sm:$0xff] }
  0x13   :  { %300 = vmatpush1.bf16.msra.mxu1 %v299_v53  ;;  %278 = vmatprep.subr.bf16.mxu0 %v277_v54 }
  0x14   :  { %302 = vmatprep.subr.bf16.mxu1 %v301_v58  ;;  %73 = vperm.xlu0 %311, %v65_v10  }
  0x16   :  { %280 = vmatpush1.bf16.msra.mxu0 %v279_v0 }
  0x17   :  { %304 = vmatpush1.bf16.msra.mxu1 %v303_v2  ;;  %282 = vmatprep.subr.bf16.mxu0 %v281_v4 }
  0x18   :  { %306 = vmatprep.subr.bf16.mxu1 %v305_v7 }
  0x1a   :  { %284 = vmatpush1.bf16.msra.mxu0 %v283_v11 }
  0x1b   :  { %308 = vmatpush1.bf16.msra.mxu1 %v307_v12 }
  0x1d   :  { %257 = vmatmul.mubr.msk.f32.vlgmr.msra.gmra.mrb[0].mxu0 %vm76_vm0, %v14_v13 }
  0x1e   :  { %259 = vmatmul.mubr.msk.f32.vlgmr.msra.gmra.mrb[0].mxu1 %vm76_vm0, %v14_v13  ;;  %153 = vmatprep.mubr.f32.mxu0 %v312_v3 }
  0x1f   :  { %230 = vmatprep.mubr.f32.mxu1 %v312_v3 }
  0x21   :  { %258 = vmatmul.mubr.msk.f32.gmra.mrb[2].mxu0 %vm76_vm0, %v15_v14 }
  0x22   :  { %260 = vmatmul.mubr.msk.f32.gmra.mrb[2].mxu1 %vm76_vm0, %v15_v14 }
  0x8f   :  { %v69_v15 = vpop.permute.xlu0 %68 }
  0x93   :  { %v74_v26 = vpop.permute.xlu0 %73 }
  0xf0   :  { %v149_v16 = vpop.f32.mrb[0].mxu0 }
  0xf1   :  { %v150_v17 = vadd.f32 %v149_v16, %v69_v15  ;;  %v226_v18 = vpop.f32.mrb[0].mxu1  ;;  %v151_v19 = vpop.f32.mrb[1].mxu0 }
  0xf2   :  { %v227_v20 = vadd.f32 %v226_v18, %v69_v15  ;;  %v152_v21 = vadd.f32 %v151_v19, %v69_v15  ;;  %v228_v22 = vpop.f32.mrb[1].mxu1 }
  0xf3   :  { %v237_v23 = vmax.f32 %v150_v17, 0.0  ;;  %v229_v24 = vadd.f32 %v228_v22, %v69_v15 }
  0xf4   :  { %v239_v25 = vmax.f32 %v227_v20, 0.0  ;;  %v238_v27 = vmax.f32 %v152_v21, 0.0  ;;  %v155_v28 = vpop.f32.mrb[2].mxu0 }
  0xf5   :  { %245 = vst [vmem:[%s521_s3] sm:$0xff] %v237_v23  ;;  %v240_v3 = vmax.f32 %v229_v24, 0.0  ;;  %v156_v29 = vadd.f32 %v155_v28, %v74_v26  ;;  %v232_v30 = vpop.f32.mrb[2].mxu1  ;;  %v157_v31 = vpop.f32.mrb[3].mxu0 }
  0xf6   :  { %247 = vst [vmem:[%s521_s3 + $0x10] sm:$0xff] %v239_v25  ;;  %246 = vst [vmem:[%s521_s3 + $0x8] sm:$0xff] %v238_v27  ;;  %v233_v32 = vadd.f32 %v232_v30, %v74_v26  ;;  %v158_v33 = vadd.f32 %v157_v31, %v74_v26  ;;  %v234_v34 = vpop.f32.mrb[3].mxu1 }
  0xf7   :  { %248 = vst [vmem:[%s521_s3 + $0x18] sm:$0xff] %v240_v3  ;;  %v241_v35 = vmax.f32 %v156_v29, 0.0  ;;  %v235_v36 = vadd.f32 %v234_v34, %v74_v26 }
  0xf8   :  { %v243_v37 = vmax.f32 %v233_v32, 0.0  ;;  %v242_v38 = vmax.f32 %v158_v33, 0.0 }
  0xf9   :  { %249 = vst [vmem:[%s521_s3 + $0x20] sm:$0xff] %v241_v35  ;;  %v244_v39 = vmax.f32 %v235_v36, 0.0 }
  0xfa   :  { %251 = vst [vmem:[%s521_s3 + $0x30] sm:$0xff] %v243_v37  ;;  %250 = vst [vmem:[%s521_s3 + $0x28] sm:$0xff] %v242_v38 }
  0xfb   :  { %252 = vst [vmem:[%s521_s3 + $0x38] sm:$0xff] %v244_v39 }

// kernel: fwd.25
= control target key start
LH: loop header
LB: loop body
LE: loop exit
PB: predicated region body
PF: predicated region fallthrough
CT: control target
= control target key end

     0   :  { %v280_v3 = vmov 0.0   ;;  %v281_v8 = vmov 0   ;;  %vm60_vm0 = vcmask 523264   ;;  %s438_s1 = inlined_call_operand.vmem [shape: f32[64,512], index: 1, kind: input, shape index: {}]   ;;  %s439_s2 = inlined_call_operand.vmem [shape: f32[16,1], index: 2, kind: input, shape index: {}]   ;;  %s440_s0 = inlined_call_operand.vmem [shape: f32[16,64], index: 0, kind: input, shape index: {}]   ;;  %s441_s3 = inlined_call_operand.vmem [shape: f32[16,512], index: 3, kind: output, shape index: {}]  }
   0x1   :  { %v17_v0 = vld [vmem:[%s438_s1 + $0x8] sm:$0xff]  ;;  %v19_v2 = vld [vmem:[%s438_s1 + $0x18] sm:$0xff]  ;;  %131 = vmatprep.mubr.f32.mxu0 %v280_v3  ;;  %208 = vmatprep.mubr.f32.mxu1 %v280_v3  ;;  %v16_v6 = vld [vmem:[%s438_s1] sm:$0xff] }
   0x2   :  { %v21_v1 = vld [vmem:[%s438_s1 + $0x28] sm:$0xff]  ;;  %v23_v5 = vld [vmem:[%s438_s1 + $0x38] sm:$0xff]  ;;  %v20_v7 = vld [vmem:[%s438_s1 + $0x20] sm:$0xff]  ;;  %279 = vset.pattern.permute.xlu0 %v281_v8 }
   0x3   :  { %v245_v4 = vpack.c.bf16 %v21_v1, %v17_v0  ;;  %v261_v9 = vpack.c.bf16 %v23_v5, %v19_v2  ;;  %v247_v10 = vpack.c.bf16 %v20_v7, %v16_v6  ;;  %v18_v11 = vld [vmem:[%s438_s1 + $0x10] sm:$0xff]  ;;  %v25_v13 = vld [vmem:[%s438_s1 + $0x48] sm:$0xff]  ;;  %v27_v16 = vld [vmem:[%s438_s1 + $0x58] sm:$0xff] }
   0x4   :  { %v22_v12 = vld [vmem:[%s438_s1 + $0x30] sm:$0xff]  ;;  %v29_v15 = vld [vmem:[%s438_s1 + $0x68] sm:$0xff]  ;;  %v31_v17 = vld [vmem:[%s438_s1 + $0x78] sm:$0xff] }
   0x5   :  { %246 = vmatprep.subr.bf16.mxu0 %v245_v4  ;;  %v263_v14 = vpack.c.bf16 %v22_v12, %v18_v11  ;;  %262 = vmatprep.subr.bf16.mxu1 %v261_v9  ;;  %v249_v18 = vpack.c.bf16 %v29_v15, %v25_v13  ;;  %v265_v19 = vpack.c.bf16 %v31_v17, %v27_v16  ;;  %v24_v20 = vld [vmem:[%s438_s1 + $0x40] sm:$0xff]  ;;  %v26_v22 = vld [vmem:[%s438_s1 + $0x50] sm:$0xff]  ;;  %v33_v25 = vld [vmem:[%s438_s1 + $0x88] sm:$0xff] }
   0x6   :  { %248 = vmatpush1.bf16.msra.mxu0 %v247_v10  ;;  %v28_v21 = vld [vmem:[%s438_s1 + $0x60] sm:$0xff]  ;;  %v30_v24 = vld [vmem:[%s438_s1 + $0x70] sm:$0xff]  ;;  %v37_v26 = vld [vmem:[%s438_s1 + $0xa8] sm:$0xff] }
   0x7   :  { %264 = vmatpush1.bf16.msra.mxu1 %v263_v14  ;;  %v251_v23 = vpack.c.bf16 %v28_v21, %v24_v20  ;;  %250 = vmatprep.subr.bf16.mxu0 %v249_v18  ;;  %v267_v27 = vpack.c.bf16 %v30_v24, %v26_v22  ;;  %v253_v28 = vpack.c.bf16 %v37_v26, %v33_v25  ;;  %v35_v29 = vld [vmem:[%s438_s1 + $0x98] sm:$0xff]  ;;  %v32_v31 = vld [vmem:[%s438_s1 + $0x80] sm:$0xff]  ;;  %v34_v34 = vld [vmem:[%s438_s1 + $0x90] sm:$0xff] }
   0x8   :  { %266 = vmatprep.subr.bf16.mxu1 %v265_v19  ;;  %v39_v30 = vld [vmem:[%s438_s1 + $0xb8] sm:$0xff]  ;;  %v36_v33 = vld [vmem:[%s438_s1 + $0xa0] sm:$0xff]  ;;  %v38_v35 = vld [vmem:[%s438_s1 + $0xb0] sm:$0xff] }
   0x9   :  { %v269_v32 = vpack.c.bf16 %v39_v30, %v35_v29  ;;  %v255_v36 = vpack.c.bf16 %v36_v33, %v32_v31  ;;  %v41_v37 = vld [vmem:[%s438_s1 + $0xc8] sm:$0xff]  ;;  %v43_v39 = vld [vmem:[%s438_s1 + $0xd8] sm:$0xff]  ;;  %v271_v40 = vpack.c.bf16 %v38_v35, %v34_v34  ;;  %v40_v43 = vld [vmem:[%s438_s1 + $0xc0] sm:$0xff] }
   0xa   :  { %252 = vmatpush1.bf16.msra.mxu0 %v251_v23  ;;  %v45_v38 = vld [vmem:[%s438_s1 + $0xe8] sm:$0xff]  ;;  %v47_v42 = vld [vmem:[%s438_s1 + $0xf8] sm:$0xff]  ;;  %v44_v44 = vld [vmem:[%s438_s1 + $0xe0] sm:$0xff] }
   0xb   :  { %268 = vmatpush1.bf16.msra.mxu1 %v267_v27  ;;  %254 = vmatprep.subr.bf16.mxu0 %v253_v28  ;;  %v257_v41 = vpack.c.bf16 %v45_v38, %v41_v37  ;;  %v273_v45 = vpack.c.bf16 %v47_v42, %v43_v39  ;;  %v42_v46 = vld [vmem:[%s438_s1 + $0xd0] sm:$0xff]  ;;  %v48_v48 = vld [vmem:[%s439_s2] sm:$0xff]  ;;  %v259_v49 = vpack.c.bf16 %v44_v44, %v40_v43  ;;  %v49_v51 = vld [vmem:[%s439_s2 + $0x8] sm:$0xff] }
   0xc   :  { %270 = vmatprep.subr.bf16.mxu1 %v269_v32  ;;  %v46_v47 = vld [vmem:[%s438_s1 + $0xf0] sm:$0xff]  ;;  %52 = vperm.xlu0 %279, %v48_v48   ;;  %v14_v52 = vld [vmem:[%s440_s0] sm:$0xff]  ;;  %v15_v53 = vld [vmem:[%s440_s0 + $0x8] sm:$0xff] }
   0xd   :  { %v275_v50 = vpack.c.bf16 %v46_v47, %v42_v46 }
   0xe   :  { %256 = vmatpush1.bf16.msra.mxu0 %v255_v36 }
   0xf   :  { %272 = vmatpush1.bf16.msra.mxu1 %v271_v40  ;;  %258 = vmatprep.subr.bf16.mxu0 %v257_v41 }
  0x10   :  { %274 = vmatprep.subr.bf16.mxu1 %v273_v45  ;;  %57 = vperm.xlu0 %279, %v49_v51  }
  0x12   :  { %260 = vmatpush1.bf16.msra.mxu0 %v259_v49 }
  0x13   :  { %276 = vmatpush1.bf16.msra.mxu1 %v275_v50 }
  0x15   :  { %241 = vmatmul.mubr.msk.f32.vlgmr.msra.gmra.mrb[0].mxu0 %vm60_vm0, %v14_v52 }
  0x16   :  { %243 = vmatmul.mubr.msk.f32.vlgmr.msra.gmra.mrb[0].mxu1 %vm60_vm0, %v14_v52  ;;  %137 = vmatprep.mubr.f32.mxu0 %v280_v3 }
  0x17   :  { %214 = vmatprep.mubr.f32.mxu1 %v280_v3 }
  0x19   :  { %242 = vmatmul.mubr.msk.f32.gmra.mrb[2].mxu0 %vm60_vm0, %v15_v53 }
  0x1a   :  { %244 = vmatmul.mubr.msk.f32.gmra.mrb[2].mxu1 %vm60_vm0, %v15_v53 }
  0x8b   :  { %v53_v54 = vpop.permute.xlu0 %52 }
  0x8f   :  { %v58_v1 = vpop.permute.xlu0 %57 }
  0xe8   :  { %v133_v55 = vpop.f32.mrb[0].mxu0 }
  0xe9   :  { %v134_v56 = vadd.f32 %v133_v55, %v53_v54  ;;  %v210_v57 = vpop.f32.mrb[0].mxu1  ;;  %v135_v58 = vpop.f32.mrb[1].mxu0 }
  0xea   :  { %v211_v59 = vadd.f32 %v210_v57, %v53_v54  ;;  %v136_v60 = vadd.f32 %v135_v58, %v53_v54  ;;  %v212_v61 = vpop.f32.mrb[1].mxu1 }
  0xeb   :  { %v221_v62 = vmax.f32 %v134_v56, 0.0  ;;  %v213_v63 = vadd.f32 %v212_v61, %v53_v54 }
  0xec   :  { %v223_v0 = vmax.f32 %v211_v59, 0.0  ;;  %v222_v2 = vmax.f32 %v136_v60, 0.0  ;;  %v139_v4 = vpop.f32.mrb[2].mxu0 }
  0xed   :  { %229 = vst [vmem:[%s441_s3] sm:$0xff] %v221_v62  ;;  %v224_v3 = vmax.f32 %v213_v63, 0.0  ;;  %v140_v5 = vadd.f32 %v139_v4, %v58_v1  ;;  %v216_v6 = vpop.f32.mrb[2].mxu1  ;;  %v141_v7 = vpop.f32.mrb[3].mxu0 }
  0xee   :  { %231 = vst [vmem:[%s441_s3 + $0x10] sm:$0xff] %v223_v0  ;;  %230 = vst [vmem:[%s441_s3 + $0x8] sm:$0xff] %v222_v2  ;;  %v217_v8 = vadd.f32 %v216_v6, %v58_v1  ;;  %v142_v9 = vadd.f32 %v141_v7, %v58_v1  ;;  %v218_v10 = vpop.f32.mrb[3].mxu1 }
  0xef   :  { %232 = vst [vmem:[%s441_s3 + $0x18] sm:$0xff] %v224_v3  ;;  %v225_v11 = vmax.f32 %v140_v5, 0.0  ;;  %v219_v12 = vadd.f32 %v218_v10, %v58_v1 }
  0xf0   :  { %v227_v13 = vmax.f32 %v217_v8, 0.0  ;;  %v226_v14 = vmax.f32 %v142_v9, 0.0 }
  0xf1   :  { %233 = vst [vmem:[%s441_s3 + $0x20] sm:$0xff] %v225_v11  ;;  %v228_v15 = vmax.f32 %v219_v12, 0.0 }
  0xf2   :  { %235 = vst [vmem:[%s441_s3 + $0x30] sm:$0xff] %v227_v13  ;;  %234 = vst [vmem:[%s441_s3 + $0x28] sm:$0xff] %v226_v14 }
  0xf3   :  { %236 = vst [vmem:[%s441_s3 + $0x38] sm:$0xff] %v228_v15 }

// kernel: fwd.26
= control target key start
LH: loop header
LB: loop body
LE: loop exit
PB: predicated region body
PF: predicated region fallthrough
CT: control target
= control target key end

     0   :  { %s1541_s12 = smov 0   ;;  %s1543_s13 = smov 0   ;;  %s2263_s0 = inlined_call_operand.vmem [shape: f32[16,400], index: 0, kind: input, shape index: {}]   ;;  %s2264_s1 = inlined_call_operand.vmem [shape: f32[400,2048], index: 1, kind: input, shape index: {}]   ;;  %s2265_s2 = inlined_call_operand.vmem [shape: f32[16,1], index: 2, kind: input, shape index: {}]   ;;  %s2266_s3 = inlined_call_operand.vmem [shape: f32[16,2048], index: 3, kind: output, shape index: {}]  }
   0x1   :  { %s1545_s14 = smov 0  }
   0x2 LB: > { %s1233_s15 = sadd.s32 4294967295, %s1518_s14   ;;  %s1558_s16 = sadd.s32 1, %s1518_s14   ;;  %s1518_s14 = sphi %s1545_s14, %s2270_s14   ;;  %s1514_s13 = sphi %s1543_s13, %s2269_s13   ;;  %s1510_s12 = sphi %s1541_s12, %s2268_s12  }
   0x3   : > { %s38_s17 = ssub.s32 %s1518_s14, %s1558_s16  ;;  %s41_s18 = sadd.s32 1, %s1514_s13 }
   0x4   : > { %p39_p0 = scmp.eq.s32.totalorder %s38_s17, 0  ;;  %p48_p1 = scmp.ne.s32.totalorder %s1514_s13, %s1510_s12 }
   0x5   : > { %p49_p2 = scmp.eq.s32.totalorder %s1518_s14, 0  ;;  %p99_p3 = scmp.eq.s32.totalorder %s1233_s15, 3 }
   0x6   : > { %s1569_s19 = scalar_select %p39_p0, %s1514_s13, %s41_s18  }
   0x7   : > { %p50_p4 = por %p49_p2, %p48_p1  ;;  %p1571_p5 = por %p99_p3, %p48_p1 }
   0x8   : > { %p1236_p6 = scmp.ge.s32.totalorder %s1518_s14, 4 }
   0xa   : > { %127 = sbr.rel (%p1236_p6) target bundleno = 122 (0x7a), region = 24 }
  0x11   : > { %130 = sbr.rel (!%p50_p4) target bundleno = 122 (0x7a), region = 28  ;;  %s132_s21 = sand.u32 (%p50_p4), 1, %s1514_s13  }
  0x12   : > { %s1250_s22 = sshll.u32 (%p50_p4), %s1518_s14, 5  ;;  %s1468_s23 = smul.u32 (%p50_p4), 1600, %s132_s21 }
  0x13   : > { %s1581_s26 = scalar_lea.vmem (%p50_p4), %s2264_s1, %s1250_s22 }
  0x14   : > { %v150_v0 = vld [vmem:[%s1581_s26] sm:$0xff] (%p50_p4)  ;;  %v152_v1 = vld [vmem:[%s1581_s26 + $0x8] sm:$0xff] (%p50_p4)  ;;  %v154_v2 = vld [vmem:[%s1581_s26 + $0x10] sm:$0xff] (%p50_p4)  ;;  %s1589_s27 = scalar_lea.vmem (%p50_p4), [#allocation2], %s1468_s23 }
  0x15   : > { %v156_v3 = vld [vmem:[%s1581_s26 + $0x18] sm:$0xff] (%p50_p4)  ;;  %v158_v4 = vld [vmem:[%s1581_s26 + $0x80] sm:$0xff] (%p50_p4)  ;;  %v160_v5 = vld [vmem:[%s1581_s26 + $0x88] sm:$0xff] (%p50_p4)  ;;  %151 = vst [vmem:[%s1589_s27] sm:$0xff] (%p50_p4), %v150_v0 }
  0x16   : > { %153 = vst [vmem:[%s1589_s27 + $0x8] sm:$0xff] (%p50_p4), %v152_v1  ;;  %155 = vst [vmem:[%s1589_s27 + $0x10] sm:$0xff] (%p50_p4), %v154_v2  ;;  %v162_v6 = vld [vmem:[%s1581_s26 + $0x90] sm:$0xff] (%p50_p4)  ;;  %v164_v7 = vld [vmem:[%s1581_s26 + $0x98] sm:$0xff] (%p50_p4) }
  0x17   : > { %157 = vst [vmem:[%s1589_s27 + $0x18] sm:$0xff] (%p50_p4), %v156_v3  ;;  %159 = vst [vmem:[%s1589_s27 + $0x20] sm:$0xff] (%p50_p4), %v158_v4  ;;  %v166_v8 = vld [vmem:[%s1581_s26 + $0x100] sm:$0xff] (%p50_p4)  ;;  %v168_v9 = vld [vmem:[%s1581_s26 + $0x108] sm:$0xff] (%p50_p4) }
  0x18   : > { %161 = vst [vmem:[%s1589_s27 + $0x28] sm:$0xff] %v160_v5  ;;  %163 = vst [vmem:[%s1589_s27 + $0x30] sm:$0xff] %v162_v6  ;;  %v170_v10 = vld [vmem:[%s1581_s26 + $0x110] sm:$0xff]  ;;  %v172_v11 = vld [vmem:[%s1581_s26 + $0x118] sm:$0xff] }
  0x19   : > { %165 = vst [vmem:[%s1589_s27 + $0x38] sm:$0xff] %v164_v7  ;;  %167 = vst [vmem:[%s1589_s27 + $0x40] sm:$0xff] %v166_v8  ;;  %v174_v12 = vld [vmem:[%s1581_s26 + $0x180] sm:$0xff]  ;;  %v176_v13 = vld [vmem:[%s1581_s26 + $0x188] sm:$0xff] }
  0x1a   : > { %169 = vst [vmem:[%s1589_s27 + $0x48] sm:$0xff] %v168_v9  ;;  %171 = vst [vmem:[%s1589_s27 + $0x50] sm:$0xff] %v170_v10  ;;  %v178_v14 = vld [vmem:[%s1581_s26 + $0x190] sm:$0xff]  ;;  %v180_v15 = vld [vmem:[%s1581_s26 + $0x198] sm:$0xff] }
  0x1b   : > { %173 = vst [vmem:[%s1589_s27 + $0x58] sm:$0xff] %v172_v11  ;;  %175 = vst [vmem:[%s1589_s27 + $0x60] sm:$0xff] %v174_v12  ;;  %v182_v16 = vld [vmem:[%s1581_s26 + $0x200] sm:$0xff]  ;;  %v184_v17 = vld [vmem:[%s1581_s26 + $0x208] sm:$0xff] }
  0x1c   : > { %177 = vst [vmem:[%s1589_s27 + $0x68] sm:$0xff] %v176_v13  ;;  %179 = vst [vmem:[%s1589_s27 + $0x70] sm:$0xff] %v178_v14  ;;  %v186_v18 = vld [vmem:[%s1581_s26 + $0x210] sm:$0xff]  ;;  %v188_v19 = vld [vmem:[%s1581_s26 + $0x218] sm:$0xff] }
  0x1d   : > { %181 = vst [vmem:[%s1589_s27 + $0x78] sm:$0xff] %v180_v15  ;;  %183 = vst [vmem:[%s1589_s27 + $0x80] sm:$0xff] %v182_v16  ;;  %v190_v20 = vld [vmem:[%s1581_s26 + $0x280] sm:$0xff]  ;;  %v192_v21 = vld [vmem:[%s1581_s26 + $0x288] sm:$0xff] }
  0x1e   : > { %185 = vst [vmem:[%s1589_s27 + $0x88] sm:$0xff] %v184_v17  ;;  %187 = vst [vmem:[%s1589_s27 + $0x90] sm:$0xff] %v186_v18  ;;  %v194_v22 = vld [vmem:[%s1581_s26 + $0x290] sm:$0xff]  ;;  %v196_v23 = vld [vmem:[%s1581_s26 + $0x298] sm:$0xff] }
  0x1f   : > { %189 = vst [vmem:[%s1589_s27 + $0x98] sm:$0xff] %v188_v19  ;;  %191 = vst [vmem:[%s1589_s27 + $0xa0] sm:$0xff] %v190_v20  ;;  %v198_v24 = vld [vmem:[%s1581_s26 + $0x300] sm:$0xff]  ;;  %v200_v25 = vld [vmem:[%s1581_s26 + $0x308] sm:$0xff] }
  0x20   : > { %193 = vst [vmem:[%s1589_s27 + $0xa8] sm:$0xff] %v192_v21  ;;  %195 = vst [vmem:[%s1589_s27 + $0xb0] sm:$0xff] %v194_v22  ;;  %v202_v26 = vld [vmem:[%s1581_s26 + $0x310] sm:$0xff]  ;;  %v204_v27 = vld [vmem:[%s1581_s26 + $0x318] sm:$0xff] }
  0x21   : > { %197 = vst [vmem:[%s1589_s27 + $0xb8] sm:$0xff] %v196_v23  ;;  %199 = vst [vmem:[%s1589_s27 + $0xc0] sm:$0xff] %v198_v24  ;;  %v206_v28 = vld [vmem:[%s1581_s26 + $0x380] sm:$0xff]  ;;  %v208_v29 = vld [vmem:[%s1581_s26 + $0x388] sm:$0xff] }
  0x22   : > { %201 = vst [vmem:[%s1589_s27 + $0xc8] sm:$0xff] %v200_v25  ;;  %203 = vst [vmem:[%s1589_s27 + $0xd0] sm:$0xff] %v202_v26  ;;  %v210_v30 = vld [vmem:[%s1581_s26 + $0x390] sm:$0xff]  ;;  %v212_v31 = vld [vmem:[%s1581_s26 + $0x398] sm:$0xff] }
  0x23   : > { %205 = vst [vmem:[%s1589_s27 + $0xd8] sm:$0xff] %v204_v27  ;;  %207 = vst [vmem:[%s1589_s27 + $0xe0] sm:$0xff] %v206_v28  ;;  %v214_v32 = vld [vmem:[%s1581_s26 + $0x400] sm:$0xff]  ;;  %v216_v33 = vld [vmem:[%s1581_s26 + $0x408] sm:$0xff] }
  0x24   : > { %209 = vst [vmem:[%s1589_s27 + $0xe8] sm:$0xff] %v208_v29  ;;  %211 = vst [vmem:[%s1589_s27 + $0xf0] sm:$0xff] %v210_v30  ;;  %v218_v34 = vld [vmem:[%s1581_s26 + $0x410] sm:$0xff]  ;;  %v220_v35 = vld [vmem:[%s1581_s26 + $0x418] sm:$0xff] }
  0x25   : > { %213 = vst [vmem:[%s1589_s27 + $0xf8] sm:$0xff] %v212_v31  ;;  %215 = vst [vmem:[%s1589_s27 + $0x100] sm:$0xff] %v214_v32  ;;  %v222_v36 = vld [vmem:[%s1581_s26 + $0x480] sm:$0xff]  ;;  %v224_v37 = vld [vmem:[%s1581_s26 + $0x488] sm:$0xff] }
  0x26   : > { %217 = vst [vmem:[%s1589_s27 + $0x108] sm:$0xff] %v216_v33  ;;  %219 = vst [vmem:[%s1589_s27 + $0x110] sm:$0xff] %v218_v34  ;;  %v226_v38 = vld [vmem:[%s1581_s26 + $0x490] sm:$0xff]  ;;  %v228_v39 = vld [vmem:[%s1581_s26 + $0x498] sm:$0xff] }
  0x27   : > { %221 = vst [vmem:[%s1589_s27 + $0x118] sm:$0xff] %v220_v35  ;;  %223 = vst [vmem:[%s1589_s27 + $0x120] sm:$0xff] %v222_v36  ;;  %v230_v40 = vld [vmem:[%s1581_s26 + $0x500] sm:$0xff]  ;;  %v232_v41 = vld [vmem:[%s1581_s26 + $0x508] sm:$0xff] }
  0x28   : > { %225 = vst [vmem:[%s1589_s27 + $0x128] sm:$0xff] %v224_v37  ;;  %227 = vst [vmem:[%s1589_s27 + $0x130] sm:$0xff] %v226_v38  ;;  %v234_v42 = vld [vmem:[%s1581_s26 + $0x510] sm:$0xff]  ;;  %v236_v43 = vld [vmem:[%s1581_s26 + $0x518] sm:$0xff] }
  0x29   : > { %229 = vst [vmem:[%s1589_s27 + $0x138] sm:$0xff] %v228_v39  ;;  %231 = vst [vmem:[%s1589_s27 + $0x140] sm:$0xff] %v230_v40  ;;  %v238_v44 = vld [vmem:[%s1581_s26 + $0x580] sm:$0xff]  ;;  %v240_v45 = vld [vmem:[%s1581_s26 + $0x588] sm:$0xff] }
  0x2a   : > { %233 = vst [vmem:[%s1589_s27 + $0x148] sm:$0xff] %v232_v41  ;;  %235 = vst [vmem:[%s1589_s27 + $0x150] sm:$0xff] %v234_v42  ;;  %v242_v46 = vld [vmem:[%s1581_s26 + $0x590] sm:$0xff]  ;;  %v244_v47 = vld [vmem:[%s1581_s26 + $0x598] sm:$0xff] }
  0x2b   : > { %237 = vst [vmem:[%s1589_s27 + $0x158] sm:$0xff] %v236_v43  ;;  %239 = vst [vmem:[%s1589_s27 + $0x160] sm:$0xff] %v238_v44  ;;  %v246_v48 = vld [vmem:[%s1581_s26 + $0x600] sm:$0xff]  ;;  %v248_v49 = vld [vmem:[%s1581_s26 + $0x608] sm:$0xff] }
  0x2c   : > { %241 = vst [vmem:[%s1589_s27 + $0x168] sm:$0xff] %v240_v45  ;;  %243 = vst [vmem:[%s1589_s27 + $0x170] sm:$0xff] %v242_v46  ;;  %v250_v50 = vld [vmem:[%s1581_s26 + $0x610] sm:$0xff]  ;;  %v252_v51 = vld [vmem:[%s1581_s26 + $0x618] sm:$0xff] }
  0x2d   : > { %245 = vst [vmem:[%s1589_s27 + $0x178] sm:$0xff] %v244_v47  ;;  %247 = vst [vmem:[%s1589_s27 + $0x180] sm:$0xff] %v246_v48  ;;  %v254_v52 = vld [vmem:[%s1581_s26 + $0x680] sm:$0xff]  ;;  %v256_v53 = vld [vmem:[%s1581_s26 + $0x688] sm:$0xff] }
  0x2e   : > { %249 = vst [vmem:[%s1589_s27 + $0x188] sm:$0xff] %v248_v49  ;;  %251 = vst [vmem:[%s1589_s27 + $0x190] sm:$0xff] %v250_v50  ;;  %v258_v54 = vld [vmem:[%s1581_s26 + $0x690] sm:$0xff]  ;;  %v260_v55 = vld [vmem:[%s1581_s26 + $0x698] sm:$0xff] }
  0x2f   : > { %253 = vst [vmem:[%s1589_s27 + $0x198] sm:$0xff] %v252_v51  ;;  %255 = vst [vmem:[%s1589_s27 + $0x1a0] sm:$0xff] %v254_v52  ;;  %v262_v56 = vld [vmem:[%s1581_s26 + $0x700] sm:$0xff]  ;;  %v264_v57 = vld [vmem:[%s1581_s26 + $0x708] sm:$0xff] }
  0x30   : > { %257 = vst [vmem:[%s1589_s27 + $0x1a8] sm:$0xff] %v256_v53  ;;  %259 = vst [vmem:[%s1589_s27 + $0x1b0] sm:$0xff] %v258_v54  ;;  %v266_v58 = vld [vmem:[%s1581_s26 + $0x710] sm:$0xff]  ;;  %v268_v59 = vld [vmem:[%s1581_s26 + $0x718] sm:$0xff] }
  0x31   : > { %261 = vst [vmem:[%s1589_s27 + $0x1b8] sm:$0xff] %v260_v55  ;;  %263 = vst [vmem:[%s1589_s27 + $0x1c0] sm:$0xff] %v262_v56  ;;  %v270_v60 = vld [vmem:[%s1581_s26 + $0x780] sm:$0xff]  ;;  %v272_v61 = vld [vmem:[%s1581_s26 + $0x788] sm:$0xff] }
  0x32   : > { %265 = vst [vmem:[%s1589_s27 + $0x1c8] sm:$0xff] %v264_v57  ;;  %267 = vst [vmem:[%s1589_s27 + $0x1d0] sm:$0xff] %v266_v58  ;;  %v274_v62 = vld [vmem:[%s1581_s26 + $0x790] sm:$0xff]  ;;  %v276_v63 = vld [vmem:[%s1581_s26 + $0x798] sm:$0xff] }
  0x33   : > { %269 = vst [vmem:[%s1589_s27 + $0x1d8] sm:$0xff] %v268_v59  ;;  %271 = vst [vmem:[%s1589_s27 + $0x1e0] sm:$0xff] %v270_v60  ;;  %v278_v0 = vld [vmem:[%s1581_s26 + $0x800] sm:$0xff]  ;;  %v280_v1 = vld [vmem:[%s1581_s26 + $0x808] sm:$0xff] }
  0x34   : > { %273 = vst [vmem:[%s1589_s27 + $0x1e8] sm:$0xff] %v272_v61  ;;  %275 = vst [vmem:[%s1589_s27 + $0x1f0] sm:$0xff] %v274_v62  ;;  %v282_v2 = vld [vmem:[%s1581_s26 + $0x810] sm:$0xff]  ;;  %v284_v3 = vld [vmem:[%s1581_s26 + $0x818] sm:$0xff] }
  0x35   : > { %277 = vst [vmem:[%s1589_s27 + $0x1f8] sm:$0xff] %v276_v63  ;;  %279 = vst [vmem:[%s1589_s27 + $0x200] sm:$0xff] %v278_v0  ;;  %v286_v4 = vld [vmem:[%s1581_s26 + $0x880] sm:$0xff]  ;;  %v288_v5 = vld [vmem:[%s1581_s26 + $0x888] sm:$0xff] }
  0x36   : > { %281 = vst [vmem:[%s1589_s27 + $0x208] sm:$0xff] %v280_v1  ;;  %283 = vst [vmem:[%s1589_s27 + $0x210] sm:$0xff] %v282_v2  ;;  %v290_v6 = vld [vmem:[%s1581_s26 + $0x890] sm:$0xff]  ;;  %v292_v7 = vld [vmem:[%s1581_s26 + $0x898] sm:$0xff] }
  0x37   : > { %285 = vst [vmem:[%s1589_s27 + $0x218] sm:$0xff] %v284_v3  ;;  %287 = vst [vmem:[%s1589_s27 + $0x220] sm:$0xff] %v286_v4  ;;  %v294_v8 = vld [vmem:[%s1581_s26 + $0x900] sm:$0xff]  ;;  %v296_v9 = vld [vmem:[%s1581_s26 + $0x908] sm:$0xff] }
  0x38   : > { %289 = vst [vmem:[%s1589_s27 + $0x228] sm:$0xff] %v288_v5  ;;  %291 = vst [vmem:[%s1589_s27 + $0x230] sm:$0xff] %v290_v6  ;;  %v298_v10 = vld [vmem:[%s1581_s26 + $0x910] sm:$0xff]  ;;  %v300_v11 = vld [vmem:[%s1581_s26 + $0x918] sm:$0xff] }
  0x39   : > { %293 = vst [vmem:[%s1589_s27 + $0x238] sm:$0xff] %v292_v7  ;;  %295 = vst [vmem:[%s1589_s27 + $0x240] sm:$0xff] %v294_v8  ;;  %v302_v12 = vld [vmem:[%s1581_s26 + $0x980] sm:$0xff]  ;;  %v304_v13 = vld [vmem:[%s1581_s26 + $0x988] sm:$0xff] }
  0x3a   : > { %297 = vst [vmem:[%s1589_s27 + $0x248] sm:$0xff] %v296_v9  ;;  %299 = vst [vmem:[%s1589_s27 + $0x250] sm:$0xff] %v298_v10  ;;  %v306_v14 = vld [vmem:[%s1581_s26 + $0x990] sm:$0xff]  ;;  %v308_v15 = vld [vmem:[%s1581_s26 + $0x998] sm:$0xff] }
  0x3b   : > { %301 = vst [vmem:[%s1589_s27 + $0x258] sm:$0xff] %v300_v11  ;;  %303 = vst [vmem:[%s1589_s27 + $0x260] sm:$0xff] %v302_v12  ;;  %v310_v16 = vld [vmem:[%s1581_s26 + $0xa00] sm:$0xff]  ;;  %v312_v17 = vld [vmem:[%s1581_s26 + $0xa08] sm:$0xff] }
  0x3c   : > { %305 = vst [vmem:[%s1589_s27 + $0x268] sm:$0xff] %v304_v13  ;;  %307 = vst [vmem:[%s1589_s27 + $0x270] sm:$0xff] %v306_v14  ;;  %v314_v18 = vld [vmem:[%s1581_s26 + $0xa10] sm:$0xff]  ;;  %v316_v19 = vld [vmem:[%s1581_s26 + $0xa18] sm:$0xff] }
  0x3d   : > { %309 = vst [vmem:[%s1589_s27 + $0x278] sm:$0xff] %v308_v15  ;;  %311 = vst [vmem:[%s1589_s27 + $0x280] sm:$0xff] %v310_v16  ;;  %v318_v20 = vld [vmem:[%s1581_s26 + $0xa80] sm:$0xff]  ;;  %v320_v21 = vld [vmem:[%s1581_s26 + $0xa88] sm:$0xff] }
  0x3e   : > { %313 = vst [vmem:[%s1589_s27 + $0x288] sm:$0xff] %v312_v17  ;;  %315 = vst [vmem:[%s1589_s27 + $0x290] sm:$0xff] %v314_v18  ;;  %v322_v22 = vld [vmem:[%s1581_s26 + $0xa90] sm:$0xff]  ;;  %v324_v23 = vld [vmem:[%s1581_s26 + $0xa98] sm:$0xff] }
  0x3f   : > { %317 = vst [vmem:[%s1589_s27 + $0x298] sm:$0xff] %v316_v19  ;;  %319 = vst [vmem:[%s1589_s27 + $0x2a0] sm:$0xff] %v318_v20  ;;  %v326_v24 = vld [vmem:[%s1581_s26 + $0xb00] sm:$0xff]  ;;  %v328_v25 = vld [vmem:[%s1581_s26 + $0xb08] sm:$0xff] }
  0x40   : > { %321 = vst [vmem:[%s1589_s27 + $0x2a8] sm:$0xff] %v320_v21  ;;  %323 = vst [vmem:[%s1589_s27 + $0x2b0] sm:$0xff] %v322_v22  ;;  %v330_v26 = vld [vmem:[%s1581_s26 + $0xb10] sm:$0xff]  ;;  %v332_v27 = vld [vmem:[%s1581_s26 + $0xb18] sm:$0xff] }
  0x41   : > { %325 = vst [vmem:[%s1589_s27 + $0x2b8] sm:$0xff] %v324_v23  ;;  %327 = vst [vmem:[%s1589_s27 + $0x2c0] sm:$0xff] %v326_v24  ;;  %v334_v28 = vld [vmem:[%s1581_s26 + $0xb80] sm:$0xff]  ;;  %v336_v29 = vld [vmem:[%s1581_s26 + $0xb88] sm:$0xff] }
  0x42   : > { %329 = vst [vmem:[%s1589_s27 + $0x2c8] sm:$0xff] %v328_v25  ;;  %331 = vst [vmem:[%s1589_s27 + $0x2d0] sm:$0xff] %v330_v26  ;;  %v338_v30 = vld [vmem:[%s1581_s26 + $0xb90] sm:$0xff]  ;;  %v340_v31 = vld [vmem:[%s1581_s26 + $0xb98] sm:$0xff] }
  0x43   : > { %333 = vst [vmem:[%s1589_s27 + $0x2d8] sm:$0xff] %v332_v27  ;;  %335 = vst [vmem:[%s1589_s27 + $0x2e0] sm:$0xff] %v334_v28  ;;  %v342_v32 = vld [vmem:[%s1581_s26 + $0xc00] sm:$0xff]  ;;  %v344_v33 = vld [vmem:[%s1581_s26 + $0xc08] sm:$0xff] }
  0x44   : > { %337 = vst [vmem:[%s1589_s27 + $0x2e8] sm:$0xff] %v336_v29  ;;  %339 = vst [vmem:[%s1589_s27 + $0x2f0] sm:$0xff] %v338_v30  ;;  %v346_v34 = vld [vmem:[%s1581_s26 + $0xc10] sm:$0xff]  ;;  %v348_v35 = vld [vmem:[%s1581_s26 + $0xc18] sm:$0xff] }
  0x45   : > { %341 = vst [vmem:[%s1589_s27 + $0x2f8] sm:$0xff] %v340_v31  ;;  %343 = vst [vmem:[%s1589_s27 + $0x300] sm:$0xff] %v342_v32  ;;  %v350_v36 = vld [vmem:[%s1581_s26 + $0xc80] sm:$0xff]  ;;  %v352_v37 = vld [vmem:[%s1581_s26 + $0xc88] sm:$0xff] }
  0x46   : > { %345 = vst [vmem:[%s1589_s27 + $0x308] sm:$0xff] %v344_v33  ;;  %347 = vst [vmem:[%s1589_s27 + $0x310] sm:$0xff] %v346_v34  ;;  %v354_v38 = vld [vmem:[%s1581_s26 + $0xc90] sm:$0xff]  ;;  %v356_v39 = vld [vmem:[%s1581_s26 + $0xc98] sm:$0xff] }
  0x47   : > { %349 = vst [vmem:[%s1589_s27 + $0x318] sm:$0xff] %v348_v35  ;;  %351 = vst [vmem:[%s1589_s27 + $0x320] sm:$0xff] %v350_v36  ;;  %v358_v40 = vld [vmem:[%s1581_s26 + $0xd00] sm:$0xff]  ;;  %v360_v41 = vld [vmem:[%s1581_s26 + $0xd08] sm:$0xff] }
  0x48   : > { %353 = vst [vmem:[%s1589_s27 + $0x328] sm:$0xff] %v352_v37  ;;  %355 = vst [vmem:[%s1589_s27 + $0x330] sm:$0xff] %v354_v38  ;;  %v362_v42 = vld [vmem:[%s1581_s26 + $0xd10] sm:$0xff]  ;;  %v364_v43 = vld [vmem:[%s1581_s26 + $0xd18] sm:$0xff] }
  0x49   : > { %357 = vst [vmem:[%s1589_s27 + $0x338] sm:$0xff] %v356_v39  ;;  %359 = vst [vmem:[%s1589_s27 + $0x340] sm:$0xff] %v358_v40  ;;  %v366_v44 = vld [vmem:[%s1581_s26 + $0xd80] sm:$0xff]  ;;  %v368_v45 = vld [vmem:[%s1581_s26 + $0xd88] sm:$0xff] }
  0x4a   : > { %361 = vst [vmem:[%s1589_s27 + $0x348] sm:$0xff] %v360_v41  ;;  %363 = vst [vmem:[%s1589_s27 + $0x350] sm:$0xff] %v362_v42  ;;  %v370_v46 = vld [vmem:[%s1581_s26 + $0xd90] sm:$0xff]  ;;  %v372_v47 = vld [vmem:[%s1581_s26 + $0xd98] sm:$0xff] }
  0x4b   : > { %365 = vst [vmem:[%s1589_s27 + $0x358] sm:$0xff] %v364_v43  ;;  %367 = vst [vmem:[%s1589_s27 + $0x360] sm:$0xff] %v366_v44  ;;  %v374_v48 = vld [vmem:[%s1581_s26 + $0xe00] sm:$0xff]  ;;  %v376_v49 = vld [vmem:[%s1581_s26 + $0xe08] sm:$0xff] }
  0x4c   : > { %369 = vst [vmem:[%s1589_s27 + $0x368] sm:$0xff] %v368_v45  ;;  %371 = vst [vmem:[%s1589_s27 + $0x370] sm:$0xff] %v370_v46  ;;  %v378_v50 = vld [vmem:[%s1581_s26 + $0xe10] sm:$0xff]  ;;  %v380_v51 = vld [vmem:[%s1581_s26 + $0xe18] sm:$0xff] }
  0x4d   : > { %373 = vst [vmem:[%s1589_s27 + $0x378] sm:$0xff] %v372_v47  ;;  %375 = vst [vmem:[%s1589_s27 + $0x380] sm:$0xff] %v374_v48  ;;  %v382_v52 = vld [vmem:[%s1581_s26 + $0xe80] sm:$0xff]  ;;  %v384_v53 = vld [vmem:[%s1581_s26 + $0xe88] sm:$0xff] }
  0x4e   : > { %377 = vst [vmem:[%s1589_s27 + $0x388] sm:$0xff] %v376_v49  ;;  %379 = vst [vmem:[%s1589_s27 + $0x390] sm:$0xff] %v378_v50  ;;  %v386_v54 = vld [vmem:[%s1581_s26 + $0xe90] sm:$0xff]  ;;  %v388_v55 = vld [vmem:[%s1581_s26 + $0xe98] sm:$0xff] }
  0x4f   : > { %381 = vst [vmem:[%s1589_s27 + $0x398] sm:$0xff] %v380_v51  ;;  %383 = vst [vmem:[%s1589_s27 + $0x3a0] sm:$0xff] %v382_v52  ;;  %v390_v56 = vld [vmem:[%s1581_s26 + $0xf00] sm:$0xff]  ;;  %v392_v57 = vld [vmem:[%s1581_s26 + $0xf08] sm:$0xff] }
  0x50   : > { %385 = vst [vmem:[%s1589_s27 + $0x3a8] sm:$0xff] %v384_v53  ;;  %387 = vst [vmem:[%s1589_s27 + $0x3b0] sm:$0xff] %v386_v54  ;;  %v394_v58 = vld [vmem:[%s1581_s26 + $0xf10] sm:$0xff]  ;;  %v396_v59 = vld [vmem:[%s1581_s26 + $0xf18] sm:$0xff] }
  0x51   : > { %389 = vst [vmem:[%s1589_s27 + $0x3b8] sm:$0xff] %v388_v55  ;;  %391 = vst [vmem:[%s1589_s27 + $0x3c0] sm:$0xff] %v390_v56  ;;  %v398_v60 = vld [vmem:[%s1581_s26 + $0xf80] sm:$0xff]  ;;  %v400_v61 = vld [vmem:[%s1581_s26 + $0xf88] sm:$0xff] }
  0x52   : > { %393 = vst [vmem:[%s1589_s27 + $0x3c8] sm:$0xff] %v392_v57  ;;  %395 = vst [vmem:[%s1589_s27 + $0x3d0] sm:$0xff] %v394_v58  ;;  %v402_v62 = vld [vmem:[%s1581_s26 + $0xf90] sm:$0xff]  ;;  %v404_v63 = vld [vmem:[%s1581_s26 + $0xf98] sm:$0xff] }
  0x53   : > { %397 = vst [vmem:[%s1589_s27 + $0x3d8] sm:$0xff] %v396_v59  ;;  %399 = vst [vmem:[%s1589_s27 + $0x3e0] sm:$0xff] %v398_v60  ;;  %v406_v0 = vld [vmem:[%s1581_s26 + $0x1000] sm:$0xff]  ;;  %v408_v1 = vld [vmem:[%s1581_s26 + $0x1008] sm:$0xff] }
  0x54   : > { %401 = vst [vmem:[%s1589_s27 + $0x3e8] sm:$0xff] %v400_v61  ;;  %403 = vst [vmem:[%s1589_s27 + $0x3f0] sm:$0xff] %v402_v62  ;;  %v410_v2 = vld [vmem:[%s1581_s26 + $0x1010] sm:$0xff]  ;;  %v412_v3 = vld [vmem:[%s1581_s26 + $0x1018] sm:$0xff] }
  0x55   : > { %405 = vst [vmem:[%s1589_s27 + $0x3f8] sm:$0xff] %v404_v63  ;;  %407 = vst [vmem:[%s1589_s27 + $0x400] sm:$0xff] %v406_v0  ;;  %v414_v4 = vld [vmem:[%s1581_s26 + $0x1080] sm:$0xff]  ;;  %v416_v5 = vld [vmem:[%s1581_s26 + $0x1088] sm:$0xff] }
  0x56   : > { %409 = vst [vmem:[%s1589_s27 + $0x408] sm:$0xff] %v408_v1  ;;  %411 = vst [vmem:[%s1589_s27 + $0x410] sm:$0xff] %v410_v2  ;;  %v418_v6 = vld [vmem:[%s1581_s26 + $0x1090] sm:$0xff]  ;;  %v420_v7 = vld [vmem:[%s1581_s26 + $0x1098] sm:$0xff] }
  0x57   : > { %413 = vst [vmem:[%s1589_s27 + $0x418] sm:$0xff] %v412_v3  ;;  %415 = vst [vmem:[%s1589_s27 + $0x420] sm:$0xff] %v414_v4  ;;  %v422_v8 = vld [vmem:[%s1581_s26 + $0x1100] sm:$0xff]  ;;  %v424_v9 = vld [vmem:[%s1581_s26 + $0x1108] sm:$0xff] }
  0x58   : > { %417 = vst [vmem:[%s1589_s27 + $0x428] sm:$0xff] %v416_v5  ;;  %419 = vst [vmem:[%s1589_s27 + $0x430] sm:$0xff] %v418_v6  ;;  %v426_v10 = vld [vmem:[%s1581_s26 + $0x1110] sm:$0xff]  ;;  %v428_v11 = vld [vmem:[%s1581_s26 + $0x1118] sm:$0xff] }
  0x59   : > { %421 = vst [vmem:[%s1589_s27 + $0x438] sm:$0xff] %v420_v7  ;;  %423 = vst [vmem:[%s1589_s27 + $0x440] sm:$0xff] %v422_v8  ;;  %v430_v12 = vld [vmem:[%s1581_s26 + $0x1180] sm:$0xff]  ;;  %v432_v13 = vld [vmem:[%s1581_s26 + $0x1188] sm:$0xff] }
  0x5a   : > { %425 = vst [vmem:[%s1589_s27 + $0x448] sm:$0xff] %v424_v9  ;;  %427 = vst [vmem:[%s1589_s27 + $0x450] sm:$0xff] %v426_v10  ;;  %v434_v14 = vld [vmem:[%s1581_s26 + $0x1190] sm:$0xff]  ;;  %v436_v15 = vld [vmem:[%s1581_s26 + $0x1198] sm:$0xff] }
  0x5b   : > { %429 = vst [vmem:[%s1589_s27 + $0x458] sm:$0xff] %v428_v11  ;;  %431 = vst [vmem:[%s1589_s27 + $0x460] sm:$0xff] %v430_v12  ;;  %v438_v16 = vld [vmem:[%s1581_s26 + $0x1200] sm:$0xff]  ;;  %v440_v17 = vld [vmem:[%s1581_s26 + $0x1208] sm:$0xff] }
  0x5c   : > { %433 = vst [vmem:[%s1589_s27 + $0x468] sm:$0xff] %v432_v13  ;;  %435 = vst [vmem:[%s1589_s27 + $0x470] sm:$0xff] %v434_v14  ;;  %v442_v18 = vld [vmem:[%s1581_s26 + $0x1210] sm:$0xff]  ;;  %v444_v19 = vld [vmem:[%s1581_s26 + $0x1218] sm:$0xff] }
  0x5d   : > { %437 = vst [vmem:[%s1589_s27 + $0x478] sm:$0xff] %v436_v15  ;;  %439 = vst [vmem:[%s1589_s27 + $0x480] sm:$0xff] %v438_v16  ;;  %v446_v20 = vld [vmem:[%s1581_s26 + $0x1280] sm:$0xff]  ;;  %v448_v21 = vld [vmem:[%s1581_s26 + $0x1288] sm:$0xff] }
  0x5e   : > { %441 = vst [vmem:[%s1589_s27 + $0x488] sm:$0xff] %v440_v17  ;;  %443 = vst [vmem:[%s1589_s27 + $0x490] sm:$0xff] %v442_v18  ;;  %v450_v22 = vld [vmem:[%s1581_s26 + $0x1290] sm:$0xff]  ;;  %v452_v23 = vld [vmem:[%s1581_s26 + $0x1298] sm:$0xff] }
  0x5f   : > { %445 = vst [vmem:[%s1589_s27 + $0x498] sm:$0xff] %v444_v19  ;;  %447 = vst [vmem:[%s1589_s27 + $0x4a0] sm:$0xff] %v446_v20  ;;  %v454_v24 = vld [vmem:[%s1581_s26 + $0x1300] sm:$0xff]  ;;  %v456_v25 = vld [vmem:[%s1581_s26 + $0x1308] sm:$0xff] }
  0x60   : > { %449 = vst [vmem:[%s1589_s27 + $0x4a8] sm:$0xff] %v448_v21  ;;  %451 = vst [vmem:[%s1589_s27 + $0x4b0] sm:$0xff] %v450_v22  ;;  %v458_v26 = vld [vmem:[%s1581_s26 + $0x1310] sm:$0xff]  ;;  %v460_v27 = vld [vmem:[%s1581_s26 + $0x1318] sm:$0xff] }
  0x61   : > { %453 = vst [vmem:[%s1589_s27 + $0x4b8] sm:$0xff] %v452_v23  ;;  %455 = vst [vmem:[%s1589_s27 + $0x4c0] sm:$0xff] %v454_v24  ;;  %v462_v28 = vld [vmem:[%s1581_s26 + $0x1380] sm:$0xff]  ;;  %v464_v29 = vld [vmem:[%s1581_s26 + $0x1388] sm:$0xff] }
  0x62   : > { %457 = vst [vmem:[%s1589_s27 + $0x4c8] sm:$0xff] %v456_v25  ;;  %459 = vst [vmem:[%s1589_s27 + $0x4d0] sm:$0xff] %v458_v26  ;;  %v466_v30 = vld [vmem:[%s1581_s26 + $0x1390] sm:$0xff]  ;;  %v468_v31 = vld [vmem:[%s1581_s26 + $0x1398] sm:$0xff] }
  0x63   : > { %461 = vst [vmem:[%s1589_s27 + $0x4d8] sm:$0xff] %v460_v27  ;;  %463 = vst [vmem:[%s1589_s27 + $0x4e0] sm:$0xff] %v462_v28  ;;  %v470_v32 = vld [vmem:[%s1581_s26 + $0x1400] sm:$0xff]  ;;  %v472_v33 = vld [vmem:[%s1581_s26 + $0x1408] sm:$0xff] }
  0x64   : > { %465 = vst [vmem:[%s1589_s27 + $0x4e8] sm:$0xff] %v464_v29  ;;  %467 = vst [vmem:[%s1589_s27 + $0x4f0] sm:$0xff] %v466_v30  ;;  %v474_v34 = vld [vmem:[%s1581_s26 + $0x1410] sm:$0xff]  ;;  %v476_v35 = vld [vmem:[%s1581_s26 + $0x1418] sm:$0xff] }
  0x65   : > { %469 = vst [vmem:[%s1589_s27 + $0x4f8] sm:$0xff] %v468_v31  ;;  %471 = vst [vmem:[%s1589_s27 + $0x500] sm:$0xff] %v470_v32  ;;  %v478_v36 = vld [vmem:[%s1581_s26 + $0x1480] sm:$0xff]  ;;  %v480_v37 = vld [vmem:[%s1581_s26 + $0x1488] sm:$0xff] }
  0x66   : > { %473 = vst [vmem:[%s1589_s27 + $0x508] sm:$0xff] %v472_v33  ;;  %475 = vst [vmem:[%s1589_s27 + $0x510] sm:$0xff] %v474_v34  ;;  %v482_v38 = vld [vmem:[%s1581_s26 + $0x1490] sm:$0xff]  ;;  %v484_v39 = vld [vmem:[%s1581_s26 + $0x1498] sm:$0xff] }
  0x67   : > { %477 = vst [vmem:[%s1589_s27 + $0x518] sm:$0xff] %v476_v35  ;;  %479 = vst [vmem:[%s1589_s27 + $0x520] sm:$0xff] %v478_v36  ;;  %v486_v40 = vld [vmem:[%s1581_s26 + $0x1500] sm:$0xff]  ;;  %v488_v41 = vld [vmem:[%s1581_s26 + $0x1508] sm:$0xff] }
  0x68   : > { %481 = vst [vmem:[%s1589_s27 + $0x528] sm:$0xff] %v480_v37  ;;  %483 = vst [vmem:[%s1589_s27 + $0x530] sm:$0xff] %v482_v38  ;;  %v490_v42 = vld [vmem:[%s1581_s26 + $0x1510] sm:$0xff]  ;;  %v492_v43 = vld [vmem:[%s1581_s26 + $0x1518] sm:$0xff] }
  0x69   : > { %485 = vst [vmem:[%s1589_s27 + $0x538] sm:$0xff] %v484_v39  ;;  %487 = vst [vmem:[%s1589_s27 + $0x540] sm:$0xff] %v486_v40  ;;  %v494_v44 = vld [vmem:[%s1581_s26 + $0x1580] sm:$0xff]  ;;  %v496_v45 = vld [vmem:[%s1581_s26 + $0x1588] sm:$0xff] }
  0x6a   : > { %489 = vst [vmem:[%s1589_s27 + $0x548] sm:$0xff] %v488_v41  ;;  %491 = vst [vmem:[%s1589_s27 + $0x550] sm:$0xff] %v490_v42  ;;  %v498_v46 = vld [vmem:[%s1581_s26 + $0x1590] sm:$0xff]  ;;  %v500_v47 = vld [vmem:[%s1581_s26 + $0x1598] sm:$0xff] }
  0x6b   : > { %493 = vst [vmem:[%s1589_s27 + $0x558] sm:$0xff] %v492_v43  ;;  %495 = vst [vmem:[%s1589_s27 + $0x560] sm:$0xff] %v494_v44  ;;  %v502_v48 = vld [vmem:[%s1581_s26 + $0x1600] sm:$0xff]  ;;  %v504_v49 = vld [vmem:[%s1581_s26 + $0x1608] sm:$0xff] }
  0x6c   : > { %497 = vst [vmem:[%s1589_s27 + $0x568] sm:$0xff] %v496_v45  ;;  %499 = vst [vmem:[%s1589_s27 + $0x570] sm:$0xff] %v498_v46  ;;  %v506_v50 = vld [vmem:[%s1581_s26 + $0x1610] sm:$0xff]  ;;  %v508_v51 = vld [vmem:[%s1581_s26 + $0x1618] sm:$0xff] }
  0x6d   : > { %501 = vst [vmem:[%s1589_s27 + $0x578] sm:$0xff] %v500_v47  ;;  %503 = vst [vmem:[%s1589_s27 + $0x580] sm:$0xff] %v502_v48  ;;  %v510_v52 = vld [vmem:[%s1581_s26 + $0x1680] sm:$0xff]  ;;  %v512_v53 = vld [vmem:[%s1581_s26 + $0x1688] sm:$0xff] }
  0x6e   : > { %505 = vst [vmem:[%s1589_s27 + $0x588] sm:$0xff] %v504_v49  ;;  %507 = vst [vmem:[%s1589_s27 + $0x590] sm:$0xff] %v506_v50  ;;  %v514_v54 = vld [vmem:[%s1581_s26 + $0x1690] sm:$0xff]  ;;  %v516_v55 = vld [vmem:[%s1581_s26 + $0x1698] sm:$0xff] }
  0x6f   : > { %509 = vst [vmem:[%s1589_s27 + $0x598] sm:$0xff] %v508_v51  ;;  %511 = vst [vmem:[%s1589_s27 + $0x5a0] sm:$0xff] %v510_v52  ;;  %v518_v56 = vld [vmem:[%s1581_s26 + $0x1700] sm:$0xff]  ;;  %v520_v57 = vld [vmem:[%s1581_s26 + $0x1708] sm:$0xff] }
  0x70   : > { %513 = vst [vmem:[%s1589_s27 + $0x5a8] sm:$0xff] %v512_v53  ;;  %515 = vst [vmem:[%s1589_s27 + $0x5b0] sm:$0xff] %v514_v54  ;;  %v522_v58 = vld [vmem:[%s1581_s26 + $0x1710] sm:$0xff]  ;;  %v524_v59 = vld [vmem:[%s1581_s26 + $0x1718] sm:$0xff] }
  0x71   : > { %517 = vst [vmem:[%s1589_s27 + $0x5b8] sm:$0xff] %v516_v55  ;;  %519 = vst [vmem:[%s1589_s27 + $0x5c0] sm:$0xff] %v518_v56  ;;  %v526_v60 = vld [vmem:[%s1581_s26 + $0x1780] sm:$0xff]  ;;  %v528_v61 = vld [vmem:[%s1581_s26 + $0x1788] sm:$0xff] }
  0x72   : > { %521 = vst [vmem:[%s1589_s27 + $0x5c8] sm:$0xff] %v520_v57  ;;  %523 = vst [vmem:[%s1589_s27 + $0x5d0] sm:$0xff] %v522_v58  ;;  %v530_v62 = vld [vmem:[%s1581_s26 + $0x1790] sm:$0xff]  ;;  %v532_v63 = vld [vmem:[%s1581_s26 + $0x1798] sm:$0xff] }
  0x73   : > { %525 = vst [vmem:[%s1589_s27 + $0x5d8] sm:$0xff] %v524_v59  ;;  %527 = vst [vmem:[%s1589_s27 + $0x5e0] sm:$0xff] %v526_v60  ;;  %v534_v0 = vld [vmem:[%s1581_s26 + $0x1800] sm:$0xff]  ;;  %v536_v1 = vld [vmem:[%s1581_s26 + $0x1808] sm:$0xff] }
  0x74   : > { %529 = vst [vmem:[%s1589_s27 + $0x5e8] sm:$0xff] %v528_v61  ;;  %531 = vst [vmem:[%s1589_s27 + $0x5f0] sm:$0xff] %v530_v62  ;;  %v538_v2 = vld [vmem:[%s1581_s26 + $0x1810] sm:$0xff]  ;;  %v540_v3 = vld [vmem:[%s1581_s26 + $0x1818] sm:$0xff] }
  0x75   : > { %533 = vst [vmem:[%s1589_s27 + $0x5f8] sm:$0xff] %v532_v63  ;;  %535 = vst [vmem:[%s1589_s27 + $0x600] sm:$0xff] %v534_v0  ;;  %v542_v4 = vld [vmem:[%s1581_s26 + $0x1880] sm:$0xff]  ;;  %v544_v5 = vld [vmem:[%s1581_s26 + $0x1888] sm:$0xff] }
  0x76   : > { %537 = vst [vmem:[%s1589_s27 + $0x608] sm:$0xff] %v536_v1  ;;  %539 = vst [vmem:[%s1589_s27 + $0x610] sm:$0xff] %v538_v2  ;;  %v546_v6 = vld [vmem:[%s1581_s26 + $0x1890] sm:$0xff]  ;;  %v548_v7 = vld [vmem:[%s1581_s26 + $0x1898] sm:$0xff] }
  0x77   : > { %541 = vst [vmem:[%s1589_s27 + $0x618] sm:$0xff] %v540_v3  ;;  %543 = vst [vmem:[%s1589_s27 + $0x620] sm:$0xff] %v542_v4 }
  0x78   : > { %545 = vst [vmem:[%s1589_s27 + $0x628] sm:$0xff] %v544_v5  ;;  %547 = vst [vmem:[%s1589_s27 + $0x630] sm:$0xff] %v546_v6 }
  0x79   : > { %549 = vst [vmem:[%s1589_s27 + $0x638] sm:$0xff] %v548_v7 }
  0x7a PF: > { %p1239_p7 = scmp.ge.s32.totalorder %s1518_s14, 1  ;;  %p554_p8 = scmp.lt.s32.totalorder %s1518_s14, 5 }
  0x7c   : > { %p555_p9 = pnand %p1239_p7, %p554_p8 }
  0x7d   : > { %s561_s28 = sand.u32 (!%p555_p9), 1, %s1510_s12   ;;  %v586_v8 = vld [vmem:[%s2263_s0 + $0x8] sm:$0xff] (!%p555_p9)  ;;  %v1520_v9 = vmov (!%p555_p9), 0   ;;  %v793_v10 = vld [vmem:[%s2265_s2] sm:$0xff] (!%p555_p9)  ;;  %vm805_vm0 = vcmask (!%p555_p9), 130048  }
  0x7e   : > { %558 = sbr.rel (%p555_p9) target bundleno = 465 (0x1d1), region = 51  ;;  %876 = vmatprep.mubr.f32.mxu0 (!%p555_p9), %v586_v8  ;;  %1030 = vmatprep.mubr.f32.mxu1 (!%p555_p9), %v586_v8  ;;  %v794_v11 = vld [vmem:[%s2265_s2 + $0x8] sm:$0xff] (!%p555_p9)  ;;  %s1240_s5 = sshll.u32 (!%p555_p9), %s561_s28, 6 }
  0x7f   : > { %s1469_s4 = smul.u32 (!%p555_p9), 1600, %s561_s28  ;;  %1495 = vset.pattern.permute.xlu0 (!%p555_p9), %v1520_v9  ;;  %s2228_s6 = scalar_lea.vmem (!%p555_p9), [#allocation3], %s1240_s5 }
  0x80   : > { %797 = vperm.xlu0 (!%p555_p9), %1495, %v793_v10  }
  0x81   : > { %s1999_s9 = scalar_lea.vmem (!%p555_p9), [#allocation2], %s1469_s4 }
  0x82   : > { %v594_v12 = vld [vmem:[%s1999_s9 + $0x8] sm:$0xff] (!%p555_p9)  ;;  %v596_v14 = vld [vmem:[%s1999_s9 + $0x18] sm:$0xff] (!%p555_p9)  ;;  %v593_v17 = vld [vmem:[%s1999_s9] sm:$0xff] (!%p555_p9) }
  0x83   : > { %v598_v13 = vld [vmem:[%s1999_s9 + $0x28] sm:$0xff] (!%p555_p9)  ;;  %v600_v16 = vld [vmem:[%s1999_s9 + $0x38] sm:$0xff] (!%p555_p9)  ;;  %v597_v18 = vld [vmem:[%s1999_s9 + $0x20] sm:$0xff] (!%p555_p9) }
  0x84   : > { %v1252_v15 = vpack.c.bf16 (!%p555_p9), %v598_v13, %v594_v12  ;;  %v1352_v19 = vpack.c.bf16 (!%p555_p9), %v600_v16, %v596_v14  ;;  %v1254_v20 = vpack.c.bf16 (!%p555_p9), %v597_v18, %v593_v17  ;;  %v595_v21 = vld [vmem:[%s1999_s9 + $0x10] sm:$0xff] (!%p555_p9)  ;;  %v602_v23 = vld [vmem:[%s1999_s9 + $0x48] sm:$0xff] (!%p555_p9)  ;;  %v604_v26 = vld [vmem:[%s1999_s9 + $0x58] sm:$0xff] (!%p555_p9)  ;;  %802 = vperm.xlu0 (!%p555_p9), %1495, %v794_v11  }
  0x85   : > { %v599_v22 = vld [vmem:[%s1999_s9 + $0x30] sm:$0xff]  ;;  %v606_v25 = vld [vmem:[%s1999_s9 + $0x68] sm:$0xff]  ;;  %v608_v27 = vld [vmem:[%s1999_s9 + $0x78] sm:$0xff]  ;;  %s1251_s12 = sshll.u32 (%p1571_p5), %s1233_s15, 5 }
  0x86   : > { %1253 = vmatprep.subr.bf16.mxu0 %v1252_v15  ;;  %v1354_v24 = vpack.c.bf16 %v599_v22, %v595_v21  ;;  %1353 = vmatprep.subr.bf16.mxu1 %v1352_v19  ;;  %v1256_v28 = vpack.c.bf16 %v606_v25, %v602_v23  ;;  %v1356_v29 = vpack.c.bf16 %v608_v27, %v604_v26  ;;  %v601_v30 = vld [vmem:[%s1999_s9 + $0x40] sm:$0xff]  ;;  %v603_v32 = vld [vmem:[%s1999_s9 + $0x50] sm:$0xff]  ;;  %v610_v35 = vld [vmem:[%s1999_s9 + $0x88] sm:$0xff]  ;;  %s1145_s8 = scalar_lea.vmem (%p1571_p5), %s2266_s3, %s1251_s12 }
  0x87   : > { %1255 = vmatpush1.bf16.msra.mxu0 %v1254_v20  ;;  %v605_v31 = vld [vmem:[%s1999_s9 + $0x60] sm:$0xff]  ;;  %v607_v34 = vld [vmem:[%s1999_s9 + $0x70] sm:$0xff]  ;;  %v614_v36 = vld [vmem:[%s1999_s9 + $0xa8] sm:$0xff] }
  0x88   : > { %1355 = vmatpush1.bf16.msra.mxu1 %v1354_v24  ;;  %v1258_v33 = vpack.c.bf16 %v605_v31, %v601_v30  ;;  %1257 = vmatprep.subr.bf16.mxu0 %v1256_v28  ;;  %v1358_v37 = vpack.c.bf16 %v607_v34, %v603_v32  ;;  %v1260_v38 = vpack.c.bf16 %v614_v36, %v610_v35  ;;  %v612_v39 = vld [vmem:[%s1999_s9 + $0x98] sm:$0xff]  ;;  %v609_v41 = vld [vmem:[%s1999_s9 + $0x80] sm:$0xff]  ;;  %v611_v44 = vld [vmem:[%s1999_s9 + $0x90] sm:$0xff] }
  0x89   : > { %1357 = vmatprep.subr.bf16.mxu1 %v1356_v29  ;;  %v616_v40 = vld [vmem:[%s1999_s9 + $0xb8] sm:$0xff]  ;;  %v613_v43 = vld [vmem:[%s1999_s9 + $0xa0] sm:$0xff]  ;;  %v615_v45 = vld [vmem:[%s1999_s9 + $0xb0] sm:$0xff] }
  0x8a   : > { %v1360_v42 = vpack.c.bf16 %v616_v40, %v612_v39  ;;  %v1262_v46 = vpack.c.bf16 %v613_v43, %v609_v41  ;;  %v618_v47 = vld [vmem:[%s1999_s9 + $0xc8] sm:$0xff]  ;;  %v620_v49 = vld [vmem:[%s1999_s9 + $0xd8] sm:$0xff]  ;;  %v1362_v50 = vpack.c.bf16 %v615_v45, %v611_v44  ;;  %v617_v53 = vld [vmem:[%s1999_s9 + $0xc0] sm:$0xff] }
  0x8b   : > { %1259 = vmatpush1.bf16.msra.mxu0 %v1258_v33  ;;  %v622_v48 = vld [vmem:[%s1999_s9 + $0xe8] sm:$0xff]  ;;  %v624_v52 = vld [vmem:[%s1999_s9 + $0xf8] sm:$0xff]  ;;  %v621_v54 = vld [vmem:[%s1999_s9 + $0xe0] sm:$0xff] }
  0x8c   : > { %1359 = vmatpush1.bf16.msra.mxu1 %v1358_v37  ;;  %1261 = vmatprep.subr.bf16.mxu0 %v1260_v38  ;;  %v1264_v51 = vpack.c.bf16 %v622_v48, %v618_v47  ;;  %v1364_v55 = vpack.c.bf16 %v624_v52, %v620_v49  ;;  %v619_v56 = vld [vmem:[%s1999_s9 + $0xd0] sm:$0xff]  ;;  %v626_v58 = vld [vmem:[%s1999_s9 + $0x108] sm:$0xff]  ;;  %v628_v60 = vld [vmem:[%s1999_s9 + $0x118] sm:$0xff]  ;;  %v1266_v62 = vpack.c.bf16 %v621_v54, %v617_v53 }
  0x8d   : > { %1361 = vmatprep.subr.bf16.mxu1 %v1360_v42  ;;  %v623_v57 = vld [vmem:[%s1999_s9 + $0xf0] sm:$0xff]  ;;  %v630_v59 = vld [vmem:[%s1999_s9 + $0x128] sm:$0xff]  ;;  %v632_v61 = vld [vmem:[%s1999_s9 + $0x138] sm:$0xff] }
  0x8e   : > { %v1366_v63 = vpack.c.bf16 %v623_v57, %v619_v56  ;;  %v1268_v0 = vpack.c.bf16 %v630_v59, %v626_v58  ;;  %v625_v1 = vld [vmem:[%s1999_s9 + $0x100] sm:$0xff]  ;;  %v627_v3 = vld [vmem:[%s1999_s9 + $0x110] sm:$0xff]  ;;  %v1368_v4 = vpack.c.bf16 %v632_v61, %v628_v60  ;;  %v634_v6 = vld [vmem:[%s1999_s9 + $0x148] sm:$0xff] }
  0x8f   : > { %1263 = vmatpush1.bf16.msra.mxu0 %v1262_v46  ;;  %v629_v2 = vld [vmem:[%s1999_s9 + $0x120] sm:$0xff]  ;;  %v631_v5 = vld [vmem:[%s1999_s9 + $0x130] sm:$0xff]  ;;  %v638_v7 = vld [vmem:[%s1999_s9 + $0x168] sm:$0xff] }
  0x90   : > { %1363 = vmatpush1.bf16.msra.mxu1 %v1362_v50  ;;  %1265 = vmatprep.subr.bf16.mxu0 %v1264_v51  ;;  %v636_v8 = vld [vmem:[%s1999_s9 + $0x158] sm:$0xff]  ;;  %v1270_v10 = vpack.c.bf16 %v629_v2, %v625_v1  ;;  %v1370_v11 = vpack.c.bf16 %v631_v5, %v627_v3  ;;  %v1272_v12 = vpack.c.bf16 %v638_v7, %v634_v6  ;;  %v633_v13 = vld [vmem:[%s1999_s9 + $0x140] sm:$0xff]  ;;  %v635_v15 = vld [vmem:[%s1999_s9 + $0x150] sm:$0xff] }
  0x91   : > { %1365 = vmatprep.subr.bf16.mxu1 %v1364_v55  ;;  %v640_v9 = vld [vmem:[%s1999_s9 + $0x178] sm:$0xff]  ;;  %v637_v14 = vld [vmem:[%s1999_s9 + $0x160] sm:$0xff]  ;;  %v639_v17 = vld [vmem:[%s1999_s9 + $0x170] sm:$0xff] }
  0x92   : > { %v1372_v16 = vpack.c.bf16 %v640_v9, %v636_v8  ;;  %v642_v18 = vld [vmem:[%s1999_s9 + $0x188] sm:$0xff]  ;;  %v644_v20 = vld [vmem:[%s1999_s9 + $0x198] sm:$0xff]  ;;  %v1274_v22 = vpack.c.bf16 %v637_v14, %v633_v13  ;;  %v1374_v23 = vpack.c.bf16 %v639_v17, %v635_v15  ;;  %v641_v25 = vld [vmem:[%s1999_s9 + $0x180] sm:$0xff] }
  0x93   : > { %1267 = vmatpush1.bf16.msra.mxu0 %v1266_v62  ;;  %v646_v19 = vld [vmem:[%s1999_s9 + $0x1a8] sm:$0xff]  ;;  %v648_v21 = vld [vmem:[%s1999_s9 + $0x1b8] sm:$0xff]  ;;  %v645_v26 = vld [vmem:[%s1999_s9 + $0x1a0] sm:$0xff] }
  0x94   : > { %1367 = vmatpush1.bf16.msra.mxu1 %v1366_v63  ;;  %1269 = vmatprep.subr.bf16.mxu0 %v1268_v0  ;;  %v1276_v24 = vpack.c.bf16 %v646_v19, %v642_v18  ;;  %v643_v27 = vld [vmem:[%s1999_s9 + $0x190] sm:$0xff]  ;;  %v1376_v28 = vpack.c.bf16 %v648_v21, %v644_v20  ;;  %v650_v30 = vld [vmem:[%s1999_s9 + $0x1c8] sm:$0xff]  ;;  %v652_v32 = vld [vmem:[%s1999_s9 + $0x1d8] sm:$0xff]  ;;  %v1278_v34 = vpack.c.bf16 %v645_v26, %v641_v25 }
  0x95   : > { %1369 = vmatprep.subr.bf16.mxu1 %v1368_v4  ;;  %v647_v29 = vld [vmem:[%s1999_s9 + $0x1b0] sm:$0xff]  ;;  %v654_v31 = vld [vmem:[%s1999_s9 + $0x1e8] sm:$0xff]  ;;  %v656_v33 = vld [vmem:[%s1999_s9 + $0x1f8] sm:$0xff] }
  0x96   : > { %v1378_v35 = vpack.c.bf16 %v647_v29, %v643_v27  ;;  %v1280_v36 = vpack.c.bf16 %v654_v31, %v650_v30  ;;  %v649_v37 = vld [vmem:[%s1999_s9 + $0x1c0] sm:$0xff]  ;;  %v651_v39 = vld [vmem:[%s1999_s9 + $0x1d0] sm:$0xff]  ;;  %v1380_v40 = vpack.c.bf16 %v656_v33, %v652_v32  ;;  %v658_v42 = vld [vmem:[%s1999_s9 + $0x208] sm:$0xff] }
  0x97   : > { %1271 = vmatpush1.bf16.msra.mxu0 %v1270_v10  ;;  %v653_v38 = vld [vmem:[%s1999_s9 + $0x1e0] sm:$0xff]  ;;  %v655_v41 = vld [vmem:[%s1999_s9 + $0x1f0] sm:$0xff]  ;;  %v662_v43 = vld [vmem:[%s1999_s9 + $0x228] sm:$0xff] }
  0x98   : > { %1371 = vmatpush1.bf16.msra.mxu1 %v1370_v11  ;;  %1273 = vmatprep.subr.bf16.mxu0 %v1272_v12  ;;  %v660_v44 = vld [vmem:[%s1999_s9 + $0x218] sm:$0xff]  ;;  %v1282_v46 = vpack.c.bf16 %v653_v38, %v649_v37  ;;  %v1382_v47 = vpack.c.bf16 %v655_v41, %v651_v39  ;;  %v1284_v48 = vpack.c.bf16 %v662_v43, %v658_v42  ;;  %v657_v49 = vld [vmem:[%s1999_s9 + $0x200] sm:$0xff]  ;;  %v659_v51 = vld [vmem:[%s1999_s9 + $0x210] sm:$0xff] }
  0x99   : > { %1373 = vmatprep.subr.bf16.mxu1 %v1372_v16  ;;  %v664_v45 = vld [vmem:[%s1999_s9 + $0x238] sm:$0xff]  ;;  %v661_v50 = vld [vmem:[%s1999_s9 + $0x220] sm:$0xff]  ;;  %v663_v53 = vld [vmem:[%s1999_s9 + $0x230] sm:$0xff] }
  0x9a   : > { %v1384_v52 = vpack.c.bf16 %v664_v45, %v660_v44  ;;  %v666_v54 = vld [vmem:[%s1999_s9 + $0x248] sm:$0xff]  ;;  %v668_v56 = vld [vmem:[%s1999_s9 + $0x258] sm:$0xff]  ;;  %v1286_v58 = vpack.c.bf16 %v661_v50, %v657_v49  ;;  %v1386_v59 = vpack.c.bf16 %v663_v53, %v659_v51  ;;  %v665_v61 = vld [vmem:[%s1999_s9 + $0x240] sm:$0xff] }
  0x9b   : > { %1275 = vmatpush1.bf16.msra.mxu0 %v1274_v22  ;;  %v670_v55 = vld [vmem:[%s1999_s9 + $0x268] sm:$0xff]  ;;  %v672_v57 = vld [vmem:[%s1999_s9 + $0x278] sm:$0xff]  ;;  %v669_v62 = vld [vmem:[%s1999_s9 + $0x260] sm:$0xff] }
  0x9c   : > { %1375 = vmatpush1.bf16.msra.mxu1 %v1374_v23  ;;  %1277 = vmatprep.subr.bf16.mxu0 %v1276_v24  ;;  %v1288_v60 = vpack.c.bf16 %v670_v55, %v666_v54  ;;  %v667_v63 = vld [vmem:[%s1999_s9 + $0x250] sm:$0xff]  ;;  %v1388_v0 = vpack.c.bf16 %v672_v57, %v668_v56  ;;  %v674_v2 = vld [vmem:[%s1999_s9 + $0x288] sm:$0xff]  ;;  %v676_v4 = vld [vmem:[%s1999_s9 + $0x298] sm:$0xff]  ;;  %v1290_v6 = vpack.c.bf16 %v669_v62, %v665_v61 }
  0x9d   : > { %1377 = vmatprep.subr.bf16.mxu1 %v1376_v28  ;;  %v671_v1 = vld [vmem:[%s1999_s9 + $0x270] sm:$0xff]  ;;  %v678_v3 = vld [vmem:[%s1999_s9 + $0x2a8] sm:$0xff]  ;;  %v680_v5 = vld [vmem:[%s1999_s9 + $0x2b8] sm:$0xff] }
  0x9e   : > { %v1390_v7 = vpack.c.bf16 %v671_v1, %v667_v63  ;;  %v1292_v8 = vpack.c.bf16 %v678_v3, %v674_v2  ;;  %v673_v9 = vld [vmem:[%s1999_s9 + $0x280] sm:$0xff]  ;;  %v675_v11 = vld [vmem:[%s1999_s9 + $0x290] sm:$0xff]  ;;  %v1392_v12 = vpack.c.bf16 %v680_v5, %v676_v4  ;;  %v682_v14 = vld [vmem:[%s1999_s9 + $0x2c8] sm:$0xff] }
  0x9f   : > { %1279 = vmatpush1.bf16.msra.mxu0 %v1278_v34  ;;  %v677_v10 = vld [vmem:[%s1999_s9 + $0x2a0] sm:$0xff]  ;;  %v679_v13 = vld [vmem:[%s1999_s9 + $0x2b0] sm:$0xff]  ;;  %v686_v15 = vld [vmem:[%s1999_s9 + $0x2e8] sm:$0xff] }
  0xa0   : > { %1379 = vmatpush1.bf16.msra.mxu1 %v1378_v35  ;;  %1281 = vmatprep.subr.bf16.mxu0 %v1280_v36  ;;  %v684_v16 = vld [vmem:[%s1999_s9 + $0x2d8] sm:$0xff]  ;;  %v1294_v18 = vpack.c.bf16 %v677_v10, %v673_v9  ;;  %v1394_v19 = vpack.c.bf16 %v679_v13, %v675_v11  ;;  %v1296_v20 = vpack.c.bf16 %v686_v15, %v682_v14  ;;  %v681_v21 = vld [vmem:[%s1999_s9 + $0x2c0] sm:$0xff]  ;;  %v683_v23 = vld [vmem:[%s1999_s9 + $0x2d0] sm:$0xff] }
  0xa1   : > { %1381 = vmatprep.subr.bf16.mxu1 %v1380_v40  ;;  %v688_v17 = vld [vmem:[%s1999_s9 + $0x2f8] sm:$0xff]  ;;  %v685_v22 = vld [vmem:[%s1999_s9 + $0x2e0] sm:$0xff]  ;;  %v687_v25 = vld [vmem:[%s1999_s9 + $0x2f0] sm:$0xff] }
  0xa2   : > { %v1396_v24 = vpack.c.bf16 %v688_v17, %v684_v16  ;;  %v690_v26 = vld [vmem:[%s1999_s9 + $0x308] sm:$0xff]  ;;  %v692_v28 = vld [vmem:[%s1999_s9 + $0x318] sm:$0xff]  ;;  %v1298_v30 = vpack.c.bf16 %v685_v22, %v681_v21  ;;  %v1398_v31 = vpack.c.bf16 %v687_v25, %v683_v23  ;;  %v689_v33 = vld [vmem:[%s1999_s9 + $0x300] sm:$0xff] }
  0xa3   : > { %1283 = vmatpush1.bf16.msra.mxu0 %v1282_v46  ;;  %v694_v27 = vld [vmem:[%s1999_s9 + $0x328] sm:$0xff]  ;;  %v696_v29 = vld [vmem:[%s1999_s9 + $0x338] sm:$0xff]  ;;  %v693_v34 = vld [vmem:[%s1999_s9 + $0x320] sm:$0xff] }
  0xa4   : > { %1383 = vmatpush1.bf16.msra.mxu1 %v1382_v47  ;;  %1285 = vmatprep.subr.bf16.mxu0 %v1284_v48  ;;  %v1300_v32 = vpack.c.bf16 %v694_v27, %v690_v26  ;;  %v691_v35 = vld [vmem:[%s1999_s9 + $0x310] sm:$0xff]  ;;  %v1400_v36 = vpack.c.bf16 %v696_v29, %v692_v28  ;;  %v698_v38 = vld [vmem:[%s1999_s9 + $0x348] sm:$0xff]  ;;  %v700_v40 = vld [vmem:[%s1999_s9 + $0x358] sm:$0xff]  ;;  %v1302_v42 = vpack.c.bf16 %v693_v34, %v689_v33 }
  0xa5   : > { %1385 = vmatprep.subr.bf16.mxu1 %v1384_v52  ;;  %v695_v37 = vld [vmem:[%s1999_s9 + $0x330] sm:$0xff]  ;;  %v702_v39 = vld [vmem:[%s1999_s9 + $0x368] sm:$0xff]  ;;  %v704_v41 = vld [vmem:[%s1999_s9 + $0x378] sm:$0xff] }
  0xa6   : > { %v1402_v43 = vpack.c.bf16 %v695_v37, %v691_v35  ;;  %v1304_v44 = vpack.c.bf16 %v702_v39, %v698_v38  ;;  %v697_v45 = vld [vmem:[%s1999_s9 + $0x340] sm:$0xff]  ;;  %v699_v47 = vld [vmem:[%s1999_s9 + $0x350] sm:$0xff]  ;;  %v1404_v48 = vpack.c.bf16 %v704_v41, %v700_v40  ;;  %v706_v50 = vld [vmem:[%s1999_s9 + $0x388] sm:$0xff] }
  0xa7   : > { %1287 = vmatpush1.bf16.msra.mxu0 %v1286_v58  ;;  %v701_v46 = vld [vmem:[%s1999_s9 + $0x360] sm:$0xff]  ;;  %v703_v49 = vld [vmem:[%s1999_s9 + $0x370] sm:$0xff]  ;;  %v710_v51 = vld [vmem:[%s1999_s9 + $0x3a8] sm:$0xff] }
  0xa8   : > { %1387 = vmatpush1.bf16.msra.mxu1 %v1386_v59  ;;  %1289 = vmatprep.subr.bf16.mxu0 %v1288_v60  ;;  %v708_v52 = vld [vmem:[%s1999_s9 + $0x398] sm:$0xff]  ;;  %v1306_v54 = vpack.c.bf16 %v701_v46, %v697_v45  ;;  %v1406_v55 = vpack.c.bf16 %v703_v49, %v699_v47  ;;  %v1308_v56 = vpack.c.bf16 %v710_v51, %v706_v50  ;;  %v705_v57 = vld [vmem:[%s1999_s9 + $0x380] sm:$0xff]  ;;  %v707_v59 = vld [vmem:[%s1999_s9 + $0x390] sm:$0xff] }
  0xa9   : > { %1389 = vmatprep.subr.bf16.mxu1 %v1388_v0  ;;  %v712_v53 = vld [vmem:[%s1999_s9 + $0x3b8] sm:$0xff]  ;;  %v709_v58 = vld [vmem:[%s1999_s9 + $0x3a0] sm:$0xff]  ;;  %v711_v61 = vld [vmem:[%s1999_s9 + $0x3b0] sm:$0xff] }
  0xaa   : > { %v1408_v60 = vpack.c.bf16 %v712_v53, %v708_v52  ;;  %v714_v62 = vld [vmem:[%s1999_s9 + $0x3c8] sm:$0xff]  ;;  %v716_v0 = vld [vmem:[%s1999_s9 + $0x3d8] sm:$0xff]  ;;  %v1310_v2 = vpack.c.bf16 %v709_v58, %v705_v57  ;;  %v1410_v3 = vpack.c.bf16 %v711_v61, %v707_v59  ;;  %v713_v5 = vld [vmem:[%s1999_s9 + $0x3c0] sm:$0xff] }
  0xab   : > { %1291 = vmatpush1.bf16.msra.mxu0 %v1290_v6  ;;  %v718_v63 = vld [vmem:[%s1999_s9 + $0x3e8] sm:$0xff]  ;;  %v720_v1 = vld [vmem:[%s1999_s9 + $0x3f8] sm:$0xff]  ;;  %v717_v6 = vld [vmem:[%s1999_s9 + $0x3e0] sm:$0xff] }
  0xac   : > { %1391 = vmatpush1.bf16.msra.mxu1 %v1390_v7  ;;  %1293 = vmatprep.subr.bf16.mxu0 %v1292_v8  ;;  %v1312_v4 = vpack.c.bf16 %v718_v63, %v714_v62  ;;  %v715_v7 = vld [vmem:[%s1999_s9 + $0x3d0] sm:$0xff]  ;;  %v1412_v8 = vpack.c.bf16 %v720_v1, %v716_v0  ;;  %v722_v10 = vld [vmem:[%s1999_s9 + $0x408] sm:$0xff]  ;;  %v728_v13 = vld [vmem:[%s1999_s9 + $0x438] sm:$0xff]  ;;  %v1314_v14 = vpack.c.bf16 %v717_v6, %v713_v5 }
  0xad   : > { %1393 = vmatprep.subr.bf16.mxu1 %v1392_v12  ;;  %v719_v9 = vld [vmem:[%s1999_s9 + $0x3f0] sm:$0xff]  ;;  %v726_v11 = vld [vmem:[%s1999_s9 + $0x428] sm:$0xff]  ;;  %v724_v12 = vld [vmem:[%s1999_s9 + $0x418] sm:$0xff] }
  0xae   : > { %v1414_v15 = vpack.c.bf16 %v719_v9, %v715_v7  ;;  %v1316_v16 = vpack.c.bf16 %v726_v11, %v722_v10  ;;  %v721_v17 = vld [vmem:[%s1999_s9 + $0x400] sm:$0xff]  ;;  %v727_v21 = vld [vmem:[%s1999_s9 + $0x430] sm:$0xff]  ;;  %v730_v22 = vld [vmem:[%s1999_s9 + $0x448] sm:$0xff] }
  0xaf   : > { %1295 = vmatpush1.bf16.msra.mxu0 %v1294_v18  ;;  %v725_v18 = vld [vmem:[%s1999_s9 + $0x420] sm:$0xff]  ;;  %v734_v23 = vld [vmem:[%s1999_s9 + $0x468] sm:$0xff]  ;;  %v736_v25 = vld [vmem:[%s1999_s9 + $0x478] sm:$0xff] }
  0xb0   : > { %1395 = vmatpush1.bf16.msra.mxu1 %v1394_v19  ;;  %1297 = vmatprep.subr.bf16.mxu0 %v1296_v20  ;;  %v723_v19 = vld [vmem:[%s1999_s9 + $0x410] sm:$0xff]  ;;  %v1416_v20 = vpack.c.bf16 %v728_v13, %v724_v12  ;;  %v585_v26 = vld [vmem:[%s2263_s0] sm:$0xff]  ;;  %v1318_v27 = vpack.c.bf16 %v725_v18, %v721_v17  ;;  %v1320_v29 = vpack.c.bf16 %v734_v23, %v730_v22  ;;  %v738_v35 = vld [vmem:[%s1999_s9 + $0x488] sm:$0xff] }
  0xb1   : > { %1397 = vmatprep.subr.bf16.mxu1 %v1396_v24  ;;  %v732_v24 = vld [vmem:[%s1999_s9 + $0x458] sm:$0xff]  ;;  %v1418_v28 = vpack.c.bf16 %v727_v21, %v723_v19  ;;  %v735_v34 = vld [vmem:[%s1999_s9 + $0x470] sm:$0xff]  ;;  %v590_v39 = vld [vmem:[%s2263_s0 + $0x28] sm:$0xff] }
  0xb2   : > { %v1420_v33 = vpack.c.bf16 %v736_v25, %v732_v24  ;;  %v740_v37 = vld [vmem:[%s1999_s9 + $0x498] sm:$0xff]  ;;  %v589_v41 = vld [vmem:[%s2263_s0 + $0x20] sm:$0xff]  ;;  %v739_v46 = vld [vmem:[%s1999_s9 + $0x490] sm:$0xff] }
  0xb3   : > { %1299 = vmatpush1.bf16.msra.mxu0 %v1298_v30  ;;  %v729_v30 = vld [vmem:[%s1999_s9 + $0x440] sm:$0xff]  ;;  %v744_v38 = vld [vmem:[%s1999_s9 + $0x4b8] sm:$0xff]  ;;  %v746_v49 = vld [vmem:[%s1999_s9 + $0x4c8] sm:$0xff] }
  0xb4   : > { %1399 = vmatpush1.bf16.msra.mxu1 %v1398_v31  ;;  %1301 = vmatprep.subr.bf16.mxu0 %v1300_v32  ;;  %v733_v31 = vld [vmem:[%s1999_s9 + $0x460] sm:$0xff]  ;;  %v731_v32 = vld [vmem:[%s1999_s9 + $0x450] sm:$0xff]  ;;  %v1424_v47 = vpack.c.bf16 %v744_v38, %v740_v37  ;;  %v750_v50 = vld [vmem:[%s1999_s9 + $0x4e8] sm:$0xff] }
  0xb5   : > { %1401 = vmatprep.subr.bf16.mxu1 %v1400_v36  ;;  %v742_v36 = vld [vmem:[%s1999_s9 + $0x4a8] sm:$0xff]  ;;  %v1322_v40 = vpack.c.bf16 %v733_v31, %v729_v30  ;;  %v741_v45 = vld [vmem:[%s1999_s9 + $0x4a0] sm:$0xff]  ;;  %v748_v51 = vld [vmem:[%s1999_s9 + $0x4d8] sm:$0xff] }
  0xb6   : > { %v752_v52 = vld [vmem:[%s1999_s9 + $0x4f8] sm:$0xff]  ;;  %v745_v57 = vld [vmem:[%s1999_s9 + $0x4c0] sm:$0xff]  ;;  %v747_v59 = vld [vmem:[%s1999_s9 + $0x4d0] sm:$0xff] }
  0xb7   : > { %1303 = vmatpush1.bf16.msra.mxu0 %v1302_v42  ;;  %v1422_v42 = vpack.c.bf16 %v735_v34, %v731_v32  ;;  %v588_v53 = vld [vmem:[%s2263_s0 + $0x18] sm:$0xff]  ;;  %v749_v58 = vld [vmem:[%s1999_s9 + $0x4e0] sm:$0xff]  ;;  %v751_v61 = vld [vmem:[%s1999_s9 + $0x4f0] sm:$0xff] }
  0xb8   : > { %1403 = vmatpush1.bf16.msra.mxu1 %v1402_v43  ;;  %1305 = vmatprep.subr.bf16.mxu0 %v1304_v44  ;;  %v1324_v43 = vpack.c.bf16 %v742_v36, %v738_v35  ;;  %v737_v44 = vld [vmem:[%s1999_s9 + $0x480] sm:$0xff]  ;;  %v754_v62 = vld [vmem:[%s1999_s9 + $0x508] sm:$0xff]  ;;  %v756_v0 = vld [vmem:[%s1999_s9 + $0x518] sm:$0xff] }
  0xb9   : > { %1405 = vmatprep.subr.bf16.mxu1 %v1404_v48  ;;  %v743_v48 = vld [vmem:[%s1999_s9 + $0x4b0] sm:$0xff]  ;;  %v758_v63 = vld [vmem:[%s1999_s9 + $0x528] sm:$0xff]  ;;  %v760_v1 = vld [vmem:[%s1999_s9 + $0x538] sm:$0xff] }
  0xba   : > { %v753_v5 = vld [vmem:[%s1999_s9 + $0x500] sm:$0xff]  ;;  %v755_v7 = vld [vmem:[%s1999_s9 + $0x510] sm:$0xff]  ;;  %v762_v10 = vld [vmem:[%s1999_s9 + $0x548] sm:$0xff] }
  0xbb   : > { %1307 = vmatpush1.bf16.msra.mxu0 %v1306_v54  ;;  %v1326_v54 = vpack.c.bf16 %v741_v45, %v737_v44  ;;  %v757_v6 = vld [vmem:[%s1999_s9 + $0x520] sm:$0xff]  ;;  %v759_v9 = vld [vmem:[%s1999_s9 + $0x530] sm:$0xff]  ;;  %v766_v11 = vld [vmem:[%s1999_s9 + $0x568] sm:$0xff] }
  0xbc   : > { %1407 = vmatpush1.bf16.msra.mxu1 %v1406_v55  ;;  %1309 = vmatprep.subr.bf16.mxu0 %v1308_v56  ;;  %v1426_v55 = vpack.c.bf16 %v743_v48, %v739_v46  ;;  %v1328_v56 = vpack.c.bf16 %v750_v50, %v746_v49  ;;  %v764_v12 = vld [vmem:[%s1999_s9 + $0x558] sm:$0xff]  ;;  %v761_v17 = vld [vmem:[%s1999_s9 + $0x540] sm:$0xff]  ;;  %v763_v19 = vld [vmem:[%s1999_s9 + $0x550] sm:$0xff] }
  0xbd   : > { %1409 = vmatprep.subr.bf16.mxu1 %v1408_v60  ;;  %v1428_v60 = vpack.c.bf16 %v752_v52, %v748_v51  ;;  %v768_v13 = vld [vmem:[%s1999_s9 + $0x578] sm:$0xff]  ;;  %v765_v18 = vld [vmem:[%s1999_s9 + $0x560] sm:$0xff]  ;;  %v767_v21 = vld [vmem:[%s1999_s9 + $0x570] sm:$0xff] }
  0xbe   : > { %v770_v22 = vld [vmem:[%s1999_s9 + $0x588] sm:$0xff]  ;;  %v772_v24 = vld [vmem:[%s1999_s9 + $0x598] sm:$0xff]  ;;  %v773_v30 = vld [vmem:[%s1999_s9 + $0x5a0] sm:$0xff] }
  0xbf   : > { %1311 = vmatpush1.bf16.msra.mxu0 %v1310_v2  ;;  %v1330_v2 = vpack.c.bf16 %v749_v58, %v745_v57  ;;  %v774_v23 = vld [vmem:[%s1999_s9 + $0x5a8] sm:$0xff]  ;;  %v776_v25 = vld [vmem:[%s1999_s9 + $0x5b8] sm:$0xff]  ;;  %v771_v31 = vld [vmem:[%s1999_s9 + $0x590] sm:$0xff] }
  0xc0   : > { %1411 = vmatpush1.bf16.msra.mxu1 %v1410_v3  ;;  %1313 = vmatprep.subr.bf16.mxu0 %v1312_v4  ;;  %v1430_v3 = vpack.c.bf16 %v751_v61, %v747_v59  ;;  %v1332_v4 = vpack.c.bf16 %v758_v63, %v754_v62  ;;  %v1440_v32 = vpack.c.bf16 %v776_v25, %v772_v24  ;;  %v778_v34 = vld [vmem:[%s1999_s9 + $0x5c8] sm:$0xff]  ;;  %v780_v36 = vld [vmem:[%s1999_s9 + $0x5d8] sm:$0xff]  ;;  %v783_v45 = vld [vmem:[%s1999_s9 + $0x5f0] sm:$0xff] }
  0xc1   : > { %1413 = vmatprep.subr.bf16.mxu1 %v1412_v8  ;;  %v1432_v8 = vpack.c.bf16 %v760_v1, %v756_v0  ;;  %v782_v35 = vld [vmem:[%s1999_s9 + $0x5e8] sm:$0xff]  ;;  %v784_v37 = vld [vmem:[%s1999_s9 + $0x5f8] sm:$0xff]  ;;  %v791_v57 = vld [vmem:[%s1999_s9 + $0x630] sm:$0xff] }
  0xc2   : > { %v1444_v44 = vpack.c.bf16 %v784_v37, %v780_v36  ;;  %v786_v46 = vld [vmem:[%s1999_s9 + $0x608] sm:$0xff]  ;;  %v788_v48 = vld [vmem:[%s1999_s9 + $0x618] sm:$0xff]  ;;  %v591_v62 = vld [vmem:[%s2263_s0 + $0x30] sm:$0xff] }
  0xc3   : > { %1315 = vmatpush1.bf16.msra.mxu0 %v1314_v14  ;;  %v1334_v14 = vpack.c.bf16 %v757_v6, %v753_v5  ;;  %v792_v49 = vld [vmem:[%s1999_s9 + $0x638] sm:$0xff] }
  0xc4   : > { %1415 = vmatpush1.bf16.msra.mxu1 %v1414_v15  ;;  %1317 = vmatprep.subr.bf16.mxu0 %v1316_v16  ;;  %v1434_v15 = vpack.c.bf16 %v759_v9, %v755_v7  ;;  %v1336_v16 = vpack.c.bf16 %v766_v11, %v762_v10  ;;  %v592_v61 = vld [vmem:[%s2263_s0 + $0x38] sm:$0xff] }
  0xc5   : > { %1417 = vmatprep.subr.bf16.mxu1 %v1416_v20  ;;  %v1436_v20 = vpack.c.bf16 %v768_v13, %v764_v12 }
  0xc6   : > { %877 = vmatmul.mubr.f32.vlgmr.msra.gmra.mrb[0].mxu0 %v585_v26 }
  0xc7   : > { %1319 = vmatpush1.bf16.msra.mxu0 %v1318_v27  ;;  %1031 = vmatmul.mubr.f32.vlgmr.msra.gmra.mrb[0].mxu1 %v585_v26  ;;  %v1338_v26 = vpack.c.bf16 %v765_v18, %v761_v17  ;;  %v1438_v27 = vpack.c.bf16 %v767_v21, %v763_v19 }
  0xc8   : > { %1419 = vmatpush1.bf16.msra.mxu1 %v1418_v28  ;;  %1321 = vmatprep.subr.bf16.mxu0 %v1320_v29  ;;  %v1340_v28 = vpack.c.bf16 %v774_v23, %v770_v22  ;;  %v769_v29 = vld [vmem:[%s1999_s9 + $0x580] sm:$0xff] }
  0xc9   : > { %1421 = vmatprep.subr.bf16.mxu1 %v1420_v33  ;;  %882 = vmatprep.mubr.f32.mxu0 %v590_v39  ;;  %v775_v33 = vld [vmem:[%s1999_s9 + $0x5b0] sm:$0xff]  ;;  %v1342_v38 = vpack.c.bf16 %v773_v30, %v769_v29 }
  0xca   : > { %1036 = vmatprep.mubr.f32.mxu1 %v590_v39  ;;  %883 = vmatmul.mubr.f32.gmra.mrb[2].mxu0 %v589_v41  ;;  %v1442_v39 = vpack.c.bf16 %v775_v33, %v771_v31 }
  0xcb   : > { %1323 = vmatpush1.bf16.msra.mxu0 %v1322_v40  ;;  %1037 = vmatmul.mubr.f32.gmra.mrb[2].mxu1 %v589_v41  ;;  %v1344_v40 = vpack.c.bf16 %v782_v35, %v778_v34  ;;  %v777_v41 = vld [vmem:[%s1999_s9 + $0x5c0] sm:$0xff] }
  0xcc   : > { %1423 = vmatpush1.bf16.msra.mxu1 %v1422_v42  ;;  %1325 = vmatprep.subr.bf16.mxu0 %v1324_v43  ;;  %v781_v42 = vld [vmem:[%s1999_s9 + $0x5e0] sm:$0xff]  ;;  %v779_v43 = vld [vmem:[%s1999_s9 + $0x5d0] sm:$0xff] }
  0xcd   : > { %1425 = vmatprep.subr.bf16.mxu1 %v1424_v47  ;;  %1241 = vmatprep.mubr.msk.f32.mxu0 %vm805_vm0, %v588_v53  ;;  %v790_v47 = vld [vmem:[%s1999_s9 + $0x628] sm:$0xff]  ;;  %v1346_v50 = vpack.c.bf16 %v781_v42, %v777_v41  ;;  %v1446_v51 = vpack.c.bf16 %v783_v45, %v779_v43 }
  0xce   : > { %1243 = vmatprep.mubr.msk.f32.mxu1 %vm805_vm0, %v588_v53  ;;  %v1348_v52 = vpack.c.bf16 %v790_v47, %v786_v46  ;;  %v785_v53 = vld [vmem:[%s1999_s9 + $0x600] sm:$0xff] }
  0xcf   : > { %1327 = vmatpush1.bf16.msra.mxu0 %v1326_v54  ;;  %v789_v54 = vld [vmem:[%s1999_s9 + $0x620] sm:$0xff] }
  0xd0   : > { %1427 = vmatpush1.bf16.msra.mxu1 %v1426_v55  ;;  %1329 = vmatprep.subr.bf16.mxu0 %v1328_v56  ;;  %v1448_v55 = vpack.c.bf16 %v792_v49, %v788_v48  ;;  %v787_v56 = vld [vmem:[%s1999_s9 + $0x610] sm:$0xff]  ;;  %v1350_v58 = vpack.c.bf16 %v789_v54, %v785_v53 }
  0xd1   : > { %1429 = vmatprep.subr.bf16.mxu1 %v1428_v60  ;;  %v1450_v59 = vpack.c.bf16 %v791_v57, %v787_v56  ;;  %v587_v60 = vld [vmem:[%s2263_s0 + $0x10] sm:$0xff] }
  0xd3   : > { %1331 = vmatpush1.bf16.msra.mxu0 %v1330_v2 }
  0xd4   : > { %1431 = vmatpush1.bf16.msra.mxu1 %v1430_v3  ;;  %1333 = vmatprep.subr.bf16.mxu0 %v1332_v4 }
  0xd5   : > { %1433 = vmatprep.subr.bf16.mxu1 %v1432_v8 }
  0xd7   : > { %1335 = vmatpush1.bf16.msra.mxu0 %v1334_v14 }
  0xd8   : > { %1435 = vmatpush1.bf16.msra.mxu1 %v1434_v15  ;;  %1337 = vmatprep.subr.bf16.mxu0 %v1336_v16 }
  0xd9   : > { %1437 = vmatprep.subr.bf16.mxu1 %v1436_v20 }
  0xdb   : > { %1339 = vmatpush1.bf16.msra.mxu0 %v1338_v26 }
  0xdc   : > { %1439 = vmatpush1.bf16.msra.mxu1 %v1438_v27  ;;  %1341 = vmatprep.subr.bf16.mxu0 %v1340_v28 }
  0xdd   : > { %1441 = vmatprep.subr.bf16.mxu1 %v1440_v32 }
  0xdf   : > { %1343 = vmatpush1.bf16.msra.mxu0 %v1342_v38 }
  0xe0   : > { %1443 = vmatpush1.bf16.msra.mxu1 %v1442_v39  ;;  %1345 = vmatprep.subr.bf16.mxu0 %v1344_v40 }
  0xe1   : > { %1445 = vmatprep.subr.bf16.mxu1 %v1444_v44 }
  0xe3   : > { %1347 = vmatpush1.bf16.msra.mxu0 %v1346_v50 }
  0xe4   : > { %1447 = vmatpush1.bf16.msra.mxu1 %v1446_v51  ;;  %1349 = vmatprep.subr.bf16.mxu0 %v1348_v52 }
  0xe5   : > { %1449 = vmatprep.subr.bf16.mxu1 %v1448_v55 }
  0xe7   : > { %1351 = vmatpush1.bf16.msra.mxu0 %v1350_v58 }
  0xe8   : > { %1451 = vmatpush1.bf16.msra.mxu1 %v1450_v59 }
  0xea   : > { %954 = vmatmul.mubr.f32.vlgmr.msra.gmra.mrb[0].mxu0 %v587_v60 }
  0xeb   : > { %1108 = vmatmul.mubr.f32.vlgmr.msra.gmra.mrb[0].mxu1 %v587_v60  ;;  %1242 = vmatprep.mubr.msk.f32.mxu0 %vm805_vm0, %v592_v61 }
  0xec   : > { %1244 = vmatprep.mubr.msk.f32.mxu1 %vm805_vm0, %v592_v61 }
  0xee   : > { %960 = vmatmul.mubr.f32.gmra.mrb[2].mxu0 %v591_v62 }
  0xef   : > { %1114 = vmatmul.mubr.f32.gmra.mrb[2].mxu1 %v591_v62 }
  0xff   : > { %v798_v63 = vpop.permute.xlu0 %797 }
 0x103   : > { %v803_v10 = vpop.permute.xlu0 %802 }
 0x1bd   : > { %v955_v0 = vpop.f32.mrb[0].mxu0 }
 0x1be   : > { %v1452_v1 = vadd.f32 %v955_v0, %v798_v63  ;;  %v1109_v2 = vpop.f32.mrb[0].mxu1  ;;  %v957_v3 = vpop.f32.mrb[1].mxu0 }
 0x1bf   : > { %v1456_v4 = vadd.f32 %v1109_v2, %v798_v63  ;;  %v1453_v5 = vadd.f32 %v957_v3, %v798_v63  ;;  %v1111_v6 = vpop.f32.mrb[1].mxu1 }
 0x1c0   : > { %v1120_v7 = vmax.f32 %v1452_v1, 0.0  ;;  %v1457_v8 = vadd.f32 %v1111_v6, %v798_v63 }
 0x1c1   : > { %v1122_v9 = vmax.f32 %v1456_v4, 0.0  ;;  %v1121_v11 = vmax.f32 %v1453_v5, 0.0  ;;  %v961_v12 = vpop.f32.mrb[2].mxu0 }
 0x1c2   : > { %1128 = vst [vmem:[%s2228_s6] sm:$0xff] %v1120_v7  ;;  %v1123_v13 = vmax.f32 %v1457_v8, 0.0  ;;  %v1454_v14 = vadd.f32 %v961_v12, %v803_v10  ;;  %v1115_v15 = vpop.f32.mrb[2].mxu1  ;;  %v963_v16 = vpop.f32.mrb[3].mxu0  ;;  %1142 = sbr.rel (!%p1571_p5) target bundleno = 465 (0x1d1), region = 59 }
 0x1c3   : > { %1130 = vst [vmem:[%s2228_s6 + $0x10] sm:$0xff] %v1122_v9  ;;  %1129 = vst [vmem:[%s2228_s6 + $0x8] sm:$0xff] %v1121_v11  ;;  %v1458_v17 = vadd.f32 %v1115_v15, %v803_v10  ;;  %v1455_v18 = vadd.f32 %v963_v16, %v803_v10  ;;  %v1117_v19 = vpop.f32.mrb[3].mxu1 }
 0x1c4   : > { %1131 = vst [vmem:[%s2228_s6 + $0x18] sm:$0xff] %v1123_v13  ;;  %v1124_v20 = vmax.f32 %v1454_v14, 0.0  ;;  %v1459_v21 = vadd.f32 %v1117_v19, %v803_v10 }
 0x1c5   : > { %v1126_v22 = vmax.f32 %v1458_v17, 0.0  ;;  %v1125_v23 = vmax.f32 %v1455_v18, 0.0 }
 0x1c6   : > { %1132 = vst [vmem:[%s2228_s6 + $0x20] sm:$0xff] %v1124_v20  ;;  %v1127_v24 = vmax.f32 %v1459_v21, 0.0 }
 0x1c7   : > { %1134 = vst [vmem:[%s2228_s6 + $0x30] sm:$0xff] %v1126_v22  ;;  %1133 = vst [vmem:[%s2228_s6 + $0x28] sm:$0xff] %v1125_v23 }
 0x1c8   : > { %1135 = vst [vmem:[%s2228_s6 + $0x38] sm:$0xff] %v1127_v24 }
 0x1c9   : > { %v1158_v25 = vld [vmem:[%s2228_s6] sm:$0xff] }
 0x1ca   : > { %v1160_v26 = vld [vmem:[%s2228_s6 + $0x8] sm:$0xff]  ;;  %v1162_v27 = vld [vmem:[%s2228_s6 + $0x10] sm:$0xff]  ;;  %1159 = vst [vmem:[%s1145_s8] sm:$0xff] %v1158_v25 }
 0x1cb   : > { %v1164_v28 = vld [vmem:[%s2228_s6 + $0x18] sm:$0xff]  ;;  %1161 = vst [vmem:[%s1145_s8 + $0x8] sm:$0xff] %v1160_v26  ;;  %1163 = vst [vmem:[%s1145_s8 + $0x10] sm:$0xff] %v1162_v27 }
 0x1cc   : > { %1165 = vst [vmem:[%s1145_s8 + $0x18] sm:$0xff] %v1164_v28 }
 0x1cd   : > { %v1166_v29 = vld [vmem:[%s2228_s6 + $0x20] sm:$0xff] }
 0x1ce   : > { %v1168_v30 = vld [vmem:[%s2228_s6 + $0x28] sm:$0xff]  ;;  %1167 = vst [vmem:[%s1145_s8 + $0x80] sm:$0xff] %v1166_v29  ;;  %v1170_v31 = vld [vmem:[%s2228_s6 + $0x30] sm:$0xff] }
 0x1cf   : > { %1169 = vst [vmem:[%s1145_s8 + $0x88] sm:$0xff] %v1168_v30  ;;  %v1172_v32 = vld [vmem:[%s2228_s6 + $0x38] sm:$0xff]  ;;  %1171 = vst [vmem:[%s1145_s8 + $0x90] sm:$0xff] %v1170_v31 }
 0x1d0   : > { %1173 = vst [vmem:[%s1145_s8 + $0x98] sm:$0xff] %v1172_v32 }
 0x1d1 PF: > { %p10_p10 = scmp.ge.s32.totalorder %s1558_s16, 6   ;;  %s2268_s12 = smov %s1514_s13 }
 0x1d2   : > { %s2269_s13 = smov %s1569_s19  ;;  %s2270_s14 = smov %s1558_s16 }
 0x1d3   :  { %12 = sbr.rel (!%p10_p10) target bundleno = 2 (0x2), region = 113 }

// kernel: fwd.27
= control target key start
LH: loop header
LB: loop body
LE: loop exit
PB: predicated region body
PF: predicated region fallthrough
CT: control target
= control target key end

     0   :  { %s786_s12 = smov 0   ;;  %s788_s13 = smov 0   ;;  %s1069_s0 = inlined_call_operand.vmem [shape: f32[8,144], index: 0, kind: input, shape index: {}]   ;;  %s1070_s1 = inlined_call_operand.vmem [shape: f32[144,2048], index: 1, kind: input, shape index: {}]   ;;  %s1071_s2 = inlined_call_operand.vmem [shape: f32[8,1], index: 2, kind: input, shape index: {}]   ;;  %s1072_s3 = inlined_call_operand.vmem [shape: f32[8,2048], index: 3, kind: output, shape index: {}]  }
   0x1   :  { %s790_s14 = smov 0  }
   0x2 LB: > { %s627_s15 = sadd.s32 4294967295, %s763_s14   ;;  %s803_s16 = sadd.s32 1, %s763_s14   ;;  %s763_s14 = sphi %s790_s14, %s1075_s14   ;;  %s759_s13 = sphi %s788_s13, %s1074_s13   ;;  %s755_s12 = sphi %s786_s12, %s1073_s12  }
   0x3   : > { %s38_s17 = ssub.s32 %s763_s14, %s803_s16  ;;  %s41_s18 = sadd.s32 1, %s759_s13 }
   0x4   : > { %p39_p0 = scmp.eq.s32.totalorder %s38_s17, 0  ;;  %p48_p1 = scmp.ne.s32.totalorder %s759_s13, %s755_s12 }
   0x5   : > { %p49_p2 = scmp.eq.s32.totalorder %s763_s14, 0  ;;  %p630_p4 = scmp.ge.s32.totalorder %s763_s14, 4 }
   0x6   : > { %s812_s19 = scalar_select %p39_p0, %s759_s13, %s41_s18  }
   0x7   : > { %p50_p3 = por %p49_p2, %p48_p1  ;;  %127 = sbr.rel (%p630_p4) target bundleno = 55 (0x37), region = 24 }
   0xe   : > { %130 = sbr.rel (!%p50_p3) target bundleno = 55 (0x37), region = 28  ;;  %s132_s20 = sand.u32 (%p50_p3), 1, %s759_s13  }
   0xf   : > { %s640_s21 = sshll.u32 (%p50_p3), %s763_s14, 5  ;;  %s713_s22 = smul.u32 (%p50_p3), 576, %s132_s20 }
  0x10   : > { %s820_s25 = scalar_lea.vmem (%p50_p3), %s1070_s1, %s640_s21 }
  0x11   : > { %v150_v0 = vld [vmem:[%s820_s25] sm:$0xff] (%p50_p3)  ;;  %v152_v1 = vld [vmem:[%s820_s25 + $0x8] sm:$0xff] (%p50_p3)  ;;  %v154_v2 = vld [vmem:[%s820_s25 + $0x10] sm:$0xff] (%p50_p3)  ;;  %s828_s26 = scalar_lea.vmem (%p50_p3), [#allocation2], %s713_s22 }
  0x12   : > { %v156_v3 = vld [vmem:[%s820_s25 + $0x18] sm:$0xff] (%p50_p3)  ;;  %v158_v4 = vld [vmem:[%s820_s25 + $0x80] sm:$0xff] (%p50_p3)  ;;  %v160_v5 = vld [vmem:[%s820_s25 + $0x88] sm:$0xff] (%p50_p3)  ;;  %151 = vst [vmem:[%s828_s26] sm:$0xff] (%p50_p3), %v150_v0 }
  0x13   : > { %153 = vst [vmem:[%s828_s26 + $0x8] sm:$0xff] (%p50_p3), %v152_v1  ;;  %155 = vst [vmem:[%s828_s26 + $0x10] sm:$0xff] (%p50_p3), %v154_v2  ;;  %v162_v6 = vld [vmem:[%s820_s25 + $0x90] sm:$0xff] (%p50_p3)  ;;  %v164_v7 = vld [vmem:[%s820_s25 + $0x98] sm:$0xff] (%p50_p3) }
  0x14   : > { %157 = vst [vmem:[%s828_s26 + $0x18] sm:$0xff] (%p50_p3), %v156_v3  ;;  %159 = vst [vmem:[%s828_s26 + $0x20] sm:$0xff] (%p50_p3), %v158_v4  ;;  %v166_v8 = vld [vmem:[%s820_s25 + $0x100] sm:$0xff] (%p50_p3)  ;;  %v168_v9 = vld [vmem:[%s820_s25 + $0x108] sm:$0xff] (%p50_p3) }
  0x15   : > { %161 = vst [vmem:[%s828_s26 + $0x28] sm:$0xff] %v160_v5  ;;  %163 = vst [vmem:[%s828_s26 + $0x30] sm:$0xff] %v162_v6  ;;  %v170_v10 = vld [vmem:[%s820_s25 + $0x110] sm:$0xff]  ;;  %v172_v11 = vld [vmem:[%s820_s25 + $0x118] sm:$0xff] }
  0x16   : > { %165 = vst [vmem:[%s828_s26 + $0x38] sm:$0xff] %v164_v7  ;;  %167 = vst [vmem:[%s828_s26 + $0x40] sm:$0xff] %v166_v8  ;;  %v174_v12 = vld [vmem:[%s820_s25 + $0x180] sm:$0xff]  ;;  %v176_v13 = vld [vmem:[%s820_s25 + $0x188] sm:$0xff] }
  0x17   : > { %169 = vst [vmem:[%s828_s26 + $0x48] sm:$0xff] %v168_v9  ;;  %171 = vst [vmem:[%s828_s26 + $0x50] sm:$0xff] %v170_v10  ;;  %v178_v14 = vld [vmem:[%s820_s25 + $0x190] sm:$0xff]  ;;  %v180_v15 = vld [vmem:[%s820_s25 + $0x198] sm:$0xff] }
  0x18   : > { %173 = vst [vmem:[%s828_s26 + $0x58] sm:$0xff] %v172_v11  ;;  %175 = vst [vmem:[%s828_s26 + $0x60] sm:$0xff] %v174_v12  ;;  %v182_v16 = vld [vmem:[%s820_s25 + $0x200] sm:$0xff]  ;;  %v184_v17 = vld [vmem:[%s820_s25 + $0x208] sm:$0xff] }
  0x19   : > { %177 = vst [vmem:[%s828_s26 + $0x68] sm:$0xff] %v176_v13  ;;  %179 = vst [vmem:[%s828_s26 + $0x70] sm:$0xff] %v178_v14  ;;  %v186_v18 = vld [vmem:[%s820_s25 + $0x210] sm:$0xff]  ;;  %v188_v19 = vld [vmem:[%s820_s25 + $0x218] sm:$0xff] }
  0x1a   : > { %181 = vst [vmem:[%s828_s26 + $0x78] sm:$0xff] %v180_v15  ;;  %183 = vst [vmem:[%s828_s26 + $0x80] sm:$0xff] %v182_v16  ;;  %v190_v20 = vld [vmem:[%s820_s25 + $0x280] sm:$0xff]  ;;  %v192_v21 = vld [vmem:[%s820_s25 + $0x288] sm:$0xff] }
  0x1b   : > { %185 = vst [vmem:[%s828_s26 + $0x88] sm:$0xff] %v184_v17  ;;  %187 = vst [vmem:[%s828_s26 + $0x90] sm:$0xff] %v186_v18  ;;  %v194_v22 = vld [vmem:[%s820_s25 + $0x290] sm:$0xff]  ;;  %v196_v23 = vld [vmem:[%s820_s25 + $0x298] sm:$0xff] }
  0x1c   : > { %189 = vst [vmem:[%s828_s26 + $0x98] sm:$0xff] %v188_v19  ;;  %191 = vst [vmem:[%s828_s26 + $0xa0] sm:$0xff] %v190_v20  ;;  %v198_v24 = vld [vmem:[%s820_s25 + $0x300] sm:$0xff]  ;;  %v200_v25 = vld [vmem:[%s820_s25 + $0x308] sm:$0xff] }
  0x1d   : > { %193 = vst [vmem:[%s828_s26 + $0xa8] sm:$0xff] %v192_v21  ;;  %195 = vst [vmem:[%s828_s26 + $0xb0] sm:$0xff] %v194_v22  ;;  %v202_v26 = vld [vmem:[%s820_s25 + $0x310] sm:$0xff]  ;;  %v204_v27 = vld [vmem:[%s820_s25 + $0x318] sm:$0xff] }
  0x1e   : > { %197 = vst [vmem:[%s828_s26 + $0xb8] sm:$0xff] %v196_v23  ;;  %199 = vst [vmem:[%s828_s26 + $0xc0] sm:$0xff] %v198_v24  ;;  %v206_v28 = vld [vmem:[%s820_s25 + $0x380] sm:$0xff]  ;;  %v208_v29 = vld [vmem:[%s820_s25 + $0x388] sm:$0xff] }
  0x1f   : > { %201 = vst [vmem:[%s828_s26 + $0xc8] sm:$0xff] %v200_v25  ;;  %203 = vst [vmem:[%s828_s26 + $0xd0] sm:$0xff] %v202_v26  ;;  %v210_v30 = vld [vmem:[%s820_s25 + $0x390] sm:$0xff]  ;;  %v212_v31 = vld [vmem:[%s820_s25 + $0x398] sm:$0xff] }
  0x20   : > { %205 = vst [vmem:[%s828_s26 + $0xd8] sm:$0xff] %v204_v27  ;;  %207 = vst [vmem:[%s828_s26 + $0xe0] sm:$0xff] %v206_v28  ;;  %v214_v32 = vld [vmem:[%s820_s25 + $0x400] sm:$0xff]  ;;  %v216_v33 = vld [vmem:[%s820_s25 + $0x408] sm:$0xff] }
  0x21   : > { %209 = vst [vmem:[%s828_s26 + $0xe8] sm:$0xff] %v208_v29  ;;  %211 = vst [vmem:[%s828_s26 + $0xf0] sm:$0xff] %v210_v30  ;;  %v218_v34 = vld [vmem:[%s820_s25 + $0x410] sm:$0xff]  ;;  %v220_v35 = vld [vmem:[%s820_s25 + $0x418] sm:$0xff] }
  0x22   : > { %213 = vst [vmem:[%s828_s26 + $0xf8] sm:$0xff] %v212_v31  ;;  %215 = vst [vmem:[%s828_s26 + $0x100] sm:$0xff] %v214_v32  ;;  %v222_v36 = vld [vmem:[%s820_s25 + $0x480] sm:$0xff]  ;;  %v224_v37 = vld [vmem:[%s820_s25 + $0x488] sm:$0xff] }
  0x23   : > { %217 = vst [vmem:[%s828_s26 + $0x108] sm:$0xff] %v216_v33  ;;  %219 = vst [vmem:[%s828_s26 + $0x110] sm:$0xff] %v218_v34  ;;  %v226_v38 = vld [vmem:[%s820_s25 + $0x490] sm:$0xff]  ;;  %v228_v39 = vld [vmem:[%s820_s25 + $0x498] sm:$0xff] }
  0x24   : > { %221 = vst [vmem:[%s828_s26 + $0x118] sm:$0xff] %v220_v35  ;;  %223 = vst [vmem:[%s828_s26 + $0x120] sm:$0xff] %v222_v36  ;;  %v230_v40 = vld [vmem:[%s820_s25 + $0x500] sm:$0xff]  ;;  %v232_v41 = vld [vmem:[%s820_s25 + $0x508] sm:$0xff] }
  0x25   : > { %225 = vst [vmem:[%s828_s26 + $0x128] sm:$0xff] %v224_v37  ;;  %227 = vst [vmem:[%s828_s26 + $0x130] sm:$0xff] %v226_v38  ;;  %v234_v42 = vld [vmem:[%s820_s25 + $0x510] sm:$0xff]  ;;  %v236_v43 = vld [vmem:[%s820_s25 + $0x518] sm:$0xff] }
  0x26   : > { %229 = vst [vmem:[%s828_s26 + $0x138] sm:$0xff] %v228_v39  ;;  %231 = vst [vmem:[%s828_s26 + $0x140] sm:$0xff] %v230_v40  ;;  %v238_v44 = vld [vmem:[%s820_s25 + $0x580] sm:$0xff]  ;;  %v240_v45 = vld [vmem:[%s820_s25 + $0x588] sm:$0xff] }
  0x27   : > { %233 = vst [vmem:[%s828_s26 + $0x148] sm:$0xff] %v232_v41  ;;  %235 = vst [vmem:[%s828_s26 + $0x150] sm:$0xff] %v234_v42  ;;  %v242_v46 = vld [vmem:[%s820_s25 + $0x590] sm:$0xff]  ;;  %v244_v47 = vld [vmem:[%s820_s25 + $0x598] sm:$0xff] }
  0x28   : > { %237 = vst [vmem:[%s828_s26 + $0x158] sm:$0xff] %v236_v43  ;;  %239 = vst [vmem:[%s828_s26 + $0x160] sm:$0xff] %v238_v44  ;;  %v246_v48 = vld [vmem:[%s820_s25 + $0x600] sm:$0xff]  ;;  %v248_v49 = vld [vmem:[%s820_s25 + $0x608] sm:$0xff] }
  0x29   : > { %241 = vst [vmem:[%s828_s26 + $0x168] sm:$0xff] %v240_v45  ;;  %243 = vst [vmem:[%s828_s26 + $0x170] sm:$0xff] %v242_v46  ;;  %v250_v50 = vld [vmem:[%s820_s25 + $0x610] sm:$0xff]  ;;  %v252_v51 = vld [vmem:[%s820_s25 + $0x618] sm:$0xff] }
  0x2a   : > { %245 = vst [vmem:[%s828_s26 + $0x178] sm:$0xff] %v244_v47  ;;  %247 = vst [vmem:[%s828_s26 + $0x180] sm:$0xff] %v246_v48  ;;  %v254_v52 = vld [vmem:[%s820_s25 + $0x680] sm:$0xff]  ;;  %v256_v53 = vld [vmem:[%s820_s25 + $0x688] sm:$0xff] }
  0x2b   : > { %249 = vst [vmem:[%s828_s26 + $0x188] sm:$0xff] %v248_v49  ;;  %251 = vst [vmem:[%s828_s26 + $0x190] sm:$0xff] %v250_v50  ;;  %v258_v54 = vld [vmem:[%s820_s25 + $0x690] sm:$0xff]  ;;  %v260_v55 = vld [vmem:[%s820_s25 + $0x698] sm:$0xff] }
  0x2c   : > { %253 = vst [vmem:[%s828_s26 + $0x198] sm:$0xff] %v252_v51  ;;  %255 = vst [vmem:[%s828_s26 + $0x1a0] sm:$0xff] %v254_v52  ;;  %v262_v56 = vld [vmem:[%s820_s25 + $0x700] sm:$0xff]  ;;  %v264_v57 = vld [vmem:[%s820_s25 + $0x708] sm:$0xff] }
  0x2d   : > { %257 = vst [vmem:[%s828_s26 + $0x1a8] sm:$0xff] %v256_v53  ;;  %259 = vst [vmem:[%s828_s26 + $0x1b0] sm:$0xff] %v258_v54  ;;  %v266_v58 = vld [vmem:[%s820_s25 + $0x710] sm:$0xff]  ;;  %v268_v59 = vld [vmem:[%s820_s25 + $0x718] sm:$0xff] }
  0x2e   : > { %261 = vst [vmem:[%s828_s26 + $0x1b8] sm:$0xff] %v260_v55  ;;  %263 = vst [vmem:[%s828_s26 + $0x1c0] sm:$0xff] %v262_v56  ;;  %v270_v60 = vld [vmem:[%s820_s25 + $0x780] sm:$0xff]  ;;  %v272_v61 = vld [vmem:[%s820_s25 + $0x788] sm:$0xff] }
  0x2f   : > { %265 = vst [vmem:[%s828_s26 + $0x1c8] sm:$0xff] %v264_v57  ;;  %267 = vst [vmem:[%s828_s26 + $0x1d0] sm:$0xff] %v266_v58  ;;  %v274_v62 = vld [vmem:[%s820_s25 + $0x790] sm:$0xff]  ;;  %v276_v63 = vld [vmem:[%s820_s25 + $0x798] sm:$0xff] }
  0x30   : > { %269 = vst [vmem:[%s828_s26 + $0x1d8] sm:$0xff] %v268_v59  ;;  %271 = vst [vmem:[%s828_s26 + $0x1e0] sm:$0xff] %v270_v60  ;;  %v278_v0 = vld [vmem:[%s820_s25 + $0x800] sm:$0xff]  ;;  %v280_v1 = vld [vmem:[%s820_s25 + $0x808] sm:$0xff] }
  0x31   : > { %273 = vst [vmem:[%s828_s26 + $0x1e8] sm:$0xff] %v272_v61  ;;  %275 = vst [vmem:[%s828_s26 + $0x1f0] sm:$0xff] %v274_v62  ;;  %v282_v2 = vld [vmem:[%s820_s25 + $0x810] sm:$0xff]  ;;  %v284_v3 = vld [vmem:[%s820_s25 + $0x818] sm:$0xff] }
  0x32   : > { %277 = vst [vmem:[%s828_s26 + $0x1f8] sm:$0xff] %v276_v63  ;;  %279 = vst [vmem:[%s828_s26 + $0x200] sm:$0xff] %v278_v0  ;;  %v286_v4 = vld [vmem:[%s820_s25 + $0x880] sm:$0xff]  ;;  %v288_v5 = vld [vmem:[%s820_s25 + $0x888] sm:$0xff] }
  0x33   : > { %281 = vst [vmem:[%s828_s26 + $0x208] sm:$0xff] %v280_v1  ;;  %283 = vst [vmem:[%s828_s26 + $0x210] sm:$0xff] %v282_v2  ;;  %v290_v6 = vld [vmem:[%s820_s25 + $0x890] sm:$0xff]  ;;  %v292_v7 = vld [vmem:[%s820_s25 + $0x898] sm:$0xff] }
  0x34   : > { %285 = vst [vmem:[%s828_s26 + $0x218] sm:$0xff] %v284_v3  ;;  %287 = vst [vmem:[%s828_s26 + $0x220] sm:$0xff] %v286_v4 }
  0x35   : > { %289 = vst [vmem:[%s828_s26 + $0x228] sm:$0xff] %v288_v5  ;;  %291 = vst [vmem:[%s828_s26 + $0x230] sm:$0xff] %v290_v6 }
  0x36   : > { %293 = vst [vmem:[%s828_s26 + $0x238] sm:$0xff] %v292_v7 }
  0x37 PF: > { %p633_p5 = scmp.ge.s32.totalorder %s763_s14, 1  ;;  %p298_p6 = scmp.lt.s32.totalorder %s763_s14, 5 }
  0x39   : > { %p299_p7 = pnand %p633_p5, %p298_p6 }
  0x3a   : > { %s305_s27 = sand.u32 (!%p299_p7), 1, %s755_s12   ;;  %v336_v8 = vld [vmem:[%s1069_s0 + $0x8] sm:$0xff] (!%p299_p7)  ;;  %vm415_vm0 = vcmask (!%p299_p7), 130048   ;;  %v409_v9 = vld [vmem:[%s1071_s2] sm:$0xff] (!%p299_p7)  ;;  %v765_v10 = vmov (!%p299_p7), 0   ;;  %s634_s9 = sshll.u32 (!%p299_p7), %s627_s15, 2 }
  0x3b   : > { %302 = sbr.rel (%p299_p7) target bundleno = 320 (0x140), region = 51  ;;  %636 = vmatprep.mubr.msk.f32.mxu0 (!%p299_p7), %vm415_vm0, %v336_v8  ;;  %637 = vmatprep.mubr.msk.f32.mxu1 (!%p299_p7), %vm415_vm0, %v336_v8  ;;  %p330_p8 = scmp.lt.s32.totalorder (!%p299_p7), %s634_s9, 15 }
  0x3c   : > { %s714_s5 = smul.u32 (!%p299_p7), 576, %s305_s27  ;;  %740 = vset.pattern.permute.xlu0 (!%p299_p7), %v765_v10 }
  0x3d   : > { %412 = vperm.xlu0 (!%p299_p7), %740, %v409_v9  }
  0x3e   : > { %s977_s6 = scalar_lea.vmem (!%p299_p7), [#allocation2], %s714_s5 }
  0x3f   : > { %v338_v11 = vld [vmem:[%s977_s6 + $0x8] sm:$0xff] (!%p299_p7)  ;;  %v340_v13 = vld [vmem:[%s977_s6 + $0x18] sm:$0xff] (!%p299_p7)  ;;  %v337_v16 = vld [vmem:[%s977_s6] sm:$0xff] (!%p299_p7) }
  0x40   : > { %v342_v12 = vld [vmem:[%s977_s6 + $0x28] sm:$0xff] (!%p299_p7)  ;;  %v344_v15 = vld [vmem:[%s977_s6 + $0x38] sm:$0xff] (!%p299_p7)  ;;  %v341_v17 = vld [vmem:[%s977_s6 + $0x20] sm:$0xff] (!%p299_p7) }
  0x41   : > { %v641_v14 = vpack.c.bf16 (!%p299_p7), %v342_v12, %v338_v11  ;;  %v677_v18 = vpack.c.bf16 (!%p299_p7), %v344_v15, %v340_v13  ;;  %v643_v19 = vpack.c.bf16 (!%p299_p7), %v341_v17, %v337_v16  ;;  %v339_v20 = vld [vmem:[%s977_s6 + $0x10] sm:$0xff] (!%p299_p7)  ;;  %v346_v22 = vld [vmem:[%s977_s6 + $0x48] sm:$0xff] (!%p299_p7)  ;;  %v348_v25 = vld [vmem:[%s977_s6 + $0x58] sm:$0xff] (!%p299_p7) }
  0x42   : > { %v343_v21 = vld [vmem:[%s977_s6 + $0x30] sm:$0xff]  ;;  %v350_v24 = vld [vmem:[%s977_s6 + $0x68] sm:$0xff]  ;;  %v352_v26 = vld [vmem:[%s977_s6 + $0x78] sm:$0xff]  ;;  %s1077_s9 = smov (!%p330_p8, %s634_s9), 15 }
  0x43   : > { %642 = vmatprep.subr.bf16.mxu0 %v641_v14  ;;  %v679_v23 = vpack.c.bf16 %v343_v21, %v339_v20  ;;  %678 = vmatprep.subr.bf16.mxu1 %v677_v18  ;;  %v645_v27 = vpack.c.bf16 %v350_v24, %v346_v22  ;;  %v681_v28 = vpack.c.bf16 %v352_v26, %v348_v25  ;;  %v345_v29 = vld [vmem:[%s977_s6 + $0x40] sm:$0xff]  ;;  %v347_v31 = vld [vmem:[%s977_s6 + $0x50] sm:$0xff]  ;;  %v354_v34 = vld [vmem:[%s977_s6 + $0x88] sm:$0xff]  ;;  %s635_s10 = sshll.u32 %s1077_s9, 3 }
  0x44   : > { %644 = vmatpush1.bf16.msra.mxu0 %v643_v19  ;;  %v349_v30 = vld [vmem:[%s977_s6 + $0x60] sm:$0xff]  ;;  %v351_v33 = vld [vmem:[%s977_s6 + $0x70] sm:$0xff]  ;;  %v358_v35 = vld [vmem:[%s977_s6 + $0xa8] sm:$0xff]  ;;  %s333_s17 = scalar_lea.vmem %s1072_s3, %s635_s10 }
  0x45   : > { %680 = vmatpush1.bf16.msra.mxu1 %v679_v23  ;;  %v647_v32 = vpack.c.bf16 %v349_v30, %v345_v29  ;;  %646 = vmatprep.subr.bf16.mxu0 %v645_v27  ;;  %v683_v36 = vpack.c.bf16 %v351_v33, %v347_v31  ;;  %v649_v37 = vpack.c.bf16 %v358_v35, %v354_v34  ;;  %v356_v38 = vld [vmem:[%s977_s6 + $0x98] sm:$0xff]  ;;  %v353_v40 = vld [vmem:[%s977_s6 + $0x80] sm:$0xff]  ;;  %v355_v43 = vld [vmem:[%s977_s6 + $0x90] sm:$0xff] }
  0x46   : > { %682 = vmatprep.subr.bf16.mxu1 %v681_v28  ;;  %v360_v39 = vld [vmem:[%s977_s6 + $0xb8] sm:$0xff]  ;;  %v357_v42 = vld [vmem:[%s977_s6 + $0xa0] sm:$0xff]  ;;  %v359_v44 = vld [vmem:[%s977_s6 + $0xb0] sm:$0xff] }
  0x47   : > { %v685_v41 = vpack.c.bf16 %v360_v39, %v356_v38  ;;  %v651_v45 = vpack.c.bf16 %v357_v42, %v353_v40  ;;  %v362_v46 = vld [vmem:[%s977_s6 + $0xc8] sm:$0xff]  ;;  %v364_v48 = vld [vmem:[%s977_s6 + $0xd8] sm:$0xff]  ;;  %v687_v49 = vpack.c.bf16 %v359_v44, %v355_v43  ;;  %v361_v52 = vld [vmem:[%s977_s6 + $0xc0] sm:$0xff] }
  0x48   : > { %648 = vmatpush1.bf16.msra.mxu0 %v647_v32  ;;  %v366_v47 = vld [vmem:[%s977_s6 + $0xe8] sm:$0xff]  ;;  %v368_v51 = vld [vmem:[%s977_s6 + $0xf8] sm:$0xff]  ;;  %v365_v53 = vld [vmem:[%s977_s6 + $0xe0] sm:$0xff] }
  0x49   : > { %684 = vmatpush1.bf16.msra.mxu1 %v683_v36  ;;  %650 = vmatprep.subr.bf16.mxu0 %v649_v37  ;;  %v653_v50 = vpack.c.bf16 %v366_v47, %v362_v46  ;;  %v689_v54 = vpack.c.bf16 %v368_v51, %v364_v48  ;;  %v363_v55 = vld [vmem:[%s977_s6 + $0xd0] sm:$0xff]  ;;  %v370_v57 = vld [vmem:[%s977_s6 + $0x108] sm:$0xff]  ;;  %v372_v59 = vld [vmem:[%s977_s6 + $0x118] sm:$0xff]  ;;  %v655_v61 = vpack.c.bf16 %v365_v53, %v361_v52 }
  0x4a   : > { %686 = vmatprep.subr.bf16.mxu1 %v685_v41  ;;  %v367_v56 = vld [vmem:[%s977_s6 + $0xf0] sm:$0xff]  ;;  %v374_v58 = vld [vmem:[%s977_s6 + $0x128] sm:$0xff]  ;;  %v376_v60 = vld [vmem:[%s977_s6 + $0x138] sm:$0xff] }
  0x4b   : > { %v691_v62 = vpack.c.bf16 %v367_v56, %v363_v55  ;;  %v657_v63 = vpack.c.bf16 %v374_v58, %v370_v57  ;;  %v369_v0 = vld [vmem:[%s977_s6 + $0x100] sm:$0xff]  ;;  %v371_v2 = vld [vmem:[%s977_s6 + $0x110] sm:$0xff]  ;;  %v693_v3 = vpack.c.bf16 %v376_v60, %v372_v59  ;;  %v378_v5 = vld [vmem:[%s977_s6 + $0x148] sm:$0xff] }
  0x4c   : > { %652 = vmatpush1.bf16.msra.mxu0 %v651_v45  ;;  %v373_v1 = vld [vmem:[%s977_s6 + $0x120] sm:$0xff]  ;;  %v375_v4 = vld [vmem:[%s977_s6 + $0x130] sm:$0xff]  ;;  %v382_v6 = vld [vmem:[%s977_s6 + $0x168] sm:$0xff] }
  0x4d   : > { %688 = vmatpush1.bf16.msra.mxu1 %v687_v49  ;;  %654 = vmatprep.subr.bf16.mxu0 %v653_v50  ;;  %v380_v7 = vld [vmem:[%s977_s6 + $0x158] sm:$0xff]  ;;  %v659_v9 = vpack.c.bf16 %v373_v1, %v369_v0  ;;  %v695_v10 = vpack.c.bf16 %v375_v4, %v371_v2  ;;  %v661_v11 = vpack.c.bf16 %v382_v6, %v378_v5  ;;  %v377_v12 = vld [vmem:[%s977_s6 + $0x140] sm:$0xff]  ;;  %v379_v14 = vld [vmem:[%s977_s6 + $0x150] sm:$0xff] }
  0x4e   : > { %690 = vmatprep.subr.bf16.mxu1 %v689_v54  ;;  %v384_v8 = vld [vmem:[%s977_s6 + $0x178] sm:$0xff]  ;;  %v381_v13 = vld [vmem:[%s977_s6 + $0x160] sm:$0xff]  ;;  %v383_v16 = vld [vmem:[%s977_s6 + $0x170] sm:$0xff] }
  0x4f   : > { %v697_v15 = vpack.c.bf16 %v384_v8, %v380_v7  ;;  %v386_v17 = vld [vmem:[%s977_s6 + $0x188] sm:$0xff]  ;;  %v388_v19 = vld [vmem:[%s977_s6 + $0x198] sm:$0xff]  ;;  %v663_v21 = vpack.c.bf16 %v381_v13, %v377_v12  ;;  %v699_v22 = vpack.c.bf16 %v383_v16, %v379_v14  ;;  %v385_v24 = vld [vmem:[%s977_s6 + $0x180] sm:$0xff] }
  0x50   : > { %656 = vmatpush1.bf16.msra.mxu0 %v655_v61  ;;  %v390_v18 = vld [vmem:[%s977_s6 + $0x1a8] sm:$0xff]  ;;  %v392_v20 = vld [vmem:[%s977_s6 + $0x1b8] sm:$0xff]  ;;  %v389_v25 = vld [vmem:[%s977_s6 + $0x1a0] sm:$0xff] }
  0x51   : > { %692 = vmatpush1.bf16.msra.mxu1 %v691_v62  ;;  %658 = vmatprep.subr.bf16.mxu0 %v657_v63  ;;  %v665_v23 = vpack.c.bf16 %v390_v18, %v386_v17  ;;  %v387_v26 = vld [vmem:[%s977_s6 + $0x190] sm:$0xff]  ;;  %v701_v27 = vpack.c.bf16 %v392_v20, %v388_v19  ;;  %v394_v29 = vld [vmem:[%s977_s6 + $0x1c8] sm:$0xff]  ;;  %v396_v31 = vld [vmem:[%s977_s6 + $0x1d8] sm:$0xff]  ;;  %v667_v33 = vpack.c.bf16 %v389_v25, %v385_v24 }
  0x52   : > { %694 = vmatprep.subr.bf16.mxu1 %v693_v3  ;;  %v391_v28 = vld [vmem:[%s977_s6 + $0x1b0] sm:$0xff]  ;;  %v398_v30 = vld [vmem:[%s977_s6 + $0x1e8] sm:$0xff]  ;;  %v400_v32 = vld [vmem:[%s977_s6 + $0x1f8] sm:$0xff] }
  0x53   : > { %v703_v34 = vpack.c.bf16 %v391_v28, %v387_v26  ;;  %v669_v35 = vpack.c.bf16 %v398_v30, %v394_v29  ;;  %v393_v36 = vld [vmem:[%s977_s6 + $0x1c0] sm:$0xff]  ;;  %v395_v38 = vld [vmem:[%s977_s6 + $0x1d0] sm:$0xff]  ;;  %v705_v39 = vpack.c.bf16 %v400_v32, %v396_v31  ;;  %v402_v41 = vld [vmem:[%s977_s6 + $0x208] sm:$0xff] }
  0x54   : > { %660 = vmatpush1.bf16.msra.mxu0 %v659_v9  ;;  %v397_v37 = vld [vmem:[%s977_s6 + $0x1e0] sm:$0xff]  ;;  %v399_v40 = vld [vmem:[%s977_s6 + $0x1f0] sm:$0xff]  ;;  %v406_v42 = vld [vmem:[%s977_s6 + $0x228] sm:$0xff] }
  0x55   : > { %696 = vmatpush1.bf16.msra.mxu1 %v695_v10  ;;  %662 = vmatprep.subr.bf16.mxu0 %v661_v11  ;;  %v404_v43 = vld [vmem:[%s977_s6 + $0x218] sm:$0xff]  ;;  %v671_v45 = vpack.c.bf16 %v397_v37, %v393_v36  ;;  %v707_v46 = vpack.c.bf16 %v399_v40, %v395_v38  ;;  %v673_v47 = vpack.c.bf16 %v406_v42, %v402_v41  ;;  %v401_v48 = vld [vmem:[%s977_s6 + $0x200] sm:$0xff]  ;;  %v403_v51 = vld [vmem:[%s977_s6 + $0x210] sm:$0xff] }
  0x56   : > { %698 = vmatprep.subr.bf16.mxu1 %v697_v15  ;;  %v408_v44 = vld [vmem:[%s977_s6 + $0x238] sm:$0xff]  ;;  %v405_v49 = vld [vmem:[%s977_s6 + $0x220] sm:$0xff]  ;;  %v407_v52 = vld [vmem:[%s977_s6 + $0x230] sm:$0xff] }
  0x57   : > { %v709_v50 = vpack.c.bf16 %v408_v44, %v404_v43  ;;  %v675_v53 = vpack.c.bf16 %v405_v49, %v401_v48  ;;  %v711_v54 = vpack.c.bf16 %v407_v52, %v403_v51  ;;  %v335_v55 = vld [vmem:[%s1069_s0] sm:$0xff] }
  0x58   : > { %664 = vmatpush1.bf16.msra.mxu0 %v663_v21 }
  0x59   : > { %700 = vmatpush1.bf16.msra.mxu1 %v699_v22  ;;  %666 = vmatprep.subr.bf16.mxu0 %v665_v23 }
  0x5a   : > { %702 = vmatprep.subr.bf16.mxu1 %v701_v27 }
  0x5c   : > { %668 = vmatpush1.bf16.msra.mxu0 %v667_v33 }
  0x5d   : > { %704 = vmatpush1.bf16.msra.mxu1 %v703_v34  ;;  %670 = vmatprep.subr.bf16.mxu0 %v669_v35 }
  0x5e   : > { %706 = vmatprep.subr.bf16.mxu1 %v705_v39 }
  0x60   : > { %672 = vmatpush1.bf16.msra.mxu0 %v671_v45 }
  0x61   : > { %708 = vmatpush1.bf16.msra.mxu1 %v707_v46  ;;  %674 = vmatprep.subr.bf16.mxu0 %v673_v47 }
  0x62   : > { %710 = vmatprep.subr.bf16.mxu1 %v709_v50 }
  0x64   : > { %676 = vmatpush1.bf16.msra.mxu0 %v675_v53 }
  0x65   : > { %712 = vmatpush1.bf16.msra.mxu1 %v711_v54 }
  0x67   : > { %484 = vmatmul.mubr.f32.vlgmr.msra.gmra.mrb[0].mxu0 %v335_v55 }
  0x68   : > { %555 = vmatmul.mubr.f32.vlgmr.msra.gmra.mrb[0].mxu1 %v335_v55 }
  0xbc   : > { %v413_v56 = vpop.permute.xlu0 %412 }
 0x13a   : > { %v485_v57 = vpop.f32.mrb[0].mxu0 }
 0x13b   : > { %v486_v58 = vadd.f32 %v485_v57, %v413_v56  ;;  %v556_v59 = vpop.f32.mrb[0].mxu1  ;;  %v487_v60 = vpop.f32.mrb[1].mxu0 }
 0x13c   : > { %v557_v61 = vadd.f32 %v556_v59, %v413_v56  ;;  %v488_v62 = vadd.f32 %v487_v60, %v413_v56  ;;  %v558_v63 = vpop.f32.mrb[1].mxu1 }
 0x13d   : > { %561 = vst [vmem:[%s333_s17] sm:$0xff] %v486_v58  ;;  %v559_v0 = vadd.f32 %v558_v63, %v413_v56 }
 0x13e   : > { %563 = vst [vmem:[%s333_s17 + $0x10] sm:$0xff] %v557_v61  ;;  %562 = vst [vmem:[%s333_s17 + $0x8] sm:$0xff] %v488_v62 }
 0x13f   : > { %564 = vst [vmem:[%s333_s17 + $0x18] sm:$0xff] %v559_v0 }
 0x140 PF: > { %p10_p9 = scmp.ge.s32.totalorder %s803_s16, 6   ;;  %s1073_s12 = smov %s759_s13 }
 0x141   : > { %s1074_s13 = smov %s812_s19  ;;  %s1075_s14 = smov %s803_s16 }
 0x142   :  { %12 = sbr.rel (!%p10_p9) target bundleno = 2 (0x2), region = 90 }

</bundles_post_ra>
